<compile_context>
chip_gen: v6e
topology: v6e:2x2x1
jax: 0.10.0
libtpu: 0.0.40
codegen_flags: <defaults>
</compile_context>

<pallas_src>
import jax
import jax.numpy as jnp
from jax import lax
from jax.experimental import pallas as pl
from jax.experimental.pallas import tpu as pltpu

# ---------------- static problem sizes -------------------------------------
B = 2
C_IN, H, W = 3, 32, 32
K = 3                                            # both convs: 3x3, stride 1, pad 0
C1_OUT, H1, W1 = 1, H - K + 1, W - K + 1         # (1, 30, 30)
C2_OUT, H2, W2 = 6, H1 - K + 1, W1 - K + 1       # (6, 28, 28)
FLAT = C2_OUT * H2 * W2                          # 4704
N_OUT = 10

HW = H * W                                       # 1024 flat pixels per channel
XPAD = HW + 64                                   # 1088: room for the +66 max shift
L1 = (H1 + 1) * W                                # 992: conv1 output rows (stride 32)
L2 = H2 * W                                      # 896 = 7*128: conv2 output (stride 32)
FLAT_PAD = C2_OUT * L2                           # 5376 = 42*128 lane-dense flatten

_VMEM = pl.BlockSpec(memory_space=pltpu.MemorySpace.VMEM)
_SMEM = pl.BlockSpec(memory_space=pltpu.MemorySpace.SMEM)

# flat lane offsets of the 3x3 taps (ki-major, kj-minor -> matches OIHW flatten)
_OFFS = [ki * W + kj for ki in range(K) for kj in range(K)]


def _softplus(v):
    # numerically stable softplus: max(v,0) + log(1 + exp(-|v|))
    return jnp.maximum(v, 0.0) + jnp.log(1.0 + jnp.exp(-jnp.abs(v)))


# ---------------- fused kernel ----------------------------------------------
def fused_kernel(x_ref, w1_ref, w2_ref, wl_ref, b_ref, o_ref):
    # x_ref : (3, B, XPAD) VMEM   flattened H*W per channel, zero tail padding
    # w1_ref: (27,)  SMEM          conv1 weight, index = c*9 + ki*3 + kj
    # w2_ref: (54,)  SMEM          conv2 weight, index = c*9 + ki*3 + kj
    # wl_ref: (10, FLAT_PAD) VMEM  linear weight, zero-padded to stride-32 layout
    # b_ref : (1, 10) VMEM
    # o_ref : (B, 10) VMEM

    # ---- conv1 (3->1, 3x3) + softplus: scalar-weighted lane-shifted slabs ----
    # h1 kept at stride W=32; columns >= 30 / rows >= 30 are don't-care values.
    h1 = jnp.zeros((B, L1), jnp.float32)
    for c in range(C_IN):
        xc = x_ref[c]                                   # (B, XPAD), no relayout
        for t, off in enumerate(_OFFS):
            h1 = h1 + xc[:, off:off + L1] * w1_ref[c * 9 + t]
    h1 = _softplus(h1)

    # shifted views of h1 hoisted: shared by all 6 conv2 output channels
    h1s = [h1[:, off:off + L2] for off in _OFFS]        # 9 x (B, 896)

    # ---- conv2 (1->6, 3x3) + softplus, lane-dense per-channel blocks --------
    parts = []
    for c in range(C2_OUT):
        a = jnp.zeros((B, L2), jnp.float32)
        for t in range(K * K):
            a = a + h1s[t] * w2_ref[c * 9 + t]
        parts.append(_softplus(a))                      # (B, 896)
    h2 = jnp.concatenate(parts, axis=-1)                # (B, 5376), 128-aligned blocks

    # ---- 4704->10 linear on the MXU (zero-padded weight masks stride padding)
    y = lax.dot_general(h2, wl_ref[...],
                        (((1,), (1,)), ((), ())),        # contract lane axes (h2 @ wl^T)
                        preferred_element_type=jnp.float32)   # (B, 10)
    z = y + b_ref[...]                                   # (B, 10) + (1, 10)

    # stable sigmoid
    ez = jnp.exp(-jnp.abs(z))
    o_ref[...] = jnp.where(z >= 0.0, 1.0 / (1.0 + ez), ez / (1.0 + ez))


_fused_call = pl.pallas_call(
    fused_kernel,
    out_shape=jax.ShapeDtypeStruct((B, N_OUT), jnp.float32),
    in_specs=[_VMEM, _SMEM, _SMEM, _VMEM, _VMEM],
    out_specs=_VMEM,
)


# ---------------- host-side glue ---------------------------------------------
def prepare_params(conv1_w, conv2_w, lin_w, lin_b):
    """Hoisted weight re-layouts (done once, outside the forward path)."""
    w1 = conv1_w.reshape(-1).astype(jnp.float32)                     # (27,)
    w2 = conv2_w.reshape(-1).astype(jnp.float32)                     # (54,)
    # Linear weight laid out to match the kernel's stride-32 flatten:
    #   wl[o, c*896 + i*32 + j] = lin_w[o, c*784 + i*28 + j]  (j<28), else 0.
    wl = lin_w.reshape(N_OUT, C2_OUT, H2, W2)
    wl = jnp.pad(wl, ((0, 0), (0, 0), (0, 0), (0, W - W2)))          # j: 28 -> 32
    wl = wl.reshape(N_OUT, FLAT_PAD).astype(jnp.float32)             # (10, 5376)
    bias = lin_b.reshape(1, N_OUT).astype(jnp.float32)
    return w1, w2, wl, bias


@jax.jit
def _run(x, w1, w2, wl, bias):
    # lane-dense, channel-major, zero-tail-padded image (tiny XLA copy)
    xf = x.reshape(B, C_IN, HW).transpose(1, 0, 2).astype(jnp.float32)
    xf = jnp.pad(xf, ((0, 0), (0, 0), (0, XPAD - HW)))               # (3, B, 1088)
    return _fused_call(xf, w1, w2, wl, bias)


def cnn3_c42_forward(x, params):
    """x: (B, 3, 32, 32) NCHW. Returns (y, x_shape) like the PyTorch module."""
    y = _run(x, *params)
    x_shape = [(B, C1_OUT, H1, W1), (B, C2_OUT, H2, W2), (B, N_OUT)]
    return y, x_shape


# ---------------- main --------------------------------------------------------
if __name__ == "__main__":
    key = jax.random.PRNGKey(0)
    k1, k2, k3, k4, kx = jax.random.split(key, 5)

    # deterministic PyTorch-style uniform init bounds
    b1 = 1.0 / jnp.sqrt(float(C_IN * K * K))
    conv1_w = jax.random.uniform(k1, (C1_OUT, C_IN, K, K), jnp.float32, -b1, b1)
    b2 = 1.0 / jnp.sqrt(float(C1_OUT * K * K))
    conv2_w = jax.random.uniform(k2, (C2_OUT, C1_OUT, K, K), jnp.float32, -b2, b2)
    bl = 1.0 / jnp.sqrt(float(FLAT))
    lin_w = jax.random.uniform(k3, (N_OUT, FLAT), jnp.float32, -bl, bl)
    lin_b = jax.random.uniform(k4, (N_OUT,), jnp.float32, -bl, bl)

    x = jax.random.normal(kx, (B, C_IN, H, W), jnp.float32)

    params = prepare_params(conv1_w, conv2_w, lin_w, lin_b)
    y, x_shape = cnn3_c42_forward(x, params)
    y = jax.block_until_ready(y)

    # pure-JAX reference
    dn = ("NCHW", "OIHW", "NCHW")
    ref_h1 = jax.nn.softplus(lax.conv_general_dilated(
        x, conv1_w, (1, 1), "VALID", dimension_numbers=dn,
        precision=lax.Precision.HIGHEST))
    ref_h2 = jax.nn.softplus(lax.conv_general_dilated(
        ref_h1, conv2_w, (1, 1), "VALID", dimension_numbers=dn,
        precision=lax.Precision.HIGHEST))
    ref_y = jax.nn.sigmoid(
        jnp.dot(ref_h2.reshape(B, -1), lin_w.T,
                precision=lax.Precision.HIGHEST) + lin_b)

    assert y.shape == (B, N_OUT)
    assert x_shape == [(B, C1_OUT, H1, W1), (B, C2_OUT, H2, W2), (B, N_OUT)]
    assert jnp.allclose(y, ref_y, rtol=1e-3, atol=1e-3), \
        float(jnp.max(jnp.abs(y - ref_y)))

    print("KERNEL_OK")
</pallas_src>

<mosaic_0001>
module attributes {stable_mosaic.version = 11 : i64} {
  func.func @fused_kernel(%arg0: memref<3x2x1088xf32, #tpu.memory_space<vmem>>, %arg1: memref<27xf32, #tpu.memory_space<smem>>, %arg2: memref<54xf32, #tpu.memory_space<smem>>, %arg3: memref<10x5376xf32, #tpu.memory_space<vmem>>, %arg4: memref<1x10xf32, #tpu.memory_space<vmem>>, %arg5: memref<2x10xf32, #tpu.memory_space<vmem>>) attributes {dimension_semantics = [], scalar_prefetch = 0 : i64, scratch_operands = 0 : i64, tpu.core_type = #tpu.core_type<tc>} {
    %cst = arith.constant 0.000000e+00 : f32
    %0 = vector.broadcast %cst : f32 to vector<2x992xf32>
    %c0 = arith.constant 0 : index
    %c0_0 = arith.constant 0 : index
    %c0_1 = arith.constant 0 : index
    %1 = vector.load %arg0[%c0, %c0_0, %c0_1] : memref<3x2x1088xf32, #tpu.memory_space<vmem>>, vector<1x2x1088xf32>
    %2 = vector.shape_cast %1 : vector<1x2x1088xf32> to vector<2x1088xf32>
    %3 = vector.extract_strided_slice %2 {offsets = [0, 0], sizes = [2, 992], strides = [1, 1]} : vector<2x1088xf32> to vector<2x992xf32>
    %c0_2 = arith.constant 0 : index
    %4 = memref.load %arg1[%c0_2] : memref<27xf32, #tpu.memory_space<smem>>
    %5 = vector.broadcast %4 : f32 to vector<2x992xf32>
    %6 = arith.mulf %3, %5 : vector<2x992xf32>
    %7 = arith.addf %0, %6 : vector<2x992xf32>
    %8 = vector.extract_strided_slice %2 {offsets = [0, 1], sizes = [2, 992], strides = [1, 1]} : vector<2x1088xf32> to vector<2x992xf32>
    %c1 = arith.constant 1 : index
    %9 = memref.load %arg1[%c1] : memref<27xf32, #tpu.memory_space<smem>>
    %10 = vector.broadcast %9 : f32 to vector<2x992xf32>
    %11 = arith.mulf %8, %10 : vector<2x992xf32>
    %12 = arith.addf %7, %11 : vector<2x992xf32>
    %13 = vector.extract_strided_slice %2 {offsets = [0, 2], sizes = [2, 992], strides = [1, 1]} : vector<2x1088xf32> to vector<2x992xf32>
    %c2 = arith.constant 2 : index
    %14 = memref.load %arg1[%c2] : memref<27xf32, #tpu.memory_space<smem>>
    %15 = vector.broadcast %14 : f32 to vector<2x992xf32>
    %16 = arith.mulf %13, %15 : vector<2x992xf32>
    %17 = arith.addf %12, %16 : vector<2x992xf32>
    %18 = vector.extract_strided_slice %2 {offsets = [0, 32], sizes = [2, 992], strides = [1, 1]} : vector<2x1088xf32> to vector<2x992xf32>
    %c3 = arith.constant 3 : index
    %19 = memref.load %arg1[%c3] : memref<27xf32, #tpu.memory_space<smem>>
    %20 = vector.broadcast %19 : f32 to vector<2x992xf32>
    %21 = arith.mulf %18, %20 : vector<2x992xf32>
    %22 = arith.addf %17, %21 : vector<2x992xf32>
    %23 = vector.extract_strided_slice %2 {offsets = [0, 33], sizes = [2, 992], strides = [1, 1]} : vector<2x1088xf32> to vector<2x992xf32>
    %c4 = arith.constant 4 : index
    %24 = memref.load %arg1[%c4] : memref<27xf32, #tpu.memory_space<smem>>
    %25 = vector.broadcast %24 : f32 to vector<2x992xf32>
    %26 = arith.mulf %23, %25 : vector<2x992xf32>
    %27 = arith.addf %22, %26 : vector<2x992xf32>
    %28 = vector.extract_strided_slice %2 {offsets = [0, 34], sizes = [2, 992], strides = [1, 1]} : vector<2x1088xf32> to vector<2x992xf32>
    %c5 = arith.constant 5 : index
    %29 = memref.load %arg1[%c5] : memref<27xf32, #tpu.memory_space<smem>>
    %30 = vector.broadcast %29 : f32 to vector<2x992xf32>
    %31 = arith.mulf %28, %30 : vector<2x992xf32>
    %32 = arith.addf %27, %31 : vector<2x992xf32>
    %33 = vector.extract_strided_slice %2 {offsets = [0, 64], sizes = [2, 992], strides = [1, 1]} : vector<2x1088xf32> to vector<2x992xf32>
    %c6 = arith.constant 6 : index
    %34 = memref.load %arg1[%c6] : memref<27xf32, #tpu.memory_space<smem>>
    %35 = vector.broadcast %34 : f32 to vector<2x992xf32>
    %36 = arith.mulf %33, %35 : vector<2x992xf32>
    %37 = arith.addf %32, %36 : vector<2x992xf32>
    %38 = vector.extract_strided_slice %2 {offsets = [0, 65], sizes = [2, 992], strides = [1, 1]} : vector<2x1088xf32> to vector<2x992xf32>
    %c7 = arith.constant 7 : index
    %39 = memref.load %arg1[%c7] : memref<27xf32, #tpu.memory_space<smem>>
    %40 = vector.broadcast %39 : f32 to vector<2x992xf32>
    %41 = arith.mulf %38, %40 : vector<2x992xf32>
    %42 = arith.addf %37, %41 : vector<2x992xf32>
    %43 = vector.extract_strided_slice %2 {offsets = [0, 66], sizes = [2, 992], strides = [1, 1]} : vector<2x1088xf32> to vector<2x992xf32>
    %c8 = arith.constant 8 : index
    %44 = memref.load %arg1[%c8] : memref<27xf32, #tpu.memory_space<smem>>
    %45 = vector.broadcast %44 : f32 to vector<2x992xf32>
    %46 = arith.mulf %43, %45 : vector<2x992xf32>
    %47 = arith.addf %42, %46 : vector<2x992xf32>
    %c1_3 = arith.constant 1 : index
    %c0_4 = arith.constant 0 : index
    %c0_5 = arith.constant 0 : index
    %48 = vector.load %arg0[%c1_3, %c0_4, %c0_5] : memref<3x2x1088xf32, #tpu.memory_space<vmem>>, vector<1x2x1088xf32>
    %49 = vector.shape_cast %48 : vector<1x2x1088xf32> to vector<2x1088xf32>
    %50 = vector.extract_strided_slice %49 {offsets = [0, 0], sizes = [2, 992], strides = [1, 1]} : vector<2x1088xf32> to vector<2x992xf32>
    %c9 = arith.constant 9 : index
    %51 = memref.load %arg1[%c9] : memref<27xf32, #tpu.memory_space<smem>>
    %52 = vector.broadcast %51 : f32 to vector<2x992xf32>
    %53 = arith.mulf %50, %52 : vector<2x992xf32>
    %54 = arith.addf %47, %53 : vector<2x992xf32>
    %55 = vector.extract_strided_slice %49 {offsets = [0, 1], sizes = [2, 992], strides = [1, 1]} : vector<2x1088xf32> to vector<2x992xf32>
    %c10 = arith.constant 10 : index
    %56 = memref.load %arg1[%c10] : memref<27xf32, #tpu.memory_space<smem>>
    %57 = vector.broadcast %56 : f32 to vector<2x992xf32>
    %58 = arith.mulf %55, %57 : vector<2x992xf32>
    %59 = arith.addf %54, %58 : vector<2x992xf32>
    %60 = vector.extract_strided_slice %49 {offsets = [0, 2], sizes = [2, 992], strides = [1, 1]} : vector<2x1088xf32> to vector<2x992xf32>
    %c11 = arith.constant 11 : index
    %61 = memref.load %arg1[%c11] : memref<27xf32, #tpu.memory_space<smem>>
    %62 = vector.broadcast %61 : f32 to vector<2x992xf32>
    %63 = arith.mulf %60, %62 : vector<2x992xf32>
    %64 = arith.addf %59, %63 : vector<2x992xf32>
    %65 = vector.extract_strided_slice %49 {offsets = [0, 32], sizes = [2, 992], strides = [1, 1]} : vector<2x1088xf32> to vector<2x992xf32>
    %c12 = arith.constant 12 : index
    %66 = memref.load %arg1[%c12] : memref<27xf32, #tpu.memory_space<smem>>
    %67 = vector.broadcast %66 : f32 to vector<2x992xf32>
    %68 = arith.mulf %65, %67 : vector<2x992xf32>
    %69 = arith.addf %64, %68 : vector<2x992xf32>
    %70 = vector.extract_strided_slice %49 {offsets = [0, 33], sizes = [2, 992], strides = [1, 1]} : vector<2x1088xf32> to vector<2x992xf32>
    %c13 = arith.constant 13 : index
    %71 = memref.load %arg1[%c13] : memref<27xf32, #tpu.memory_space<smem>>
    %72 = vector.broadcast %71 : f32 to vector<2x992xf32>
    %73 = arith.mulf %70, %72 : vector<2x992xf32>
    %74 = arith.addf %69, %73 : vector<2x992xf32>
    %75 = vector.extract_strided_slice %49 {offsets = [0, 34], sizes = [2, 992], strides = [1, 1]} : vector<2x1088xf32> to vector<2x992xf32>
    %c14 = arith.constant 14 : index
    %76 = memref.load %arg1[%c14] : memref<27xf32, #tpu.memory_space<smem>>
    %77 = vector.broadcast %76 : f32 to vector<2x992xf32>
    %78 = arith.mulf %75, %77 : vector<2x992xf32>
    %79 = arith.addf %74, %78 : vector<2x992xf32>
    %80 = vector.extract_strided_slice %49 {offsets = [0, 64], sizes = [2, 992], strides = [1, 1]} : vector<2x1088xf32> to vector<2x992xf32>
    %c15 = arith.constant 15 : index
    %81 = memref.load %arg1[%c15] : memref<27xf32, #tpu.memory_space<smem>>
    %82 = vector.broadcast %81 : f32 to vector<2x992xf32>
    %83 = arith.mulf %80, %82 : vector<2x992xf32>
    %84 = arith.addf %79, %83 : vector<2x992xf32>
    %85 = vector.extract_strided_slice %49 {offsets = [0, 65], sizes = [2, 992], strides = [1, 1]} : vector<2x1088xf32> to vector<2x992xf32>
    %c16 = arith.constant 16 : index
    %86 = memref.load %arg1[%c16] : memref<27xf32, #tpu.memory_space<smem>>
    %87 = vector.broadcast %86 : f32 to vector<2x992xf32>
    %88 = arith.mulf %85, %87 : vector<2x992xf32>
    %89 = arith.addf %84, %88 : vector<2x992xf32>
    %90 = vector.extract_strided_slice %49 {offsets = [0, 66], sizes = [2, 992], strides = [1, 1]} : vector<2x1088xf32> to vector<2x992xf32>
    %c17 = arith.constant 17 : index
    %91 = memref.load %arg1[%c17] : memref<27xf32, #tpu.memory_space<smem>>
    %92 = vector.broadcast %91 : f32 to vector<2x992xf32>
    %93 = arith.mulf %90, %92 : vector<2x992xf32>
    %94 = arith.addf %89, %93 : vector<2x992xf32>
    %c2_6 = arith.constant 2 : index
    %c0_7 = arith.constant 0 : index
    %c0_8 = arith.constant 0 : index
    %95 = vector.load %arg0[%c2_6, %c0_7, %c0_8] : memref<3x2x1088xf32, #tpu.memory_space<vmem>>, vector<1x2x1088xf32>
    %96 = vector.shape_cast %95 : vector<1x2x1088xf32> to vector<2x1088xf32>
    %97 = vector.extract_strided_slice %96 {offsets = [0, 0], sizes = [2, 992], strides = [1, 1]} : vector<2x1088xf32> to vector<2x992xf32>
    %c18 = arith.constant 18 : index
    %98 = memref.load %arg1[%c18] : memref<27xf32, #tpu.memory_space<smem>>
    %99 = vector.broadcast %98 : f32 to vector<2x992xf32>
    %100 = arith.mulf %97, %99 : vector<2x992xf32>
    %101 = arith.addf %94, %100 : vector<2x992xf32>
    %102 = vector.extract_strided_slice %96 {offsets = [0, 1], sizes = [2, 992], strides = [1, 1]} : vector<2x1088xf32> to vector<2x992xf32>
    %c19 = arith.constant 19 : index
    %103 = memref.load %arg1[%c19] : memref<27xf32, #tpu.memory_space<smem>>
    %104 = vector.broadcast %103 : f32 to vector<2x992xf32>
    %105 = arith.mulf %102, %104 : vector<2x992xf32>
    %106 = arith.addf %101, %105 : vector<2x992xf32>
    %107 = vector.extract_strided_slice %96 {offsets = [0, 2], sizes = [2, 992], strides = [1, 1]} : vector<2x1088xf32> to vector<2x992xf32>
    %c20 = arith.constant 20 : index
    %108 = memref.load %arg1[%c20] : memref<27xf32, #tpu.memory_space<smem>>
    %109 = vector.broadcast %108 : f32 to vector<2x992xf32>
    %110 = arith.mulf %107, %109 : vector<2x992xf32>
    %111 = arith.addf %106, %110 : vector<2x992xf32>
    %112 = vector.extract_strided_slice %96 {offsets = [0, 32], sizes = [2, 992], strides = [1, 1]} : vector<2x1088xf32> to vector<2x992xf32>
    %c21 = arith.constant 21 : index
    %113 = memref.load %arg1[%c21] : memref<27xf32, #tpu.memory_space<smem>>
    %114 = vector.broadcast %113 : f32 to vector<2x992xf32>
    %115 = arith.mulf %112, %114 : vector<2x992xf32>
    %116 = arith.addf %111, %115 : vector<2x992xf32>
    %117 = vector.extract_strided_slice %96 {offsets = [0, 33], sizes = [2, 992], strides = [1, 1]} : vector<2x1088xf32> to vector<2x992xf32>
    %c22 = arith.constant 22 : index
    %118 = memref.load %arg1[%c22] : memref<27xf32, #tpu.memory_space<smem>>
    %119 = vector.broadcast %118 : f32 to vector<2x992xf32>
    %120 = arith.mulf %117, %119 : vector<2x992xf32>
    %121 = arith.addf %116, %120 : vector<2x992xf32>
    %122 = vector.extract_strided_slice %96 {offsets = [0, 34], sizes = [2, 992], strides = [1, 1]} : vector<2x1088xf32> to vector<2x992xf32>
    %c23 = arith.constant 23 : index
    %123 = memref.load %arg1[%c23] : memref<27xf32, #tpu.memory_space<smem>>
    %124 = vector.broadcast %123 : f32 to vector<2x992xf32>
    %125 = arith.mulf %122, %124 : vector<2x992xf32>
    %126 = arith.addf %121, %125 : vector<2x992xf32>
    %127 = vector.extract_strided_slice %96 {offsets = [0, 64], sizes = [2, 992], strides = [1, 1]} : vector<2x1088xf32> to vector<2x992xf32>
    %c24 = arith.constant 24 : index
    %128 = memref.load %arg1[%c24] : memref<27xf32, #tpu.memory_space<smem>>
    %129 = vector.broadcast %128 : f32 to vector<2x992xf32>
    %130 = arith.mulf %127, %129 : vector<2x992xf32>
    %131 = arith.addf %126, %130 : vector<2x992xf32>
    %132 = vector.extract_strided_slice %96 {offsets = [0, 65], sizes = [2, 992], strides = [1, 1]} : vector<2x1088xf32> to vector<2x992xf32>
    %c25 = arith.constant 25 : index
    %133 = memref.load %arg1[%c25] : memref<27xf32, #tpu.memory_space<smem>>
    %134 = vector.broadcast %133 : f32 to vector<2x992xf32>
    %135 = arith.mulf %132, %134 : vector<2x992xf32>
    %136 = arith.addf %131, %135 : vector<2x992xf32>
    %137 = vector.extract_strided_slice %96 {offsets = [0, 66], sizes = [2, 992], strides = [1, 1]} : vector<2x1088xf32> to vector<2x992xf32>
    %c26 = arith.constant 26 : index
    %138 = memref.load %arg1[%c26] : memref<27xf32, #tpu.memory_space<smem>>
    %139 = vector.broadcast %138 : f32 to vector<2x992xf32>
    %140 = arith.mulf %137, %139 : vector<2x992xf32>
    %141 = arith.addf %136, %140 : vector<2x992xf32>
    %cst_9 = arith.constant 0.000000e+00 : f32
    %142 = vector.broadcast %cst_9 : f32 to vector<2x992xf32>
    %143 = arith.maximumf %141, %142 : vector<2x992xf32>
    %144 = math.absf %141 : vector<2x992xf32>
    %cst_10 = arith.constant 0.000000e+00 : f32
    %145 = vector.broadcast %cst_10 : f32 to vector<2x992xf32>
    %146 = arith.subf %145, %144 : vector<2x992xf32>
    %147 = math.exp %146 : vector<2x992xf32>
    %cst_11 = arith.constant 1.000000e+00 : f32
    %148 = vector.broadcast %cst_11 : f32 to vector<2x992xf32>
    %149 = arith.addf %148, %147 : vector<2x992xf32>
    %150 = math.log %149 : vector<2x992xf32>
    %151 = arith.addf %143, %150 : vector<2x992xf32>
    %152 = vector.extract_strided_slice %151 {offsets = [0, 0], sizes = [2, 896], strides = [1, 1]} : vector<2x992xf32> to vector<2x896xf32>
    %153 = vector.extract_strided_slice %151 {offsets = [0, 1], sizes = [2, 896], strides = [1, 1]} : vector<2x992xf32> to vector<2x896xf32>
    %154 = vector.extract_strided_slice %151 {offsets = [0, 2], sizes = [2, 896], strides = [1, 1]} : vector<2x992xf32> to vector<2x896xf32>
    %155 = vector.extract_strided_slice %151 {offsets = [0, 32], sizes = [2, 896], strides = [1, 1]} : vector<2x992xf32> to vector<2x896xf32>
    %156 = vector.extract_strided_slice %151 {offsets = [0, 33], sizes = [2, 896], strides = [1, 1]} : vector<2x992xf32> to vector<2x896xf32>
    %157 = vector.extract_strided_slice %151 {offsets = [0, 34], sizes = [2, 896], strides = [1, 1]} : vector<2x992xf32> to vector<2x896xf32>
    %158 = vector.extract_strided_slice %151 {offsets = [0, 64], sizes = [2, 896], strides = [1, 1]} : vector<2x992xf32> to vector<2x896xf32>
    %159 = vector.extract_strided_slice %151 {offsets = [0, 65], sizes = [2, 896], strides = [1, 1]} : vector<2x992xf32> to vector<2x896xf32>
    %160 = vector.extract_strided_slice %151 {offsets = [0, 66], sizes = [2, 896], strides = [1, 1]} : vector<2x992xf32> to vector<2x896xf32>
    %cst_12 = arith.constant 0.000000e+00 : f32
    %161 = vector.broadcast %cst_12 : f32 to vector<2x896xf32>
    %c0_13 = arith.constant 0 : index
    %162 = memref.load %arg2[%c0_13] : memref<54xf32, #tpu.memory_space<smem>>
    %163 = vector.broadcast %162 : f32 to vector<2x896xf32>
    %164 = arith.mulf %152, %163 : vector<2x896xf32>
    %165 = arith.addf %161, %164 : vector<2x896xf32>
    %c1_14 = arith.constant 1 : index
    %166 = memref.load %arg2[%c1_14] : memref<54xf32, #tpu.memory_space<smem>>
    %167 = vector.broadcast %166 : f32 to vector<2x896xf32>
    %168 = arith.mulf %153, %167 : vector<2x896xf32>
    %169 = arith.addf %165, %168 : vector<2x896xf32>
    %c2_15 = arith.constant 2 : index
    %170 = memref.load %arg2[%c2_15] : memref<54xf32, #tpu.memory_space<smem>>
    %171 = vector.broadcast %170 : f32 to vector<2x896xf32>
    %172 = arith.mulf %154, %171 : vector<2x896xf32>
    %173 = arith.addf %169, %172 : vector<2x896xf32>
    %c3_16 = arith.constant 3 : index
    %174 = memref.load %arg2[%c3_16] : memref<54xf32, #tpu.memory_space<smem>>
    %175 = vector.broadcast %174 : f32 to vector<2x896xf32>
    %176 = arith.mulf %155, %175 : vector<2x896xf32>
    %177 = arith.addf %173, %176 : vector<2x896xf32>
    %c4_17 = arith.constant 4 : index
    %178 = memref.load %arg2[%c4_17] : memref<54xf32, #tpu.memory_space<smem>>
    %179 = vector.broadcast %178 : f32 to vector<2x896xf32>
    %180 = arith.mulf %156, %179 : vector<2x896xf32>
    %181 = arith.addf %177, %180 : vector<2x896xf32>
    %c5_18 = arith.constant 5 : index
    %182 = memref.load %arg2[%c5_18] : memref<54xf32, #tpu.memory_space<smem>>
    %183 = vector.broadcast %182 : f32 to vector<2x896xf32>
    %184 = arith.mulf %157, %183 : vector<2x896xf32>
    %185 = arith.addf %181, %184 : vector<2x896xf32>
    %c6_19 = arith.constant 6 : index
    %186 = memref.load %arg2[%c6_19] : memref<54xf32, #tpu.memory_space<smem>>
    %187 = vector.broadcast %186 : f32 to vector<2x896xf32>
    %188 = arith.mulf %158, %187 : vector<2x896xf32>
    %189 = arith.addf %185, %188 : vector<2x896xf32>
    %c7_20 = arith.constant 7 : index
    %190 = memref.load %arg2[%c7_20] : memref<54xf32, #tpu.memory_space<smem>>
    %191 = vector.broadcast %190 : f32 to vector<2x896xf32>
    %192 = arith.mulf %159, %191 : vector<2x896xf32>
    %193 = arith.addf %189, %192 : vector<2x896xf32>
    %c8_21 = arith.constant 8 : index
    %194 = memref.load %arg2[%c8_21] : memref<54xf32, #tpu.memory_space<smem>>
    %195 = vector.broadcast %194 : f32 to vector<2x896xf32>
    %196 = arith.mulf %160, %195 : vector<2x896xf32>
    %197 = arith.addf %193, %196 : vector<2x896xf32>
    %cst_22 = arith.constant 0.000000e+00 : f32
    %198 = vector.broadcast %cst_22 : f32 to vector<2x896xf32>
    %199 = arith.maximumf %197, %198 : vector<2x896xf32>
    %200 = math.absf %197 : vector<2x896xf32>
    %cst_23 = arith.constant 0.000000e+00 : f32
    %201 = vector.broadcast %cst_23 : f32 to vector<2x896xf32>
    %202 = arith.subf %201, %200 : vector<2x896xf32>
    %203 = math.exp %202 : vector<2x896xf32>
    %cst_24 = arith.constant 1.000000e+00 : f32
    %204 = vector.broadcast %cst_24 : f32 to vector<2x896xf32>
    %205 = arith.addf %204, %203 : vector<2x896xf32>
    %206 = math.log %205 : vector<2x896xf32>
    %207 = arith.addf %199, %206 : vector<2x896xf32>
    %cst_25 = arith.constant 0.000000e+00 : f32
    %208 = vector.broadcast %cst_25 : f32 to vector<2x896xf32>
    %c9_26 = arith.constant 9 : index
    %209 = memref.load %arg2[%c9_26] : memref<54xf32, #tpu.memory_space<smem>>
    %210 = vector.broadcast %209 : f32 to vector<2x896xf32>
    %211 = arith.mulf %152, %210 : vector<2x896xf32>
    %212 = arith.addf %208, %211 : vector<2x896xf32>
    %c10_27 = arith.constant 10 : index
    %213 = memref.load %arg2[%c10_27] : memref<54xf32, #tpu.memory_space<smem>>
    %214 = vector.broadcast %213 : f32 to vector<2x896xf32>
    %215 = arith.mulf %153, %214 : vector<2x896xf32>
    %216 = arith.addf %212, %215 : vector<2x896xf32>
    %c11_28 = arith.constant 11 : index
    %217 = memref.load %arg2[%c11_28] : memref<54xf32, #tpu.memory_space<smem>>
    %218 = vector.broadcast %217 : f32 to vector<2x896xf32>
    %219 = arith.mulf %154, %218 : vector<2x896xf32>
    %220 = arith.addf %216, %219 : vector<2x896xf32>
    %c12_29 = arith.constant 12 : index
    %221 = memref.load %arg2[%c12_29] : memref<54xf32, #tpu.memory_space<smem>>
    %222 = vector.broadcast %221 : f32 to vector<2x896xf32>
    %223 = arith.mulf %155, %222 : vector<2x896xf32>
    %224 = arith.addf %220, %223 : vector<2x896xf32>
    %c13_30 = arith.constant 13 : index
    %225 = memref.load %arg2[%c13_30] : memref<54xf32, #tpu.memory_space<smem>>
    %226 = vector.broadcast %225 : f32 to vector<2x896xf32>
    %227 = arith.mulf %156, %226 : vector<2x896xf32>
    %228 = arith.addf %224, %227 : vector<2x896xf32>
    %c14_31 = arith.constant 14 : index
    %229 = memref.load %arg2[%c14_31] : memref<54xf32, #tpu.memory_space<smem>>
    %230 = vector.broadcast %229 : f32 to vector<2x896xf32>
    %231 = arith.mulf %157, %230 : vector<2x896xf32>
    %232 = arith.addf %228, %231 : vector<2x896xf32>
    %c15_32 = arith.constant 15 : index
    %233 = memref.load %arg2[%c15_32] : memref<54xf32, #tpu.memory_space<smem>>
    %234 = vector.broadcast %233 : f32 to vector<2x896xf32>
    %235 = arith.mulf %158, %234 : vector<2x896xf32>
    %236 = arith.addf %232, %235 : vector<2x896xf32>
    %c16_33 = arith.constant 16 : index
    %237 = memref.load %arg2[%c16_33] : memref<54xf32, #tpu.memory_space<smem>>
    %238 = vector.broadcast %237 : f32 to vector<2x896xf32>
    %239 = arith.mulf %159, %238 : vector<2x896xf32>
    %240 = arith.addf %236, %239 : vector<2x896xf32>
    %c17_34 = arith.constant 17 : index
    %241 = memref.load %arg2[%c17_34] : memref<54xf32, #tpu.memory_space<smem>>
    %242 = vector.broadcast %241 : f32 to vector<2x896xf32>
    %243 = arith.mulf %160, %242 : vector<2x896xf32>
    %244 = arith.addf %240, %243 : vector<2x896xf32>
    %cst_35 = arith.constant 0.000000e+00 : f32
    %245 = vector.broadcast %cst_35 : f32 to vector<2x896xf32>
    %246 = arith.maximumf %244, %245 : vector<2x896xf32>
    %247 = math.absf %244 : vector<2x896xf32>
    %cst_36 = arith.constant 0.000000e+00 : f32
    %248 = vector.broadcast %cst_36 : f32 to vector<2x896xf32>
    %249 = arith.subf %248, %247 : vector<2x896xf32>
    %250 = math.exp %249 : vector<2x896xf32>
    %cst_37 = arith.constant 1.000000e+00 : f32
    %251 = vector.broadcast %cst_37 : f32 to vector<2x896xf32>
    %252 = arith.addf %251, %250 : vector<2x896xf32>
    %253 = math.log %252 : vector<2x896xf32>
    %254 = arith.addf %246, %253 : vector<2x896xf32>
    %cst_38 = arith.constant 0.000000e+00 : f32
    %255 = vector.broadcast %cst_38 : f32 to vector<2x896xf32>
    %c18_39 = arith.constant 18 : index
    %256 = memref.load %arg2[%c18_39] : memref<54xf32, #tpu.memory_space<smem>>
    %257 = vector.broadcast %256 : f32 to vector<2x896xf32>
    %258 = arith.mulf %152, %257 : vector<2x896xf32>
    %259 = arith.addf %255, %258 : vector<2x896xf32>
    %c19_40 = arith.constant 19 : index
    %260 = memref.load %arg2[%c19_40] : memref<54xf32, #tpu.memory_space<smem>>
    %261 = vector.broadcast %260 : f32 to vector<2x896xf32>
    %262 = arith.mulf %153, %261 : vector<2x896xf32>
    %263 = arith.addf %259, %262 : vector<2x896xf32>
    %c20_41 = arith.constant 20 : index
    %264 = memref.load %arg2[%c20_41] : memref<54xf32, #tpu.memory_space<smem>>
    %265 = vector.broadcast %264 : f32 to vector<2x896xf32>
    %266 = arith.mulf %154, %265 : vector<2x896xf32>
    %267 = arith.addf %263, %266 : vector<2x896xf32>
    %c21_42 = arith.constant 21 : index
    %268 = memref.load %arg2[%c21_42] : memref<54xf32, #tpu.memory_space<smem>>
    %269 = vector.broadcast %268 : f32 to vector<2x896xf32>
    %270 = arith.mulf %155, %269 : vector<2x896xf32>
    %271 = arith.addf %267, %270 : vector<2x896xf32>
    %c22_43 = arith.constant 22 : index
    %272 = memref.load %arg2[%c22_43] : memref<54xf32, #tpu.memory_space<smem>>
    %273 = vector.broadcast %272 : f32 to vector<2x896xf32>
    %274 = arith.mulf %156, %273 : vector<2x896xf32>
    %275 = arith.addf %271, %274 : vector<2x896xf32>
    %c23_44 = arith.constant 23 : index
    %276 = memref.load %arg2[%c23_44] : memref<54xf32, #tpu.memory_space<smem>>
    %277 = vector.broadcast %276 : f32 to vector<2x896xf32>
    %278 = arith.mulf %157, %277 : vector<2x896xf32>
    %279 = arith.addf %275, %278 : vector<2x896xf32>
    %c24_45 = arith.constant 24 : index
    %280 = memref.load %arg2[%c24_45] : memref<54xf32, #tpu.memory_space<smem>>
    %281 = vector.broadcast %280 : f32 to vector<2x896xf32>
    %282 = arith.mulf %158, %281 : vector<2x896xf32>
    %283 = arith.addf %279, %282 : vector<2x896xf32>
    %c25_46 = arith.constant 25 : index
    %284 = memref.load %arg2[%c25_46] : memref<54xf32, #tpu.memory_space<smem>>
    %285 = vector.broadcast %284 : f32 to vector<2x896xf32>
    %286 = arith.mulf %159, %285 : vector<2x896xf32>
    %287 = arith.addf %283, %286 : vector<2x896xf32>
    %c26_47 = arith.constant 26 : index
    %288 = memref.load %arg2[%c26_47] : memref<54xf32, #tpu.memory_space<smem>>
    %289 = vector.broadcast %288 : f32 to vector<2x896xf32>
    %290 = arith.mulf %160, %289 : vector<2x896xf32>
    %291 = arith.addf %287, %290 : vector<2x896xf32>
    %cst_48 = arith.constant 0.000000e+00 : f32
    %292 = vector.broadcast %cst_48 : f32 to vector<2x896xf32>
    %293 = arith.maximumf %291, %292 : vector<2x896xf32>
    %294 = math.absf %291 : vector<2x896xf32>
    %cst_49 = arith.constant 0.000000e+00 : f32
    %295 = vector.broadcast %cst_49 : f32 to vector<2x896xf32>
    %296 = arith.subf %295, %294 : vector<2x896xf32>
    %297 = math.exp %296 : vector<2x896xf32>
    %cst_50 = arith.constant 1.000000e+00 : f32
    %298 = vector.broadcast %cst_50 : f32 to vector<2x896xf32>
    %299 = arith.addf %298, %297 : vector<2x896xf32>
    %300 = math.log %299 : vector<2x896xf32>
    %301 = arith.addf %293, %300 : vector<2x896xf32>
    %cst_51 = arith.constant 0.000000e+00 : f32
    %302 = vector.broadcast %cst_51 : f32 to vector<2x896xf32>
    %c27 = arith.constant 27 : index
    %303 = memref.load %arg2[%c27] : memref<54xf32, #tpu.memory_space<smem>>
    %304 = vector.broadcast %303 : f32 to vector<2x896xf32>
    %305 = arith.mulf %152, %304 : vector<2x896xf32>
    %306 = arith.addf %302, %305 : vector<2x896xf32>
    %c28 = arith.constant 28 : index
    %307 = memref.load %arg2[%c28] : memref<54xf32, #tpu.memory_space<smem>>
    %308 = vector.broadcast %307 : f32 to vector<2x896xf32>
    %309 = arith.mulf %153, %308 : vector<2x896xf32>
    %310 = arith.addf %306, %309 : vector<2x896xf32>
    %c29 = arith.constant 29 : index
    %311 = memref.load %arg2[%c29] : memref<54xf32, #tpu.memory_space<smem>>
    %312 = vector.broadcast %311 : f32 to vector<2x896xf32>
    %313 = arith.mulf %154, %312 : vector<2x896xf32>
    %314 = arith.addf %310, %313 : vector<2x896xf32>
    %c30 = arith.constant 30 : index
    %315 = memref.load %arg2[%c30] : memref<54xf32, #tpu.memory_space<smem>>
    %316 = vector.broadcast %315 : f32 to vector<2x896xf32>
    %317 = arith.mulf %155, %316 : vector<2x896xf32>
    %318 = arith.addf %314, %317 : vector<2x896xf32>
    %c31 = arith.constant 31 : index
    %319 = memref.load %arg2[%c31] : memref<54xf32, #tpu.memory_space<smem>>
    %320 = vector.broadcast %319 : f32 to vector<2x896xf32>
    %321 = arith.mulf %156, %320 : vector<2x896xf32>
    %322 = arith.addf %318, %321 : vector<2x896xf32>
    %c32 = arith.constant 32 : index
    %323 = memref.load %arg2[%c32] : memref<54xf32, #tpu.memory_space<smem>>
    %324 = vector.broadcast %323 : f32 to vector<2x896xf32>
    %325 = arith.mulf %157, %324 : vector<2x896xf32>
    %326 = arith.addf %322, %325 : vector<2x896xf32>
    %c33 = arith.constant 33 : index
    %327 = memref.load %arg2[%c33] : memref<54xf32, #tpu.memory_space<smem>>
    %328 = vector.broadcast %327 : f32 to vector<2x896xf32>
    %329 = arith.mulf %158, %328 : vector<2x896xf32>
    %330 = arith.addf %326, %329 : vector<2x896xf32>
    %c34 = arith.constant 34 : index
    %331 = memref.load %arg2[%c34] : memref<54xf32, #tpu.memory_space<smem>>
    %332 = vector.broadcast %331 : f32 to vector<2x896xf32>
    %333 = arith.mulf %159, %332 : vector<2x896xf32>
    %334 = arith.addf %330, %333 : vector<2x896xf32>
    %c35 = arith.constant 35 : index
    %335 = memref.load %arg2[%c35] : memref<54xf32, #tpu.memory_space<smem>>
    %336 = vector.broadcast %335 : f32 to vector<2x896xf32>
    %337 = arith.mulf %160, %336 : vector<2x896xf32>
    %338 = arith.addf %334, %337 : vector<2x896xf32>
    %cst_52 = arith.constant 0.000000e+00 : f32
    %339 = vector.broadcast %cst_52 : f32 to vector<2x896xf32>
    %340 = arith.maximumf %338, %339 : vector<2x896xf32>
    %341 = math.absf %338 : vector<2x896xf32>
    %cst_53 = arith.constant 0.000000e+00 : f32
    %342 = vector.broadcast %cst_53 : f32 to vector<2x896xf32>
    %343 = arith.subf %342, %341 : vector<2x896xf32>
    %344 = math.exp %343 : vector<2x896xf32>
    %cst_54 = arith.constant 1.000000e+00 : f32
    %345 = vector.broadcast %cst_54 : f32 to vector<2x896xf32>
    %346 = arith.addf %345, %344 : vector<2x896xf32>
    %347 = math.log %346 : vector<2x896xf32>
    %348 = arith.addf %340, %347 : vector<2x896xf32>
    %cst_55 = arith.constant 0.000000e+00 : f32
    %349 = vector.broadcast %cst_55 : f32 to vector<2x896xf32>
    %c36 = arith.constant 36 : index
    %350 = memref.load %arg2[%c36] : memref<54xf32, #tpu.memory_space<smem>>
    %351 = vector.broadcast %350 : f32 to vector<2x896xf32>
    %352 = arith.mulf %152, %351 : vector<2x896xf32>
    %353 = arith.addf %349, %352 : vector<2x896xf32>
    %c37 = arith.constant 37 : index
    %354 = memref.load %arg2[%c37] : memref<54xf32, #tpu.memory_space<smem>>
    %355 = vector.broadcast %354 : f32 to vector<2x896xf32>
    %356 = arith.mulf %153, %355 : vector<2x896xf32>
    %357 = arith.addf %353, %356 : vector<2x896xf32>
    %c38 = arith.constant 38 : index
    %358 = memref.load %arg2[%c38] : memref<54xf32, #tpu.memory_space<smem>>
    %359 = vector.broadcast %358 : f32 to vector<2x896xf32>
    %360 = arith.mulf %154, %359 : vector<2x896xf32>
    %361 = arith.addf %357, %360 : vector<2x896xf32>
    %c39 = arith.constant 39 : index
    %362 = memref.load %arg2[%c39] : memref<54xf32, #tpu.memory_space<smem>>
    %363 = vector.broadcast %362 : f32 to vector<2x896xf32>
    %364 = arith.mulf %155, %363 : vector<2x896xf32>
    %365 = arith.addf %361, %364 : vector<2x896xf32>
    %c40 = arith.constant 40 : index
    %366 = memref.load %arg2[%c40] : memref<54xf32, #tpu.memory_space<smem>>
    %367 = vector.broadcast %366 : f32 to vector<2x896xf32>
    %368 = arith.mulf %156, %367 : vector<2x896xf32>
    %369 = arith.addf %365, %368 : vector<2x896xf32>
    %c41 = arith.constant 41 : index
    %370 = memref.load %arg2[%c41] : memref<54xf32, #tpu.memory_space<smem>>
    %371 = vector.broadcast %370 : f32 to vector<2x896xf32>
    %372 = arith.mulf %157, %371 : vector<2x896xf32>
    %373 = arith.addf %369, %372 : vector<2x896xf32>
    %c42 = arith.constant 42 : index
    %374 = memref.load %arg2[%c42] : memref<54xf32, #tpu.memory_space<smem>>
    %375 = vector.broadcast %374 : f32 to vector<2x896xf32>
    %376 = arith.mulf %158, %375 : vector<2x896xf32>
    %377 = arith.addf %373, %376 : vector<2x896xf32>
    %c43 = arith.constant 43 : index
    %378 = memref.load %arg2[%c43] : memref<54xf32, #tpu.memory_space<smem>>
    %379 = vector.broadcast %378 : f32 to vector<2x896xf32>
    %380 = arith.mulf %159, %379 : vector<2x896xf32>
    %381 = arith.addf %377, %380 : vector<2x896xf32>
    %c44 = arith.constant 44 : index
    %382 = memref.load %arg2[%c44] : memref<54xf32, #tpu.memory_space<smem>>
    %383 = vector.broadcast %382 : f32 to vector<2x896xf32>
    %384 = arith.mulf %160, %383 : vector<2x896xf32>
    %385 = arith.addf %381, %384 : vector<2x896xf32>
    %cst_56 = arith.constant 0.000000e+00 : f32
    %386 = vector.broadcast %cst_56 : f32 to vector<2x896xf32>
    %387 = arith.maximumf %385, %386 : vector<2x896xf32>
    %388 = math.absf %385 : vector<2x896xf32>
    %cst_57 = arith.constant 0.000000e+00 : f32
    %389 = vector.broadcast %cst_57 : f32 to vector<2x896xf32>
    %390 = arith.subf %389, %388 : vector<2x896xf32>
    %391 = math.exp %390 : vector<2x896xf32>
    %cst_58 = arith.constant 1.000000e+00 : f32
    %392 = vector.broadcast %cst_58 : f32 to vector<2x896xf32>
    %393 = arith.addf %392, %391 : vector<2x896xf32>
    %394 = math.log %393 : vector<2x896xf32>
    %395 = arith.addf %387, %394 : vector<2x896xf32>
    %cst_59 = arith.constant 0.000000e+00 : f32
    %396 = vector.broadcast %cst_59 : f32 to vector<2x896xf32>
    %c45 = arith.constant 45 : index
    %397 = memref.load %arg2[%c45] : memref<54xf32, #tpu.memory_space<smem>>
    %398 = vector.broadcast %397 : f32 to vector<2x896xf32>
    %399 = arith.mulf %152, %398 : vector<2x896xf32>
    %400 = arith.addf %396, %399 : vector<2x896xf32>
    %c46 = arith.constant 46 : index
    %401 = memref.load %arg2[%c46] : memref<54xf32, #tpu.memory_space<smem>>
    %402 = vector.broadcast %401 : f32 to vector<2x896xf32>
    %403 = arith.mulf %153, %402 : vector<2x896xf32>
    %404 = arith.addf %400, %403 : vector<2x896xf32>
    %c47 = arith.constant 47 : index
    %405 = memref.load %arg2[%c47] : memref<54xf32, #tpu.memory_space<smem>>
    %406 = vector.broadcast %405 : f32 to vector<2x896xf32>
    %407 = arith.mulf %154, %406 : vector<2x896xf32>
    %408 = arith.addf %404, %407 : vector<2x896xf32>
    %c48 = arith.constant 48 : index
    %409 = memref.load %arg2[%c48] : memref<54xf32, #tpu.memory_space<smem>>
    %410 = vector.broadcast %409 : f32 to vector<2x896xf32>
    %411 = arith.mulf %155, %410 : vector<2x896xf32>
    %412 = arith.addf %408, %411 : vector<2x896xf32>
    %c49 = arith.constant 49 : index
    %413 = memref.load %arg2[%c49] : memref<54xf32, #tpu.memory_space<smem>>
    %414 = vector.broadcast %413 : f32 to vector<2x896xf32>
    %415 = arith.mulf %156, %414 : vector<2x896xf32>
    %416 = arith.addf %412, %415 : vector<2x896xf32>
    %c50 = arith.constant 50 : index
    %417 = memref.load %arg2[%c50] : memref<54xf32, #tpu.memory_space<smem>>
    %418 = vector.broadcast %417 : f32 to vector<2x896xf32>
    %419 = arith.mulf %157, %418 : vector<2x896xf32>
    %420 = arith.addf %416, %419 : vector<2x896xf32>
    %c51 = arith.constant 51 : index
    %421 = memref.load %arg2[%c51] : memref<54xf32, #tpu.memory_space<smem>>
    %422 = vector.broadcast %421 : f32 to vector<2x896xf32>
    %423 = arith.mulf %158, %422 : vector<2x896xf32>
    %424 = arith.addf %420, %423 : vector<2x896xf32>
    %c52 = arith.constant 52 : index
    %425 = memref.load %arg2[%c52] : memref<54xf32, #tpu.memory_space<smem>>
    %426 = vector.broadcast %425 : f32 to vector<2x896xf32>
    %427 = arith.mulf %159, %426 : vector<2x896xf32>
    %428 = arith.addf %424, %427 : vector<2x896xf32>
    %c53 = arith.constant 53 : index
    %429 = memref.load %arg2[%c53] : memref<54xf32, #tpu.memory_space<smem>>
    %430 = vector.broadcast %429 : f32 to vector<2x896xf32>
    %431 = arith.mulf %160, %430 : vector<2x896xf32>
    %432 = arith.addf %428, %431 : vector<2x896xf32>
    %cst_60 = arith.constant 0.000000e+00 : f32
    %433 = vector.broadcast %cst_60 : f32 to vector<2x896xf32>
    %434 = arith.maximumf %432, %433 : vector<2x896xf32>
    %435 = math.absf %432 : vector<2x896xf32>
    %cst_61 = arith.constant 0.000000e+00 : f32
    %436 = vector.broadcast %cst_61 : f32 to vector<2x896xf32>
    %437 = arith.subf %436, %435 : vector<2x896xf32>
    %438 = math.exp %437 : vector<2x896xf32>
    %cst_62 = arith.constant 1.000000e+00 : f32
    %439 = vector.broadcast %cst_62 : f32 to vector<2x896xf32>
    %440 = arith.addf %439, %438 : vector<2x896xf32>
    %441 = math.log %440 : vector<2x896xf32>
    %442 = arith.addf %434, %441 : vector<2x896xf32>
    %443 = tpu.concatenate %207, %254, %301, %348, %395, %442 in 1 : vector<2x896xf32>, vector<2x896xf32>, vector<2x896xf32>, vector<2x896xf32>, vector<2x896xf32>, vector<2x896xf32> -> vector<2x5376xf32>
    %c0_63 = arith.constant 0 : index
    %c0_64 = arith.constant 0 : index
    %444 = vector.load %arg3[%c0_63, %c0_64] : memref<10x5376xf32, #tpu.memory_space<vmem>>, vector<10x5376xf32>
    %cst_65 = arith.constant dense<0.000000e+00> : vector<2x10xf32>
    %445 = tpu.matmul %443, %444, %cst_65 {dimension_numbers = #tpu.dot_dimension_numbers<[1], [1], [0], [0], [0, 0, 1, 0], [], []>} : vector<2x5376xf32>, vector<10x5376xf32>, vector<2x10xf32> -> vector<2x10xf32>
    %c0_66 = arith.constant 0 : index
    %c0_67 = arith.constant 0 : index
    %446 = vector.load %arg4[%c0_66, %c0_67] : memref<1x10xf32, #tpu.memory_space<vmem>>, vector<1x10xf32>
    %447 = vector.broadcast %446 : vector<1x10xf32> to vector<2x10xf32>
    %448 = arith.addf %445, %447 : vector<2x10xf32>
    %449 = math.absf %448 : vector<2x10xf32>
    %cst_68 = arith.constant 0.000000e+00 : f32
    %450 = vector.broadcast %cst_68 : f32 to vector<2x10xf32>
    %451 = arith.subf %450, %449 : vector<2x10xf32>
    %452 = math.exp %451 : vector<2x10xf32>
    %cst_69 = arith.constant 0.000000e+00 : f32
    %453 = vector.broadcast %cst_69 : f32 to vector<2x10xf32>
    %454 = arith.cmpf oge, %448, %453 : vector<2x10xf32>
    %cst_70 = arith.constant 1.000000e+00 : f32
    %455 = vector.broadcast %cst_70 : f32 to vector<2x10xf32>
    %456 = arith.addf %455, %452 : vector<2x10xf32>
    %cst_71 = arith.constant 1.000000e+00 : f32
    %457 = vector.broadcast %cst_71 : f32 to vector<2x10xf32>
    %458 = arith.divf %457, %456 : vector<2x10xf32>
    %cst_72 = arith.constant 1.000000e+00 : f32
    %459 = vector.broadcast %cst_72 : f32 to vector<2x10xf32>
    %460 = arith.addf %459, %452 : vector<2x10xf32>
    %461 = arith.divf %452, %460 : vector<2x10xf32>
    %462 = arith.select %454, %458, %461 : vector<2x10xi1>, vector<2x10xf32>
    %c0_73 = arith.constant 0 : index
    %c0_74 = arith.constant 0 : index
    %463 = vector.load %arg5[%c0_73, %c0_74] : memref<2x10xf32, #tpu.memory_space<vmem>>, vector<2x10xf32>
    tpu.vector_store %arg5[%c0_73, %c0_74], %462 {strides = array<i32>} : memref<2x10xf32, #tpu.memory_space<vmem>>, vector<2x10xf32>,
    return
  }
}

</mosaic_0001>

<bundles_post_ra>
// kernel: _run.1
= control target key start
LH: loop header
LB: loop body
LE: loop exit
PB: predicated region body
PF: predicated region fallthrough
CT: control target
= control target key end

     0   :  { %10 = vsyncpa [#allocation5], 0  ;;  %s4731_s0 = inlined_call_operand.vmem [shape: f32[3,2,1088], index: 0, kind: input, shape index: {}]   ;;  %s4732_s1 = inlined_call_operand.vmem [shape: f32[27], index: 1, kind: input, shape index: {}]   ;;  %s4733_s2 = inlined_call_operand.vmem [shape: f32[54], index: 2, kind: input, shape index: {}]   ;;  %s4734_s3 = inlined_call_operand.hbm [shape: f32[10,5376], index: 3, kind: input, shape index: {}]   ;;  %s4735_s4 = inlined_call_operand.vmem [shape: f32[1,10], index: 4, kind: input, shape index: {}]   ;;  %s4736_s5 = inlined_call_operand.hbm [shape: f32[2,10], index: 5, kind: output, shape index: {}]  }
   0x1   :  { %11 = vsyncpa [#allocation7], 0 }
   0x2   :  { %12 = vsyncpa [#allocation3], 0 }
   0x3   :  { %13 = vsyncpa [#allocation4], 0  ;;  %s22_s20 = sshll.u32 %s4732_s1, 4  ;;  %s32_s23 = sshll.u32 %s4733_s2, 4  ;;  %s23_s20 = int_to_ptr.vmem [resolvable:$true] %s22_s20  ;;  %s33_s23 = int_to_ptr.vmem [resolvable:$true] %s32_s23 }
   0x4   :  { %s3721_s24 = scalar_lea.vmem %s23_s20, 16  ;;  %p3726_p1 = scmp.lt.s32.totalorder %s23_s20, %s23_s20 }
   0x5   :  { %p3722_p0 = scmp.ne.s32.totalorder %s23_s20, %s3721_s24  ;;  %p3727_p2 = scmp.lt.s32.totalorder %s3721_s24, %s3721_s24 }
   0x7   :  { %p3728_p3 = por %p3727_p2, %p3726_p1 }
   0x9   :  { %p3729_p4 = pnand %p3728_p3, %p3722_p0 }
   0xb   :  { %3732 = shalt.err (!%p3729_p4)
}
   0xc   :  { %s3793_s25 = smov [#allocation2]   ;;  %s3733_s26 = scalar_lea.vmem %s33_s23, 16 }
   0xd   :  { %25 = dma.vmem_to_smem %s23_s20, 16, %s3793_s25, [#allocation5]  }
   0xe   :  { %p3734_p5 = scmp.ne.s32.totalorder %s33_s23, %s3733_s26  ;;  %p3738_p6 = scmp.lt.s32.totalorder %s33_s23, %s33_s23 }
   0xf   :  { %p3739_p7 = scmp.lt.s32.totalorder %s3733_s26, %s3733_s26 }
  0x11   :  { %p3740_p8 = por %p3739_p7, %p3738_p6 }
  0x13   :  { %p3741_p9 = pnand %p3740_p8, %p3734_p5 }
  0x15   :  { %3744 = shalt.err (!%p3741_p9)
}
  0x16   :  { %s3794_s1 = smov [#allocation6]   ;;  %s3795_s2 = smov [#allocation8]  }
  0x17   :  { %35 = dma.vmem_to_smem %s33_s23, 16, %s3794_s1, [#allocation7]  }
  0x18   :  { %s41_s27 = sshll.u32 %s3795_s2, 4  ;;  %s42_s27 = int_to_ptr.vmem [resolvable:$true] %s41_s27 }
  0x19   :  { %s3753_s28 = scalar_lea.vmem %s42_s27, 10752  ;;  %p3758_p11 = scmp.lt.s32.totalorder %s42_s27, %s42_s27 }
  0x1a   :  { %p3754_p10 = scmp.ne.s32.totalorder %s42_s27, %s3753_s28  ;;  %p3759_p12 = scmp.lt.s32.totalorder %s3753_s28, %s3753_s28 }
  0x1c   :  { %p3760_p13 = por %p3759_p12, %p3758_p11 }
  0x1e   :  { %p3761_p0 = pnand %p3760_p13, %p3754_p10 }
  0x20   :  { %3764 = shalt.err (!%p3761_p0)
}
  0x21   :  { %s3796_s29 = smov 5376   ;;  %s3797_s30 = smov 336  }
  0x22   :  { %47 = dma.hbm_to_vmem [thread:$0]  %s4734_s3, 10752, %s42_s27, [#allocation3], %s3796_s29, %s3796_s29, %s3797_s30  }
  0x23   :  { %3785 = dma.done.wait [#allocation5], 16  }
  0x24   :  { %3786 = vsyncadd [#allocation5], 4294967280 }
  0x25   :  { %3787 = dma.done.wait [#allocation7], 16  }
  0x26   :  { %3788 = vsyncadd [#allocation7], 4294967280 }
  0x27   :  { %3789 = dma.done.wait [#allocation3], 10752  }
  0x28   :  { %3790 = vsyncadd [#allocation3], 4294956544 }
  0x29   :  { %59 = sfence }
  0x2a   :  { %s3561_s8 = sld [smem:[#allocation2 + $0x2]]  ;;  %v3850_v0 = vld [vmem:[%s4731_s0] sm:$0xff]  ;;  %v3855_v1 = vld [vmem:[%s4731_s0 + $0x8] sm:$0xff]  ;;  %s3798_s15 = smov 126   ;;  %v62_v15 = vld [vmem:[%s4731_s0 + $0x10] sm:$0x3] }
  0x2b   :  { %s3560_s9 = sld [smem:[#allocation2 + $0x1]]  ;;  %s3799_s16 = smov 127   ;;  %v3897_v31 = vld [vmem:[%s4731_s0 + $0x12] sm:$0xff]  ;;  %v3905_v36 = vld [vmem:[%s4731_s0 + $0x1a] sm:$0xff]  ;;  %v3570_v45 = vld [vmem:[%s4731_s0 + $0x22] sm:$0x3] }
  0x2c   :  { %s3562_s10 = sld [smem:[#allocation2 + $0x3]]  ;;  %s3800_s18 = smov 96   ;;  %vm81_vm0 = vcmask 1045504   ;;  %vm83_vm1 = vcmask 1039360   ;;  %vm103_vm2 = vcmask 1031168   ;;  %vm123_vm3 = vcmask 785408  }
  0x2d   :  { %s3563_s3 = sld [smem:[#allocation2 + $0x4]]  ;;  %s3801_s22 = smov 95   ;;  %vm148_vm4 = vcmask 777216   ;;  %vm174_vm5 = vcmask 769024   ;;  %vm200_vm6 = vcmask 523264   ;;  %vm226_vm7 = vcmask 515072  }
  0x2e   :  { %s3564_s17 = sld [smem:[#allocation2 + $0x5]]  ;;  %s3802_s24 = smov 94   ;;  %vm252_vm8 = vcmask 506880   ;;  %vm3541_vm9 = vcmask 74752  }
  0x2f   :  { %s3565_s19 = sld [smem:[#allocation2 + $0x6]]  ;;  %s3803_s26 = smov 64  }
  0x30   :  { %v91_v2 = vstv %s3561_s8  ;;  %s3566_s23 = sld [smem:[#allocation2 + $0x7]]  ;;  %s3804_s2 = smov 63  }
  0x31   :  { %v92_v3 = vmul.f32 %v91_v2, %v3850_v0  ;;  %v70_v4 = vstv %s3560_s9  ;;  %v93_v6 = vmul.f32 %v91_v2, %v3855_v1  ;;  %s3567_s25 = sld [smem:[#allocation2 + $0x8]]  ;;  %s3805_s6 = smov 62   ;;  %v3948_v2 = vld [vmem:[%s4731_s0 + $0x2c] sm:$0xff] }
  0x32   :  { %v71_v5 = vmul.f32 %v70_v4, %v3850_v0  ;;  %v72_v7 = vmul.f32 %v70_v4, %v3855_v1  ;;  %v111_v8 = vstv %s3562_s10  ;;  %s3572_s1 = sld [smem:[#allocation2 + $0xa]]  ;;  %v3953_v4 = vld [vmem:[%s4731_s0 + $0x24] sm:$0xff] }
  0x33   :  { %96 = vrot.lane.b32.xlu1 %v92_v3, %s3798_s15  ;;  %v113_v9 = vmul.f32 %v111_v8, %v3855_v1  ;;  %v112_v10 = vmul.f32 %v111_v8, %v3850_v0  ;;  %v131_v11 = vstv %s3563_s3  ;;  %s3573_s27 = sld [smem:[#allocation2 + $0xb]] }
  0x34   :  { %75 = vrot.lane.b32.xlu0 %v71_v5, %s3799_s16  ;;  %v133_v12 = vmul.f32 %v131_v11, %v3855_v1  ;;  %v132_v13 = vmul.f32 %v131_v11, %v3850_v0  ;;  %v157_v14 = vstv %s3564_s17  ;;  %v134_v17 = vmul.f32 %v131_v11, %v62_v15  ;;  %s3574_s30 = sld [smem:[#allocation2 + $0xc]] }
  0x35   :  { %v158_v16 = vmul.f32 %v157_v14, %v3850_v0  ;;  %v160_v18 = vmul.f32 %v157_v14, %v62_v15  ;;  %v159_v19 = vmul.f32 %v157_v14, %v3855_v1  ;;  %v183_v20 = vstv %s3565_s19  ;;  %s3575_s7 = sld [smem:[#allocation2 + $0xd]] }
  0x36   :  { %v185_v21 = vmul.f32 %v183_v20, %v3855_v1  ;;  %v184_v22 = vmul.f32 %v183_v20, %v3850_v0  ;;  %v209_v23 = vstv %s3566_s23  ;;  %v186_v25 = vmul.f32 %v183_v20, %v62_v15  ;;  %s3576_s10 = sld [smem:[#allocation2 + $0xe]] }
  0x37   :  { %98 = vrot.lane.b32.xlu1 %v93_v6, %s3798_s15  ;;  %v210_v24 = vmul.f32 %v209_v23, %v3850_v0  ;;  %v212_v26 = vmul.f32 %v209_v23, %v62_v15  ;;  %v211_v27 = vmul.f32 %v209_v23, %v3855_v1  ;;  %v235_v28 = vstv %s3567_s25  ;;  %s3577_s13 = sld [smem:[#allocation2 + $0xf]] }
  0x38   :  { %77 = vrot.lane.b32.xlu0 %v72_v7, %s3799_s16  ;;  %v237_v29 = vmul.f32 %v235_v28, %v3855_v1  ;;  %v236_v30 = vmul.f32 %v235_v28, %v3850_v0  ;;  %v271_v32 = vstv %s3572_s1  ;;  %v238_v34 = vmul.f32 %v235_v28, %v62_v15  ;;  %s3578_s14 = sld [smem:[#allocation2 + $0x10]] }
  0x39   :  { %v272_v33 = vmul.f32 %v3897_v31, %v271_v32  ;;  %v290_v35 = vstv %s3573_s27  ;;  %v273_v38 = vmul.f32 %v3905_v36, %v271_v32  ;;  %s3579_s3 = sld [smem:[#allocation2 + $0x11]] }
  0x3a   :  { %v291_v37 = vmul.f32 %v3897_v31, %v290_v35  ;;  %v309_v39 = vstv %s3574_s30  ;;  %v292_v41 = vmul.f32 %v3905_v36, %v290_v35  ;;  %s3584_s17 = sld [smem:[#allocation2 + $0x13]] }
  0x3b   :  { %118 = vrot.lane.b32.xlu1 %v113_v9, %s3800_s18  ;;  %v310_v40 = vmul.f32 %v3897_v31, %v309_v39  ;;  %v328_v42 = vstv %s3575_s7  ;;  %v311_v44 = vmul.f32 %v3905_v36, %v309_v39  ;;  %s3585_s19 = sld [smem:[#allocation2 + $0x14]] }
  0x3c   :  { %116 = vrot.lane.b32.xlu0 %v112_v10, %s3800_s18  ;;  %v329_v43 = vmul.f32 %v3897_v31, %v328_v42  ;;  %v331_v46 = vmul.f32 %v3570_v45, %v328_v42  ;;  %v330_v47 = vmul.f32 %v3905_v36, %v328_v42  ;;  %v353_v48 = vstv %s3576_s10  ;;  %s3586_s23 = sld [smem:[#allocation2 + $0x15]] }
  0x3d   :  { %v355_v49 = vmul.f32 %v3905_v36, %v353_v48  ;;  %v354_v50 = vmul.f32 %v3897_v31, %v353_v48  ;;  %v378_v51 = vstv %s3577_s13  ;;  %v356_v53 = vmul.f32 %v3570_v45, %v353_v48  ;;  %s3587_s27 = sld [smem:[#allocation2 + $0x16]] }
  0x3e   :  { %v379_v52 = vmul.f32 %v3897_v31, %v378_v51  ;;  %v381_v54 = vmul.f32 %v3570_v45, %v378_v51  ;;  %v380_v55 = vmul.f32 %v3905_v36, %v378_v51  ;;  %v403_v56 = vstv %s3578_s14  ;;  %s3588_s28 = sld [smem:[#allocation2 + $0x17]] }
  0x3f   :  { %140 = vrot.lane.b32.xlu1 %v133_v12, %s3801_s22  ;;  %v405_v57 = vmul.f32 %v3905_v36, %v403_v56  ;;  %v404_v58 = vmul.f32 %v3897_v31, %v403_v56  ;;  %v428_v59 = vstv %s3579_s3  ;;  %v406_v61 = vmul.f32 %v3570_v45, %v403_v56  ;;  %s3589_s29 = sld [smem:[#allocation2 + $0x18]] }
  0x40   :  { %138 = vrot.lane.b32.xlu0 %v132_v13, %s3801_s22  ;;  %v429_v60 = vmul.f32 %v3897_v31, %v428_v59  ;;  %v431_v62 = vmul.f32 %v3570_v45, %v428_v59  ;;  %v430_v63 = vmul.f32 %v3905_v36, %v428_v59  ;;  %v463_v3 = vstv %s3584_s17  ;;  %s3590_s8 = sld [smem:[#allocation2 + $0x19]] }
  0x41   :  { %v465_v5 = vmul.f32 %v3948_v2, %v463_v3  ;;  %v464_v6 = vmul.f32 %v3953_v4, %v463_v3  ;;  %v482_v7 = vstv %s3585_s19  ;;  %s63_s9 = sld [smem:[#allocation2]] }
  0x42   :  { %v484_v8 = vmul.f32 %v3948_v2, %v482_v7  ;;  %v483_v9 = vmul.f32 %v3953_v4, %v482_v7  ;;  %v501_v10 = vstv %s3586_s23  ;;  %s4011_s10 = sld [smem:[#allocation2 + $0x9]] }
  0x43   :  { %164 = vrot.lane.b32.xlu1 %v158_v16, %s3802_s24  ;;  %v503_v11 = vmul.f32 %v3948_v2, %v501_v10  ;;  %v502_v12 = vmul.f32 %v3953_v4, %v501_v10  ;;  %v520_v13 = vstv %s3587_s27  ;;  %s4045_s11 = sld [smem:[#allocation2 + $0x12]] }
  0x44   :  { %142 = vrot.lane.b32.xlu0 %v134_v17, %s3801_s22  ;;  %v522_v14 = vmul.f32 %v3948_v2, %v520_v13  ;;  %v521_v15 = vmul.f32 %v3953_v4, %v520_v13  ;;  %v545_v16 = vstv %s3588_s28  ;;  %v3582_v17 = vld [vmem:[%s4731_s0 + $0x34] sm:$0x3]  ;;  %s3591_s0 = sld [smem:[#allocation2 + $0x1a]] }
  0x45   :  { %v548_v20 = vmul.f32 %v3582_v17, %v545_v16  ;;  %s3592_s12 = sld [smem:[#allocation6 + $0x1]] }
  0x46   :  { %s3593_s13 = sld [smem:[#allocation6 + $0x2]] }
  0x47   :  { %168 = vrot.lane.b32.xlu1 %v160_v18, %s3802_s24  ;;  %v546_v18 = vmul.f32 %v3953_v4, %v545_v16  ;;  %s3594_s14 = sld [smem:[#allocation6 + $0x3]] }
  0x48   :  { %166 = vrot.lane.b32.xlu0 %v159_v19, %s3802_s24  ;;  %v523_v19 = vmul.f32 %v3582_v17, %v520_v13  ;;  %s3595_s3 = sld [smem:[#allocation6 + $0x4]] }
  0x49   :  { %s3596_s17 = sld [smem:[#allocation6 + $0x5]] }
  0x4a   :  { %s3597_s19 = sld [smem:[#allocation6 + $0x6]] }
  0x4b   :  { %192 = vrot.lane.b32.xlu1 %v185_v21, %s3803_s26  ;;  %v547_v21 = vmul.f32 %v3948_v2, %v545_v16  ;;  %s3598_s20 = sld [smem:[#allocation6 + $0x7]] }
  0x4c   :  { %190 = vrot.lane.b32.xlu0 %v184_v22, %s3803_s26  ;;  %v570_v22 = vstv %s3589_s29  ;;  %s3599_s21 = sld [smem:[#allocation6 + $0x8]] }
  0x4d   :  { %v572_v23 = vmul.f32 %v3948_v2, %v570_v22  ;;  %s3601_s23 = sld [smem:[#allocation6 + $0xa]] }
  0x4e   :  { %s3602_s25 = sld [smem:[#allocation6 + $0xb]] }
  0x4f   :  { %216 = vrot.lane.b32.xlu1 %v210_v24, %s3804_s2  ;;  %v571_v24 = vmul.f32 %v3953_v4, %v570_v22  ;;  %s3603_s1 = sld [smem:[#allocation6 + $0xc]] }
  0x50   :  { %194 = vrot.lane.b32.xlu0 %v186_v25, %s3803_s26  ;;  %v595_v25 = vstv %s3590_s8  ;;  %s3604_s27 = sld [smem:[#allocation6 + $0xd]] }
  0x51   :  { %v598_v28 = vmul.f32 %v3582_v17, %v595_v25  ;;  %s3605_s28 = sld [smem:[#allocation6 + $0xe]] }
  0x52   :  { %s3606_s29 = sld [smem:[#allocation6 + $0xf]] }
  0x53   :  { %220 = vrot.lane.b32.xlu1 %v212_v26, %s3804_s2  ;;  %v596_v26 = vmul.f32 %v3953_v4, %v595_v25  ;;  %s3607_s30 = sld [smem:[#allocation6 + $0x10]] }
  0x54   :  { %218 = vrot.lane.b32.xlu0 %v211_v27, %s3804_s2  ;;  %v573_v27 = vmul.f32 %v3582_v17, %v570_v22  ;;  %s3608_s7 = sld [smem:[#allocation6 + $0x11]] }
  0x55   :  { %s3610_s8 = sld [smem:[#allocation6 + $0x13]] }
  0x57   :  { %244 = vrot.lane.b32.xlu1 %v237_v29, %s3805_s6  ;;  %v597_v29 = vmul.f32 %v3948_v2, %v595_v25 }
  0x58   :  { %242 = vrot.lane.b32.xlu0 %v236_v30, %s3805_s6  ;;  %v620_v30 = vstv %s3591_s0  ;;  %s3611_s0 = sld [smem:[#allocation6 + $0x14]] }
  0x59   :  { %v621_v35 = vmul.f32 %v3953_v4, %v620_v30  ;;  %v623_v39 = vmul.f32 %v3582_v17, %v620_v30 }
  0x5b   :  { %276 = vrot.lane.b32.xlu1 %v272_v33, %s3799_s16 }
  0x5c   :  { %246 = vrot.lane.b32.xlu0 %v238_v34, %s3805_s6  ;;  %v622_v34 = vmul.f32 %v3948_v2, %v620_v30 }
  0x5f   :  { %295 = vrot.lane.b32.xlu1 %v291_v37, %s3798_s15 }
  0x60   :  { %278 = vrot.lane.b32.xlu0 %v273_v38, %s3799_s16 }
  0x63   :  { %314 = vrot.lane.b32.xlu1 %v310_v40, %s3800_s18 }
  0x64   :  { %297 = vrot.lane.b32.xlu0 %v292_v41, %s3798_s15 }
  0x67   :  { %335 = vrot.lane.b32.xlu1 %v329_v43, %s3801_s22 }
  0x68   :  { %316 = vrot.lane.b32.xlu0 %v311_v44, %s3800_s18 }
  0x6b   :  { %339 = vrot.lane.b32.xlu1 %v331_v46, %s3801_s22  ;;  %v64_v46 = vstv %s63_s9  ;;  %s3612_s9 = sld [smem:[#allocation6 + $0x15]] }
  0x6c   :  { %337 = vrot.lane.b32.xlu0 %v330_v47, %s3801_s22  ;;  %v66_v59 = vmul.f32 %v64_v46, %v3855_v1 }
  0x6f   :  { %362 = vrot.lane.b32.xlu1 %v355_v49, %s3802_s24 }
  0x70   :  { %360 = vrot.lane.b32.xlu0 %v354_v50, %s3802_s24 }
  0x73   :  { %385 = vrot.lane.b32.xlu1 %v379_v52, %s3803_s26  ;;  %v65_v52 = vmul.f32 %v64_v46, %v3850_v0 }
  0x74   :  { %364 = vrot.lane.b32.xlu0 %v356_v53, %s3802_s24 }
  0x77   :  { %389 = vrot.lane.b32.xlu1 %v381_v54, %s3803_s26 }
  0x78   :  { %387 = vrot.lane.b32.xlu0 %v380_v55, %s3803_s26 }
  0x7b   :  { %412 = vrot.lane.b32.xlu1 %v405_v57, %s3804_s2 }
  0x7c   :  { %410 = vrot.lane.b32.xlu0 %v404_v58, %s3804_s2 }
  0x7f   :  { %435 = vrot.lane.b32.xlu1 %v429_v60, %s3805_s6 }
  0x80   :  { %414 = vrot.lane.b32.xlu0 %v406_v61, %s3804_s2 }
  0x83   :  { %439 = vrot.lane.b32.xlu1 %v431_v62, %s3805_s6 }
  0x84   :  { %437 = vrot.lane.b32.xlu0 %v430_v63, %s3805_s6 }
  0x87   :  { %470 = vrot.lane.b32.xlu1 %v465_v5, %s3799_s16 }
  0x88   :  { %468 = vrot.lane.b32.xlu0 %v464_v6, %s3799_s16 }
  0x8b   :  { %489 = vrot.lane.b32.xlu1 %v484_v8, %s3798_s15 }
  0x8c   :  { %487 = vrot.lane.b32.xlu0 %v483_v9, %s3798_s15 }
  0x8f   :  { %508 = vrot.lane.b32.xlu1 %v503_v11, %s3800_s18 }
  0x90   :  { %506 = vrot.lane.b32.xlu0 %v502_v12, %s3800_s18 }
  0x93   :  { %529 = vrot.lane.b32.xlu1 %v522_v14, %s3801_s22 }
  0x94   :  { %527 = vrot.lane.b32.xlu0 %v521_v15, %s3801_s22 }
  0x97   :  { %552 = vrot.lane.b32.xlu1 %v546_v18, %s3802_s24 }
  0x98   :  { %531 = vrot.lane.b32.xlu0 %v523_v19, %s3801_s22 }
  0x9b   :  { %556 = vrot.lane.b32.xlu1 %v548_v20, %s3802_s24 }
  0x9c   :  { %554 = vrot.lane.b32.xlu0 %v547_v21, %s3802_s24 }
  0x9f   :  { %579 = vrot.lane.b32.xlu1 %v572_v23, %s3803_s26 }
  0xa0   :  { %577 = vrot.lane.b32.xlu0 %v571_v24, %s3803_s26 }
  0xa3   :  { %602 = vrot.lane.b32.xlu1 %v596_v26, %s3804_s2 }
  0xa4   :  { %581 = vrot.lane.b32.xlu0 %v573_v27, %s3803_s26 }
  0xa5   :  { %v97_v32 = vpop.permute.xlu1 %96 }
  0xa6   :  { %v76_v33 = vpop.permute.xlu0 %75  ;;  %v100_v50 = vrot.slane %v97_v32, 2 }
  0xa7   :  { %606 = vrot.lane.b32.xlu1 %v598_v28, %s3804_s2  ;;  %v79_v45 = vrot.slane %v76_v33, 2 }
  0xa8   :  { %604 = vrot.lane.b32.xlu0 %v597_v29, %s3804_s2 }
  0xa9   :  { %v99_v37 = vpop.permute.xlu1 %98 }
  0xaa   :  { %v78_v38 = vpop.permute.xlu0 %77  ;;  %v101_v51 = vrot.slane %v99_v37, 2 }
  0xab   :  { %629 = vrot.lane.b32.xlu1 %v622_v34, %s3805_s6  ;;  %v80_v43 = vrot.slane %v78_v38, 2 }
  0xac   :  { %627 = vrot.lane.b32.xlu0 %v621_v35, %s3805_s6  ;;  %v102_v58 = vsel %vm81_vm0, %v100_v50, %v101_v51  ;;  %v105_v9 = vsel %vm103_vm2, %v99_v37, %v101_v51 }
  0xad   :  { %v119_v40 = vpop.permute.xlu1 %118  ;;  %v82_v48 = vsel %vm81_vm0, %v79_v45, %v80_v43  ;;  %v85_v61 = vsel %vm83_vm1, %v78_v38, %v80_v43  ;;  %v104_v6 = vsel %vm103_vm2, %v97_v32, %v102_v58 }
  0xae   :  { %v117_v41 = vpop.permute.xlu0 %116  ;;  %v121_v53 = vrot.slane %v119_v40, 2  ;;  %v84_v54 = vsel %vm83_vm1, %v76_v33, %v82_v48  ;;  %v89_v10 = vadd.f32 %v85_v61, %v66_v59  ;;  %v265_v48 = vstv %s4011_s10  ;;  %s3613_s10 = sld [smem:[#allocation6 + $0x16]] }
  0xaf   :  { %v120_v55 = vrot.slane %v117_v41, 2  ;;  %v88_v60 = vadd.f32 %v84_v54, %v65_v52 }
  0xb0   :  { %631 = vrot.lane.b32.xlu0 %v623_v39, %s3805_s6  ;;  %v109_v20 = vadd.f32 %v105_v9, %v89_v10  ;;  %v125_v28 = vsel %vm123_vm3, %v119_v40, %v121_v53 }
  0xb1   :  { %v3997_v42 = vpop.permute.xlu1 %140  ;;  %v122_v62 = vsel %vm81_vm0, %v120_v55, %v121_v53  ;;  %v108_v1 = vadd.f32 %v104_v6, %v88_v60  ;;  %v266_v55 = vmul.f32 %v3897_v31, %v265_v48 }
  0xb2   :  { %v139_v44 = vpop.permute.xlu0 %138  ;;  %v145_v63 = vrot.slane %v3997_v42, 2  ;;  %v124_v11 = vsel %vm123_vm3, %v117_v41, %v122_v62  ;;  %v129_v39 = vadd.f32 %v125_v28, %v109_v20 }
  0xb3   :  { %v144_v0 = vrot.slane %v139_v44, 2  ;;  %v128_v21 = vadd.f32 %v124_v11, %v108_v1 }
  0xb5   :  { %v165_v47 = vpop.permute.xlu1 %164  ;;  %v147_v12 = vsel %vm81_vm0, %v144_v0, %v145_v63 }
  0xb6   :  { %v143_v49 = vpop.permute.xlu0 %142  ;;  %v170_v7 = vrot.slane %v165_v47, 2  ;;  %v149_v22 = vsel %vm148_vm4, %v139_v44, %v147_v12 }
  0xb7   :  { %v146_v13 = vrot.slane %v143_v49, 2  ;;  %v154_v32 = vadd.f32 %v149_v22, %v128_v21 }
  0xb9   :  { %v169_v56 = vpop.permute.xlu1 %168  ;;  %v150_v23 = vsel %vm81_vm0, %v145_v63, %v146_v13 }
  0xba   :  { %v167_v57 = vpop.permute.xlu0 %166  ;;  %v172_v18 = vrot.slane %v169_v56, 2  ;;  %v151_v37 = vsel %vm148_vm4, %v3997_v42, %v150_v23 }
  0xbb   :  { %v171_v8 = vrot.slane %v167_v57, 2  ;;  %v155_v50 = vadd.f32 %v151_v37, %v129_v39 }
  0xbd   :  { %v193_v3 = vpop.permute.xlu1 %192  ;;  %v173_v19 = vsel %vm81_vm0, %v170_v7, %v171_v8  ;;  %v176_v33 = vsel %vm81_vm0, %v171_v8, %v172_v18  ;;  %v267_v8 = vmul.f32 %v3905_v36, %v265_v48 }
  0xbe   :  { %v191_v5 = vpop.permute.xlu0 %190  ;;  %v197_v14 = vrot.slane %v193_v3, 2  ;;  %v175_v29 = vsel %vm174_vm5, %v165_v47, %v173_v19  ;;  %v177_v45 = vsel %vm174_vm5, %v167_v57, %v176_v33 }
  0xbf   :  { %v196_v15 = vrot.slane %v191_v5, 2  ;;  %v180_v41 = vadd.f32 %v175_v29, %v154_v32  ;;  %v181_v54 = vadd.f32 %v177_v45, %v155_v50 }
  0xc1   :  { %v217_v16 = vpop.permute.xlu1 %216  ;;  %v199_v24 = vsel %vm81_vm0, %v196_v15, %v197_v14 }
  0xc2   :  { %v195_v17 = vpop.permute.xlu0 %194  ;;  %v222_v25 = vrot.slane %v217_v16, 2  ;;  %v201_v38 = vsel %vm200_vm6, %v191_v5, %v199_v24 }
  0xc3   :  { %v198_v26 = vrot.slane %v195_v17, 2  ;;  %v206_v51 = vadd.f32 %v201_v38, %v180_v41 }
  0xc5   :  { %v221_v27 = vpop.permute.xlu1 %220  ;;  %v202_v40 = vsel %vm81_vm0, %v197_v14, %v198_v26 }
  0xc6   :  { %v219_v30 = vpop.permute.xlu0 %218  ;;  %v224_v34 = vrot.slane %v221_v27, 2  ;;  %v203_v53 = vsel %vm200_vm6, %v193_v3, %v202_v40 }
  0xc7   :  { %v223_v35 = vrot.slane %v219_v30, 2  ;;  %v207_v62 = vadd.f32 %v203_v53, %v181_v54 }
  0xc9   :  { %v225_v43 = vsel %vm81_vm0, %v222_v25, %v223_v35  ;;  %v245_v44 = vpop.permute.xlu1 %244  ;;  %v228_v42 = vsel %vm81_vm0, %v223_v35, %v224_v34 }
  0xca   :  { %v249_v46 = vrot.slane %v245_v44, 2  ;;  %v227_v47 = vsel %vm226_vm7, %v217_v16, %v225_v43  ;;  %v243_v49 = vpop.permute.xlu0 %242  ;;  %v229_v57 = vsel %vm226_vm7, %v219_v30, %v228_v42 }
  0xcb   :  { %v248_v52 = vrot.slane %v243_v49, 2  ;;  %v232_v56 = vadd.f32 %v227_v47, %v206_v51  ;;  %v233_v5 = vadd.f32 %v229_v57, %v207_v62 }
  0xcd   :  { %v251_v58 = vsel %vm81_vm0, %v248_v52, %v249_v46  ;;  %v277_v59 = vpop.permute.xlu1 %276 }
  0xce   :  { %v253_v60 = vsel %vm252_vm8, %v243_v49, %v251_v58  ;;  %v247_v61 = vpop.permute.xlu0 %246  ;;  %v280_v18 = vrot.slane %v277_v59, 2 }
  0xcf   :  { %v258_v63 = vadd.f32 %v253_v60, %v232_v56  ;;  %v250_v0 = vrot.slane %v247_v61, 2 }
  0xd1   :  { %v268_v6 = vadd.f32 %v266_v55, %v258_v63  ;;  %v254_v7 = vsel %vm81_vm0, %v249_v46, %v250_v0  ;;  %v296_v3 = vpop.permute.xlu1 %295 }
  0xd2   :  { %v255_v31 = vsel %vm252_vm8, %v245_v44, %v254_v7  ;;  %v279_v9 = vpop.permute.xlu0 %278  ;;  %v299_v21 = vrot.slane %v296_v3, 2 }
  0xd3   :  { %v259_v10 = vadd.f32 %v255_v31, %v233_v5  ;;  %v281_v19 = vrot.slane %v279_v9, 2 }
  0xd5   :  { %v269_v1 = vadd.f32 %v267_v8, %v259_v10  ;;  %v315_v11 = vpop.permute.xlu1 %314  ;;  %v282_v36 = vsel %vm81_vm0, %v280_v18, %v281_v19  ;;  %v284_v25 = vsel %vm83_vm1, %v279_v9, %v281_v19 }
  0xd6   :  { %v298_v12 = vpop.permute.xlu0 %297  ;;  %v318_v26 = vrot.slane %v315_v11, 2  ;;  %v283_v32 = vsel %vm83_vm1, %v277_v59, %v282_v36 }
  0xd7   :  { %v300_v22 = vrot.slane %v298_v12, 2  ;;  %v288_v35 = vadd.f32 %v284_v25, %v269_v1  ;;  %v287_v45 = vadd.f32 %v283_v32, %v268_v6 }
  0xd9   :  { %v336_v13 = vpop.permute.xlu1 %335  ;;  %v301_v27 = vsel %vm81_vm0, %v299_v21, %v300_v22  ;;  %v303_v38 = vsel %vm103_vm2, %v298_v12, %v300_v22 }
  0xda   :  { %v317_v14 = vpop.permute.xlu0 %316  ;;  %v341_v29 = vrot.slane %v336_v13, 2  ;;  %v302_v37 = vsel %vm103_vm2, %v296_v3, %v301_v27  ;;  %v307_v42 = vadd.f32 %v303_v38, %v288_v35 }
  0xdb   :  { %v319_v28 = vrot.slane %v317_v14, 2  ;;  %v306_v54 = vadd.f32 %v302_v37, %v287_v45 }
  0xdd   :  { %v340_v15 = vpop.permute.xlu1 %339  ;;  %v320_v41 = vsel %vm81_vm0, %v318_v26, %v319_v28  ;;  %v322_v52 = vsel %vm123_vm3, %v317_v14, %v319_v28 }
  0xde   :  { %v338_v16 = vpop.permute.xlu0 %337  ;;  %v343_v33 = vrot.slane %v340_v15, 2  ;;  %v321_v53 = vsel %vm123_vm3, %v315_v11, %v320_v41  ;;  %v326_v62 = vadd.f32 %v322_v52, %v307_v42 }
  0xdf   :  { %v342_v30 = vrot.slane %v338_v16, 2  ;;  %v325_v63 = vadd.f32 %v321_v53, %v306_v54 }
  0xe1   :  { %v363_v17 = vpop.permute.xlu1 %362  ;;  %v344_v46 = vsel %vm81_vm0, %v341_v29, %v342_v30  ;;  %v346_v47 = vsel %vm81_vm0, %v342_v30, %v343_v33 }
  0xe2   :  { %v361_v20 = vpop.permute.xlu0 %360  ;;  %v367_v40 = vrot.slane %v363_v17, 2  ;;  %v347_v60 = vsel %vm148_vm4, %v338_v16, %v346_v47  ;;  %v345_v61 = vsel %vm148_vm4, %v336_v13, %v344_v46  ;;  %v457_v13 = vstv %s4045_s11  ;;  %s4172_s11 = sld [smem:[#allocation6 + $0x17]] }
  0xe3   :  { %v366_v43 = vrot.slane %v361_v20, 2  ;;  %v351_v31 = vadd.f32 %v347_v60, %v326_v62  ;;  %v350_v9 = vadd.f32 %v345_v61, %v325_v63  ;;  %v459_v26 = vmul.f32 %v3948_v2, %v457_v13 }
  0xe5   :  { %v386_v23 = vpop.permute.xlu1 %385  ;;  %v369_v56 = vsel %vm81_vm0, %v366_v43, %v367_v40 }
  0xe6   :  { %v365_v24 = vpop.permute.xlu0 %364  ;;  %v391_v48 = vrot.slane %v386_v23, 2  ;;  %v370_v7 = vsel %vm174_vm5, %v361_v20, %v369_v56 }
  0xe7   :  { %v368_v44 = vrot.slane %v365_v24, 2  ;;  %v375_v14 = vadd.f32 %v370_v7, %v350_v9 }
  0xe9   :  { %v390_v34 = vpop.permute.xlu1 %389  ;;  %v371_v58 = vsel %vm81_vm0, %v367_v40, %v368_v44 }
  0xea   :  { %v388_v39 = vpop.permute.xlu0 %387  ;;  %v393_v49 = vrot.slane %v390_v34, 2  ;;  %v372_v3 = vsel %vm174_vm5, %v363_v17, %v371_v58 }
  0xeb   :  { %v392_v50 = vrot.slane %v388_v39, 2  ;;  %v376_v15 = vadd.f32 %v372_v3, %v351_v31 }
  0xed   :  { %v413_v51 = vpop.permute.xlu1 %412  ;;  %v394_v0 = vsel %vm81_vm0, %v391_v48, %v392_v50  ;;  %v396_v5 = vsel %vm81_vm0, %v392_v50, %v393_v49 }
  0xee   :  { %v411_v55 = vpop.permute.xlu0 %410  ;;  %v417_v59 = vrot.slane %v413_v51, 2  ;;  %v397_v11 = vsel %vm200_vm6, %v388_v39, %v396_v5  ;;  %v395_v12 = vsel %vm200_vm6, %v386_v23, %v394_v0  ;;  %v458_v23 = vmul.f32 %v3953_v4, %v457_v13 }
  0xef   :  { %v416_v57 = vrot.slane %v411_v55, 2  ;;  %v401_v36 = vadd.f32 %v397_v11, %v376_v15  ;;  %v400_v24 = vadd.f32 %v395_v12, %v375_v14 }
  0xf1   :  { %v436_v6 = vpop.permute.xlu1 %435  ;;  %v419_v10 = vsel %vm81_vm0, %v416_v57, %v417_v59 }
  0xf2   :  { %v415_v8 = vpop.permute.xlu0 %414  ;;  %v441_v16 = vrot.slane %v436_v6, 2  ;;  %v420_v20 = vsel %vm226_vm7, %v411_v55, %v419_v10 }
  0xf3   :  { %v418_v1 = vrot.slane %v415_v8, 2  ;;  %v425_v27 = vadd.f32 %v420_v20, %v400_v24 }
  0xf5   :  { %v421_v18 = vsel %vm81_vm0, %v417_v59, %v418_v1  ;;  %v440_v19 = vpop.permute.xlu1 %439 }
  0xf6   :  { %v443_v17 = vrot.slane %v440_v19, 2  ;;  %v422_v21 = vsel %vm226_vm7, %v413_v51, %v421_v18  ;;  %v438_v22 = vpop.permute.xlu0 %437 }
  0xf7   :  { %v442_v25 = vrot.slane %v438_v22, 2  ;;  %v426_v28 = vadd.f32 %v422_v21, %v401_v36 }
  0xf9   :  { %v444_v29 = vsel %vm81_vm0, %v441_v16, %v442_v25  ;;  %v446_v30 = vsel %vm81_vm0, %v442_v25, %v443_v17  ;;  %v471_v32 = vpop.permute.xlu1 %470 }
  0xfa   :  { %v447_v33 = vsel %vm252_vm8, %v438_v22, %v446_v30  ;;  %v445_v34 = vsel %vm252_vm8, %v436_v6, %v444_v29  ;;  %v469_v35 = vpop.permute.xlu0 %468  ;;  %v473_v47 = vrot.slane %v471_v32, 2 }
  0xfb   :  { %v451_v37 = vadd.f32 %v447_v33, %v426_v28  ;;  %v450_v38 = vadd.f32 %v445_v34, %v425_v27  ;;  %v472_v48 = vrot.slane %v469_v35, 2 }
  0xfc   :  { %v476_v63 = vsel %vm83_vm1, %v471_v32, %v473_v47 }
  0xfd   :  { %v461_v39 = vadd.f32 %v459_v26, %v451_v37  ;;  %v460_v41 = vadd.f32 %v458_v23, %v450_v38  ;;  %v490_v40 = vpop.permute.xlu1 %489  ;;  %v474_v54 = vsel %vm81_vm0, %v472_v48, %v473_v47 }
  0xfe   :  { %v488_v2 = vpop.permute.xlu0 %487  ;;  %v492_v50 = vrot.slane %v490_v40, 2  ;;  %v475_v58 = vsel %vm83_vm1, %v469_v35, %v474_v54 }
  0xff   :  { %v491_v51 = vrot.slane %v488_v2, 2  ;;  %v479_v7 = vadd.f32 %v475_v58, %v460_v41  ;;  %v480_v11 = vadd.f32 %v476_v63, %v461_v39 }
 0x100   :  { %v495_v14 = vsel %vm103_vm2, %v490_v40, %v492_v50 }
 0x101   :  { %v509_v43 = vpop.permute.xlu1 %508  ;;  %v493_v56 = vsel %vm81_vm0, %v491_v51, %v492_v50  ;;  %v499_v24 = vadd.f32 %v495_v14, %v480_v11 }
 0x102   :  { %v507_v4 = vpop.permute.xlu0 %506  ;;  %v511_v42 = vrot.slane %v509_v43, 2  ;;  %v494_v0 = vsel %vm103_vm2, %v488_v2, %v493_v56 }
 0x103   :  { %v510_v52 = vrot.slane %v507_v4, 2  ;;  %v498_v12 = vadd.f32 %v494_v0, %v479_v7 }
 0x104   :  { %v514_v25 = vsel %vm123_vm3, %v509_v43, %v511_v42 }
 0x105   :  { %v530_v44 = vpop.permute.xlu1 %529  ;;  %v512_v59 = vsel %vm81_vm0, %v510_v52, %v511_v42  ;;  %v518_v34 = vadd.f32 %v514_v25, %v499_v24 }
 0x106   :  { %v528_v45 = vpop.permute.xlu0 %527  ;;  %v534_v57 = vrot.slane %v530_v44, 2  ;;  %v513_v3 = vsel %vm123_vm3, %v507_v4, %v512_v59 }
 0x107   :  { %v533_v60 = vrot.slane %v528_v45, 2  ;;  %v517_v18 = vadd.f32 %v513_v3, %v498_v12 }
 0x109   :  { %v553_v46 = vpop.permute.xlu1 %552  ;;  %v536_v8 = vsel %vm81_vm0, %v533_v60, %v534_v57 }
 0x10a   :  { %v532_v49 = vpop.permute.xlu0 %531  ;;  %v558_v5 = vrot.slane %v553_v46, 2  ;;  %v537_v19 = vsel %vm148_vm4, %v528_v45, %v536_v8 }
 0x10b   :  { %v535_v31 = vrot.slane %v532_v49, 2  ;;  %v542_v27 = vadd.f32 %v537_v19, %v517_v18 }
 0x10d   :  { %v557_v53 = vpop.permute.xlu1 %556  ;;  %v538_v20 = vsel %vm81_vm0, %v534_v57, %v535_v31 }
 0x10e   :  { %v555_v55 = vpop.permute.xlu0 %554  ;;  %v560_v15 = vrot.slane %v557_v53, 2  ;;  %v539_v32 = vsel %vm148_vm4, %v530_v44, %v538_v20 }
 0x10f   :  { %v559_v6 = vrot.slane %v555_v55, 2  ;;  %v543_v4 = vadd.f32 %v539_v32, %v518_v34  ;;  %v783_v32 = vstv %s3598_s20  ;;  %s3622_s20 = sld [smem:[#allocation6 + $0x1f]] }
 0x111   :  { %v580_v61 = vpop.permute.xlu1 %579  ;;  %v561_v16 = vsel %vm81_vm0, %v558_v5, %v559_v6  ;;  %v563_v28 = vsel %vm81_vm0, %v559_v6, %v560_v15 }
 0x112   :  { %v578_v62 = vpop.permute.xlu0 %577  ;;  %v584_v9 = vrot.slane %v580_v61, 2  ;;  %v562_v26 = vsel %vm174_vm5, %v553_v46, %v561_v16  ;;  %v564_v41 = vsel %vm174_vm5, %v555_v55, %v563_v28  ;;  %v688_v16 = vstv %s3593_s13  ;;  %s4185_s13 = sld [smem:[#allocation6 + $0x19]] }
 0x113   :  { %v583_v10 = vrot.slane %v578_v62, 2  ;;  %v567_v35 = vadd.f32 %v562_v26, %v542_v27  ;;  %v568_v48 = vadd.f32 %v564_v41, %v543_v4  ;;  %v745_v26 = vstv %s3596_s17  ;;  %s3620_s17 = sld [smem:[#allocation6 + $0x1d]] }
 0x114   :  { %v764_v28 = vstv %s3597_s19  ;;  %s3621_s19 = sld [smem:[#allocation6 + $0x1e]] }
 0x115   :  { %v603_v1 = vpop.permute.xlu1 %602  ;;  %v586_v17 = vsel %vm81_vm0, %v583_v10, %v584_v9 }
 0x116   :  { %v582_v13 = vpop.permute.xlu0 %581  ;;  %v608_v21 = vrot.slane %v603_v1, 2  ;;  %v587_v33 = vsel %vm200_vm6, %v578_v62, %v586_v17  ;;  %v707_v17 = vstv %s3594_s14  ;;  %s4192_s14 = sld [smem:[#allocation6 + $0x1c]] }
 0x117   :  { %v585_v22 = vrot.slane %v582_v13, 2  ;;  %v592_v45 = vadd.f32 %v587_v33, %v567_v35  ;;  %v802_v35 = vstv %s3599_s21  ;;  %s3623_s21 = sld [smem:[#allocation6 + $0x20]] }
 0x119   :  { %v607_v36 = vpop.permute.xlu1 %606  ;;  %v588_v37 = vsel %vm81_vm0, %v584_v9, %v585_v22 }
 0x11a   :  { %v605_v23 = vpop.permute.xlu0 %604  ;;  %v610_v29 = vrot.slane %v607_v36, 2  ;;  %v589_v47 = vsel %vm200_vm6, %v580_v61, %v588_v37  ;;  %v726_v36 = vstv %s3595_s3  ;;  %s3617_s3 = sld [smem:[#allocation6 + $0x1a]] }
 0x11b   :  { %v609_v30 = vrot.slane %v605_v23, 2  ;;  %v593_v53 = vadd.f32 %v589_v47, %v568_v48  ;;  %v902_v47 = vstv %s3604_s27  ;;  %s4234_s27 = sld [smem:[#allocation6 + $0x25]] }
 0x11d   :  { %v611_v38 = vsel %vm81_vm0, %v608_v21, %v609_v30  ;;  %v630_v39 = vpop.permute.xlu1 %629  ;;  %v613_v46 = vsel %vm81_vm0, %v609_v30, %v610_v29 }
 0x11e   :  { %v634_v40 = vrot.slane %v630_v39, 2  ;;  %v612_v2 = vsel %vm226_vm7, %v603_v1, %v611_v38  ;;  %v628_v43 = vpop.permute.xlu0 %627  ;;  %v614_v51 = vsel %vm226_vm7, %v605_v23, %v613_v46  ;;  %v669_v1 = vstv %s3592_s12  ;;  %s4178_s12 = sld [smem:[#allocation6 + $0x18]] }
 0x11f   :  { %v633_v44 = vrot.slane %v628_v43, 2  ;;  %v617_v49 = vadd.f32 %v612_v2, %v592_v45  ;;  %v618_v56 = vadd.f32 %v614_v51, %v593_v53  ;;  %v864_v2 = vstv %s3602_s25  ;;  %s3625_s25 = sld [smem:[#allocation6 + $0x22]] }
 0x120   :  { %v883_v45 = vstv %s3603_s1  ;;  %s4228_s1 = sld [smem:[#allocation6 + $0x23]] }
 0x121   :  { %v636_v50 = vsel %vm81_vm0, %v633_v44, %v634_v40 }
 0x122   :  { %v637_v42 = vsel %vm252_vm8, %v628_v43, %v636_v50  ;;  %v632_v52 = vpop.permute.xlu0 %631  ;;  %v921_v50 = vstv %s3605_s28  ;;  %s4241_s28 = sld [smem:[#allocation6 + $0x26]] }
 0x123   :  { %v642_v54 = vadd.f32 %v637_v42, %v617_v49  ;;  %v635_v55 = vrot.slane %v632_v52, 2  ;;  %v940_v52 = vstv %s3606_s29  ;;  %s4245_s29 = sld [smem:[#allocation6]] }
 0x125   :  { %v646_v58 = vand.u32 2147483647, %v642_v54  ;;  %v638_v59 = vsel %vm81_vm0, %v634_v40, %v635_v55  ;;  %v644_v9 = vmax.f32 %v642_v54, 0.0  ;;  %v959_v55 = vstv %s3607_s30  ;;  %s4250_s30 = sld [smem:[#allocation6 + $0x27]] }
 0x126   :  { %v639_v57 = vsel %vm252_vm8, %v630_v39, %v638_v59  ;;  %v845_v39 = vstv %s3601_s23  ;;  %v978_v59 = vstv %s3608_s7  ;;  %s3624_s23 = sld [smem:[#allocation6 + $0x21]] }
 0x127   :  { %v648_v60 = vsub.f32 0.0, %v646_v58  ;;  %v643_v61 = vadd.f32 %v639_v57, %v618_v56  ;;  %s4254_s7 = sld [smem:[#allocation6 + $0x28]] }
 0x129   :  { %v650_v62 = vmul.f32 1.442695, %v648_v60  ;;  %v647_v63 = vand.u32 2147483647, %v643_v61  ;;  %v645_v13 = vmax.f32 %v643_v61, 0.0  ;;  %v1021_v61 = vstv %s3610_s8  ;;  %s4261_s8 = sld [smem:[#allocation6 + $0x29]] }
 0x12b   :  { %3661 = vpow2.f32 %v650_v62  ;;  %v649_v0 = vsub.f32 0.0, %v647_v63 }
 0x12d   :  { %v652_v5 = vmul.f32 1.442695, %v649_v0  ;;  %v1040_v0 = vstv %s3611_s0  ;;  %s4275_s0 = sld [smem:[#allocation6 + $0x2a]] }
 0x12f   :  { %3663 = vpow2.f32 %v652_v5 }
 0x138   :  { %v3662_v6 = vpop.eup %3661 }
 0x139   :  { %v654_v7 = vadd.f32 1.0, %v3662_v6 }
 0x13b   :  { %3665 = vlog2.f32 %v654_v7  ;;  %v1059_v7 = vstv %s3612_s9  ;;  %s4293_s9 = sld [smem:[#allocation6 + $0x2b]] }
 0x13c   :  { %v3664_v3 = vpop.eup %3663 }
 0x13d   :  { %v655_v8 = vadd.f32 1.0, %v3664_v3 }
 0x13f   :  { %3667 = vlog2.f32 %v655_v8 }
 0x148   :  { %v3666_v31 = vpop.eup %3665 }
 0x149   :  { %v657_v10 = vmul.f32 0.6931472, %v3666_v31  ;;  %v1078_v31 = vstv %s3613_s10  ;;  %s4305_s10 = sld [smem:[#allocation6 + $0x2c]] }
 0x14b   :  { %v4100_v11 = vadd.f32 %v657_v10, %v644_v9 }
 0x14c   :  { %v3668_v12 = vpop.eup %3667 }
 0x14d   :  { %v659_v14 = vmul.f32 0.6931472, %v3668_v12  ;;  %v670_v15 = vmul.f32 %v669_v1, %v4100_v11  ;;  %v689_v20 = vmul.f32 %v688_v16, %v4100_v11  ;;  %v708_v22 = vmul.f32 %v707_v17, %v4100_v11 }
 0x14e   :  { %v727_v25 = vmul.f32 %v726_v36, %v4100_v11  ;;  %v746_v27 = vmul.f32 %v745_v26, %v4100_v11  ;;  %v765_v30 = vmul.f32 %v764_v28, %v4100_v11  ;;  %v784_v34 = vmul.f32 %v783_v32, %v4100_v11 }
 0x14f   :  { %v4103_v18 = vadd.f32 %v659_v14, %v645_v13  ;;  %674 = vrot.lane.b32.xlu1 %v670_v15, %s3799_s16  ;;  %v803_v38 = vmul.f32 %v802_v35, %v4100_v11  ;;  %v846_v40 = vmul.f32 %v845_v39, %v4100_v11  ;;  %v865_v4 = vmul.f32 %v864_v2, %v4100_v11  ;;  %v2013_v14 = vld [vmem:[#allocation8 + $0x158] sm:$0x3]  ;;  %v2012_v15 = vld [vmem:[#allocation8 + $0x150] sm:$0x3] }
 0x150   :  { %v884_v44 = vmul.f32 %v883_v45, %v4100_v11  ;;  %v903_v49 = vmul.f32 %v902_v47, %v4100_v11  ;;  %v922_v42 = vmul.f32 %v921_v50, %v4100_v11  ;;  %v941_v54 = vmul.f32 %v940_v52, %v4100_v11  ;;  %2089 = vmatprep.subr.mxu0 %v2013_v14 }
 0x151   :  { %v671_v19 = vmul.f32 %v669_v1, %v4103_v18  ;;  %v690_v21 = vmul.f32 %v688_v16, %v4103_v18  ;;  %v709_v24 = vmul.f32 %v707_v17, %v4103_v18  ;;  %v728_v23 = vmul.f32 %v726_v36, %v4103_v18  ;;  %v2015_v16 = vld [vmem:[#allocation8 + $0x168] sm:$0x3]  ;;  %v2014_v17 = vld [vmem:[#allocation8 + $0x160] sm:$0x3]  ;;  %2090 = vmatpush1.xpose.msra.mxu0 %v2012_v15 }
 0x152   :  { %v747_v29 = vmul.f32 %v745_v26, %v4103_v18  ;;  %v766_v33 = vmul.f32 %v764_v28, %v4103_v18  ;;  %v785_v37 = vmul.f32 %v783_v32, %v4103_v18  ;;  %v804_v41 = vmul.f32 %v802_v35, %v4103_v18  ;;  %2159 = vmatprep.subr.mxu1 %v2015_v16 }
 0x153   :  { %676 = vrot.lane.b32.xlu0 %v671_v19, %s3799_s16  ;;  %693 = vrot.lane.b32.xlu1 %v689_v20, %s3798_s15  ;;  %v847_v43 = vmul.f32 %v845_v39, %v4103_v18  ;;  %v866_v46 = vmul.f32 %v864_v2, %v4103_v18  ;;  %v885_v48 = vmul.f32 %v883_v45, %v4103_v18  ;;  %v1097_v1 = vstv %s4172_s11  ;;  %v1971_v20 = vld [vmem:[#allocation8 + $0x8] sm:$0xff]  ;;  %s4318_s11 = sld [smem:[#allocation6 + $0x2e]] }
 0x154   :  { %v904_v51 = vmul.f32 %v902_v47, %v4103_v18  ;;  %v923_v53 = vmul.f32 %v921_v50, %v4103_v18  ;;  %v942_v56 = vmul.f32 %v940_v52, %v4103_v18  ;;  %v960_v58 = vmul.f32 %v959_v55, %v4100_v11  ;;  %2160 = vmatpush1.xpose.msra.mxu1 %v2014_v17  ;;  %v2019_v52 = vld [vmem:[#allocation8 + $0x188] sm:$0x3] }
 0x155   :  { %v961_v57 = vmul.f32 %v959_v55, %v4103_v18  ;;  %v979_v60 = vmul.f32 %v978_v59, %v4100_v11  ;;  %v980_v62 = vmul.f32 %v978_v59, %v4103_v18  ;;  %v1022_v63 = vmul.f32 %v1021_v61, %v4100_v11  ;;  %2091 = vmatprep.subr.mxu0 %v1971_v20 }
 0x156   :  { %v1023_v5 = vmul.f32 %v1021_v61, %v4103_v18  ;;  %v1041_v6 = vmul.f32 %v1040_v0, %v4100_v11  ;;  %v1042_v3 = vmul.f32 %v1040_v0, %v4103_v18  ;;  %v1060_v8 = vmul.f32 %v1059_v7, %v4100_v11 }
 0x157   :  { %695 = vrot.lane.b32.xlu0 %v690_v21, %s3798_s15  ;;  %712 = vrot.lane.b32.xlu1 %v708_v22, %s3800_s18  ;;  %v1061_v9 = vmul.f32 %v1059_v7, %v4103_v18  ;;  %v1079_v10 = vmul.f32 %v1078_v31, %v4100_v11  ;;  %v1080_v12 = vmul.f32 %v1078_v31, %v4103_v18  ;;  %v1116_v19 = vstv %s4178_s12  ;;  %v1973_v21 = vld [vmem:[#allocation8 + $0x18] sm:$0xff]  ;;  %s4332_s12 = sld [smem:[#allocation6 + $0x2f]] }
 0x158   :  { %v1098_v13 = vmul.f32 %v1097_v1, %v4100_v11  ;;  %v1099_v22 = vmul.f32 %v1097_v1, %v4103_v18  ;;  %v1117_v36 = vmul.f32 %v1116_v19, %v4100_v11  ;;  %2161 = vmatprep.subr.mxu1 %v1973_v21  ;;  %v1135_v26 = vstv %s4185_s13  ;;  %s4339_s13 = sld [smem:[#allocation6 + $0x9]] }
 0x159   :  { %v1136_v28 = vmul.f32 %v1135_v26, %v4100_v11  ;;  %v1430_v21 = vstv %s4254_s7 }
 0x15b   :  { %714 = vrot.lane.b32.xlu0 %v709_v24, %s3800_s18  ;;  %731 = vrot.lane.b32.xlu1 %v727_v25, %s3801_s22  ;;  %v1970_v24 = vld [vmem:[#allocation8] sm:$0xff]  ;;  %v1972_v25 = vld [vmem:[#allocation8 + $0x10] sm:$0xff] }
 0x15c   :  { %2092 = vmatpush1.xpose.msra.mxu0 %v1970_v24  ;;  %2162 = vmatpush1.xpose.msra.mxu1 %v1972_v25 }
 0x15d   :  { %2299 = vmatprep.subr.mxu1 %v2019_v52 }
 0x15f   :  { %733 = vrot.lane.b32.xlu0 %v728_v23, %s3801_s22  ;;  %750 = vrot.lane.b32.xlu1 %v746_v27, %s3802_s24  ;;  %v2017_v23 = vld [vmem:[#allocation8 + $0x178] sm:$0x3]  ;;  %v1118_v27 = vmul.f32 %v1116_v19, %v4103_v18  ;;  %v1411_v19 = vstv %s4250_s30 }
 0x160   :  { %2229 = vmatprep.subr.mxu0 %v2017_v23 }
 0x163   :  { %752 = vrot.lane.b32.xlu0 %v747_v29, %s3802_s24  ;;  %769 = vrot.lane.b32.xlu1 %v765_v30, %s3803_s26  ;;  %v1197_v29 = vstv %s4192_s14  ;;  %v1137_v30 = vmul.f32 %v1135_v26, %v4103_v18  ;;  %s4345_s14 = sld [smem:[#allocation6 + $0x30]] }
 0x164   :  { %v1198_v32 = vmul.f32 %v1197_v29, %v4100_v11 }
 0x167   :  { %771 = vrot.lane.b32.xlu0 %v766_v33, %s3803_s26  ;;  %788 = vrot.lane.b32.xlu1 %v784_v34, %s3804_s2  ;;  %v1154_v33 = vstv %s3617_s3  ;;  %v1199_v34 = vmul.f32 %v1197_v29, %v4103_v18  ;;  %s4349_s3 = sld [smem:[#allocation6 + $0x31]] }
 0x168   :  { %v1155_v35 = vmul.f32 %v1154_v33, %v4100_v11 }
 0x16b   :  { %790 = vrot.lane.b32.xlu0 %v785_v37, %s3804_s2  ;;  %807 = vrot.lane.b32.xlu1 %v803_v38, %s3805_s6  ;;  %v1216_v37 = vstv %s3620_s17  ;;  %v1156_v38 = vmul.f32 %v1154_v33, %v4103_v18  ;;  %s4354_s17 = sld [smem:[#allocation6 + $0x32]] }
 0x16c   :  { %v1217_v39 = vmul.f32 %v1216_v37, %v4100_v11 }
 0x16f   :  { %809 = vrot.lane.b32.xlu0 %v804_v41, %s3805_s6  ;;  %850 = vrot.lane.b32.xlu1 %v846_v40, %s3799_s16  ;;  %v1235_v41 = vstv %s3621_s19  ;;  %v1218_v40 = vmul.f32 %v1216_v37, %v4103_v18  ;;  %s4359_s19 = sld [smem:[#allocation6 + $0x33]] }
 0x170   :  { %v1236_v2 = vmul.f32 %v1235_v41, %v4100_v11 }
 0x173   :  { %852 = vrot.lane.b32.xlu0 %v847_v43, %s3799_s16  ;;  %869 = vrot.lane.b32.xlu1 %v865_v4, %s3798_s15  ;;  %v1254_v43 = vstv %s3622_s20  ;;  %v1237_v4 = vmul.f32 %v1235_v41, %v4103_v18 }
 0x174   :  { %v1255_v45 = vmul.f32 %v1254_v43, %v4100_v11 }
 0x177   :  { %871 = vrot.lane.b32.xlu0 %v866_v46, %s3798_s15  ;;  %888 = vrot.lane.b32.xlu1 %v884_v44, %s3800_s18  ;;  %v1273_v46 = vstv %s3623_s21  ;;  %v1256_v44 = vmul.f32 %v1254_v43, %v4103_v18  ;;  %v1413_v43 = vmul.f32 %v1411_v19, %v4103_v18 }
 0x178   :  { %v1274_v47 = vmul.f32 %v1273_v46, %v4100_v11  ;;  %v1275_v50 = vmul.f32 %v1273_v46, %v4103_v18 }
 0x17b   :  { %890 = vrot.lane.b32.xlu0 %v885_v48, %s3800_s18  ;;  %907 = vrot.lane.b32.xlu1 %v903_v49, %s3801_s22  ;;  %v1292_v48 = vstv %s3624_s23 }
 0x17c   :  { %v1294_v55 = vmul.f32 %v1292_v48, %v4103_v18 }
 0x17f   :  { %909 = vrot.lane.b32.xlu0 %v904_v51, %s3801_s22  ;;  %926 = vrot.lane.b32.xlu1 %v922_v42, %s3802_s24  ;;  %v1293_v51 = vmul.f32 %v1292_v48, %v4100_v11  ;;  %v1311_v42 = vstv %s3625_s25  ;;  %v1431_v48 = vmul.f32 %v1430_v21, %v4100_v11 }
 0x183   :  { %928 = vrot.lane.b32.xlu0 %v923_v53, %s3802_s24  ;;  %945 = vrot.lane.b32.xlu1 %v941_v54, %s3803_s26 }
 0x187   :  { %947 = vrot.lane.b32.xlu0 %v942_v56, %s3803_s26  ;;  %964 = vrot.lane.b32.xlu1 %v960_v58, %s3804_s2  ;;  %v1312_v56 = vmul.f32 %v1311_v42, %v4100_v11  ;;  %v1330_v58 = vstv %s4228_s1 }
 0x188   :  { %v1331_v61 = vmul.f32 %v1330_v58, %v4100_v11 }
 0x18b   :  { %966 = vrot.lane.b32.xlu0 %v961_v57, %s3804_s2  ;;  %983 = vrot.lane.b32.xlu1 %v979_v60, %s3805_s6  ;;  %v1313_v60 = vmul.f32 %v1311_v42, %v4103_v18 }
 0x18f   :  { %985 = vrot.lane.b32.xlu0 %v980_v62, %s3805_s6  ;;  %1026 = vrot.lane.b32.xlu1 %v1022_v63, %s3799_s16  ;;  %v1373_v62 = vstv %s4234_s27 }
 0x190   :  { %v1374_v7 = vmul.f32 %v1373_v62, %v4100_v11  ;;  %v1375_v14 = vmul.f32 %v1373_v62, %v4103_v18  ;;  %v1432_v62 = vmul.f32 %v1430_v21, %v4103_v18  ;;  %v1487_v21 = vstv %s4293_s9 }
 0x193   :  { %1028 = vrot.lane.b32.xlu0 %v1023_v5, %s3799_s16  ;;  %1045 = vrot.lane.b32.xlu1 %v1041_v6, %s3798_s15  ;;  %v1332_v6 = vmul.f32 %v1330_v58, %v4103_v18  ;;  %v1468_v58 = vstv %s4275_s0 }
 0x197   :  { %1047 = vrot.lane.b32.xlu0 %v1042_v3, %s3798_s15  ;;  %1064 = vrot.lane.b32.xlu1 %v1060_v8, %s3800_s18  ;;  %v1392_v3 = vstv %s4241_s28 }
 0x198   :  { %v1393_v15 = vmul.f32 %v1392_v3, %v4100_v11  ;;  %v1394_v29 = vmul.f32 %v1392_v3, %v4103_v18 }
 0x19b   :  { %1066 = vrot.lane.b32.xlu0 %v1061_v9, %s3800_s18  ;;  %1083 = vrot.lane.b32.xlu1 %v1079_v10, %s3801_s22  ;;  %v663_v9 = vstv %s4245_s29 }
 0x19c   :  { %v664_v20 = vmul.f32 %v663_v9, %v4100_v11  ;;  %v665_v26 = vmul.f32 %v663_v9, %v4103_v18 }
 0x19f   :  { %1085 = vrot.lane.b32.xlu0 %v1080_v12, %s3801_s22  ;;  %1102 = vrot.lane.b32.xlu1 %v1098_v13, %s3802_s24 }
 0x1a3   :  { %1104 = vrot.lane.b32.xlu0 %v1099_v22, %s3802_s24  ;;  %1121 = vrot.lane.b32.xlu1 %v1117_v36, %s3803_s26 }
 0x1a7   :  { %1123 = vrot.lane.b32.xlu0 %v1118_v27, %s3803_s26  ;;  %1140 = vrot.lane.b32.xlu1 %v1136_v28, %s3804_s2 }
 0x1ab   :  { %1142 = vrot.lane.b32.xlu0 %v1137_v30, %s3804_s2  ;;  %1202 = vrot.lane.b32.xlu1 %v1198_v32, %s3799_s16  ;;  %v1412_v30 = vmul.f32 %v1411_v19, %v4100_v11 }
 0x1af   :  { %1204 = vrot.lane.b32.xlu0 %v1199_v34, %s3799_s16  ;;  %1159 = vrot.lane.b32.xlu1 %v1155_v35, %s3805_s6 }
 0x1b3   :  { %1161 = vrot.lane.b32.xlu0 %v1156_v38, %s3805_s6  ;;  %1221 = vrot.lane.b32.xlu1 %v1217_v39, %s3798_s15  ;;  %v1449_v39 = vstv %s4261_s8 }
 0x1b7   :  { %1223 = vrot.lane.b32.xlu0 %v1218_v40, %s3798_s15  ;;  %1240 = vrot.lane.b32.xlu1 %v1236_v2, %s3800_s18 }
 0x1bb   :  { %1242 = vrot.lane.b32.xlu0 %v1237_v4, %s3800_s18  ;;  %1259 = vrot.lane.b32.xlu1 %v1255_v45, %s3801_s22 }
 0x1bf   :  { %1261 = vrot.lane.b32.xlu0 %v1256_v44, %s3801_s22  ;;  %1278 = vrot.lane.b32.xlu1 %v1274_v47, %s3802_s24 }
 0x1c1   :  { %v675_v49 = vpop.permute.xlu1 %674 }
 0x1c2   :  { %v678_v8 = vrot.slane %v675_v49, 2 }
 0x1c3   :  { %1280 = vrot.lane.b32.xlu0 %v1275_v50, %s3802_s24  ;;  %1297 = vrot.lane.b32.xlu1 %v1293_v51, %s3803_s26 }
 0x1c5   :  { %v677_v53 = vpop.permute.xlu0 %676  ;;  %v694_v54 = vpop.permute.xlu1 %693 }
 0x1c6   :  { %v679_v63 = vrot.slane %v677_v53, 2  ;;  %v697_v1 = vrot.slane %v694_v54, 2 }
 0x1c7   :  { %1299 = vrot.lane.b32.xlu0 %v1294_v55, %s3803_s26  ;;  %1316 = vrot.lane.b32.xlu1 %v1312_v56, %s3804_s2 }
 0x1c8   :  { %v680_v10 = vsel %vm81_vm0, %v678_v8, %v679_v63  ;;  %v682_v36 = vsel %vm83_vm1, %v677_v53, %v679_v63  ;;  %v1450_v63 = vmul.f32 %v1449_v39, %v4100_v11 }
 0x1c9   :  { %v696_v59 = vpop.permute.xlu0 %695  ;;  %v713_v57 = vpop.permute.xlu1 %712  ;;  %v681_v22 = vsel %vm83_vm1, %v675_v49, %v680_v10  ;;  %v686_v38 = vadd.f32 %v682_v36, %v665_v26 }
 0x1ca   :  { %v698_v31 = vrot.slane %v696_v59, 2  ;;  %v716_v24 = vrot.slane %v713_v57, 2  ;;  %v685_v37 = vadd.f32 %v681_v22, %v664_v20 }
 0x1cb   :  { %1318 = vrot.lane.b32.xlu0 %v1313_v60, %s3804_s2  ;;  %1335 = vrot.lane.b32.xlu1 %v1331_v61, %s3805_s6 }
 0x1cc   :  { %v699_v17 = vsel %vm81_vm0, %v697_v1, %v698_v31  ;;  %v701_v23 = vsel %vm103_vm2, %v696_v59, %v698_v31 }
 0x1cd   :  { %v715_v0 = vpop.permute.xlu0 %714  ;;  %v732_v5 = vpop.permute.xlu1 %731  ;;  %v700_v32 = vsel %vm103_vm2, %v694_v54, %v699_v17  ;;  %v705_v45 = vadd.f32 %v701_v23, %v686_v38 }
 0x1ce   :  { %v717_v16 = vrot.slane %v715_v0, 2  ;;  %v735_v34 = vrot.slane %v732_v5, 2  ;;  %v704_v4 = vadd.f32 %v700_v32, %v685_v37  ;;  %v1506_v32 = vstv %s4305_s10 }
 0x1cf   :  { %1337 = vrot.lane.b32.xlu0 %v1332_v6, %s3805_s6  ;;  %1378 = vrot.lane.b32.xlu1 %v1374_v7, %s3799_s16 }
 0x1d0   :  { %v718_v33 = vsel %vm81_vm0, %v716_v24, %v717_v16  ;;  %v720_v41 = vsel %vm123_vm3, %v715_v0, %v717_v16  ;;  %v1469_v16 = vmul.f32 %v1468_v58, %v4100_v11 }
 0x1d1   :  { %v734_v12 = vpop.permute.xlu0 %733  ;;  %v751_v13 = vpop.permute.xlu1 %750  ;;  %v719_v46 = vsel %vm123_vm3, %v713_v57, %v718_v33  ;;  %v724_v52 = vadd.f32 %v720_v41, %v705_v45  ;;  %v1489_v41 = vmul.f32 %v1487_v21, %v4103_v18 }
 0x1d2   :  { %v736_v25 = vrot.slane %v734_v12, 2  ;;  %v754_v2 = vrot.slane %v751_v13, 2  ;;  %v723_v54 = vadd.f32 %v719_v46, %v704_v4 }
 0x1d3   :  { %1380 = vrot.lane.b32.xlu0 %v1375_v14, %s3799_s16  ;;  %1397 = vrot.lane.b32.xlu1 %v1393_v15, %s3798_s15  ;;  %v1451_v15 = vmul.f32 %v1449_v39, %v4103_v18 }
 0x1d4   :  { %v737_v40 = vsel %vm81_vm0, %v735_v34, %v736_v25  ;;  %v739_v49 = vsel %vm148_vm4, %v734_v12, %v736_v25 }
 0x1d5   :  { %v753_v27 = vpop.permute.xlu0 %752  ;;  %v770_v28 = vpop.permute.xlu1 %769  ;;  %v738_v53 = vsel %vm148_vm4, %v732_v5, %v737_v40  ;;  %v743_v59 = vadd.f32 %v739_v49, %v724_v52  ;;  %v1507_v40 = vmul.f32 %v1506_v32, %v4100_v11  ;;  %v839_v52 = vstv %s4339_s13 }
 0x1d6   :  { %v755_v35 = vrot.slane %v753_v27, 2  ;;  %v773_v51 = vrot.slane %v770_v28, 2  ;;  %v742_v0 = vadd.f32 %v738_v53, %v723_v54 }
 0x1d7   :  { %1399 = vrot.lane.b32.xlu0 %v1394_v29, %s3798_s15  ;;  %1416 = vrot.lane.b32.xlu1 %v1412_v30, %s3800_s18  ;;  %v1470_v29 = vmul.f32 %v1468_v58, %v4103_v18  ;;  %v1488_v30 = vmul.f32 %v1487_v21, %v4100_v11  ;;  %v1644_v21 = vstv %s4359_s19 }
 0x1d8   :  { %v756_v50 = vsel %vm81_vm0, %v754_v2, %v755_v35  ;;  %v758_v55 = vsel %vm174_vm5, %v753_v27, %v755_v35  ;;  %v1549_v2 = vstv %s4318_s11 }
 0x1d9   :  { %v772_v44 = vpop.permute.xlu0 %771  ;;  %v789_v47 = vpop.permute.xlu1 %788  ;;  %v757_v57 = vsel %vm174_vm5, %v751_v13, %v756_v50  ;;  %v762_v3 = vadd.f32 %v758_v55, %v743_v59  ;;  %v1550_v49 = vmul.f32 %v1549_v2, %v4100_v11  ;;  %v1568_v50 = vstv %s4332_s12 }
 0x1da   :  { %v774_v42 = vrot.slane %v772_v44, 2  ;;  %v792_v6 = vrot.slane %v789_v47, 2  ;;  %v761_v31 = vadd.f32 %v757_v57, %v742_v0  ;;  %v1551_v53 = vmul.f32 %v1549_v2, %v4103_v18 }
 0x1db   :  { %1418 = vrot.lane.b32.xlu0 %v1413_v43, %s3800_s18  ;;  %1435 = vrot.lane.b32.xlu1 %v1431_v48, %s3801_s22  ;;  %v1508_v48 = vmul.f32 %v1506_v32, %v4103_v18  ;;  %v1569_v57 = vmul.f32 %v1568_v50, %v4100_v11  ;;  %v1606_v0 = vstv %s4349_s3 }
 0x1dc   :  { %v775_v56 = vsel %vm81_vm0, %v773_v51, %v774_v42  ;;  %v777_v5 = vsel %vm200_vm6, %v772_v44, %v774_v42  ;;  %v1607_v32 = vmul.f32 %v1606_v0, %v4100_v11 }
 0x1dd   :  { %v791_v60 = vpop.permute.xlu0 %790  ;;  %v808_v61 = vpop.permute.xlu1 %807  ;;  %v776_v8 = vsel %vm200_vm6, %v770_v28, %v775_v56  ;;  %v781_v1 = vadd.f32 %v777_v5, %v762_v3  ;;  %v841_v5 = vmul.f32 %v839_v52, %v4103_v18 }
 0x1de   :  { %v793_v7 = vrot.slane %v791_v60, 2  ;;  %v780_v19 = vadd.f32 %v776_v8, %v761_v31  ;;  %v811_v20 = vrot.slane %v808_v61, 2 }
 0x1df   :  { %1437 = vrot.lane.b32.xlu0 %v1432_v62, %s3801_s22  ;;  %1454 = vrot.lane.b32.xlu1 %v1450_v63, %s3802_s24 }
 0x1e0   :  { %v794_v9 = vsel %vm81_vm0, %v792_v6, %v793_v7  ;;  %v796_v10 = vsel %vm226_vm7, %v791_v60, %v793_v7  ;;  %v1587_v60 = vstv %s4345_s14  ;;  %v840_v6 = vmul.f32 %v839_v52, %v4100_v11 }
 0x1e1   :  { %v795_v12 = vsel %vm226_vm7, %v789_v47, %v794_v9  ;;  %v810_v13 = vpop.permute.xlu0 %809  ;;  %v4313_v14 = vpop.permute.xlu1 %850  ;;  %v800_v22 = vadd.f32 %v796_v10, %v781_v1  ;;  %v1570_v1 = vmul.f32 %v1568_v50, %v4103_v18 }
 0x1e2   :  { %v812_v17 = vrot.slane %v810_v13, 2  ;;  %v799_v36 = vadd.f32 %v795_v12, %v780_v19  ;;  %v854_v51 = vrot.slane %v4313_v14, 2  ;;  %v1588_v12 = vmul.f32 %v1587_v60, %v4100_v11 }
 0x1e3   :  { %1456 = vrot.lane.b32.xlu0 %v1451_v15, %s3802_s24  ;;  %1473 = vrot.lane.b32.xlu1 %v1469_v16, %s3803_s26  ;;  %v1625_v19 = vstv %s4354_s17 }
 0x1e4   :  { %v813_v24 = vsel %vm81_vm0, %v811_v20, %v812_v17  ;;  %v815_v25 = vsel %vm252_vm8, %v810_v13, %v812_v17 }
 0x1e5   :  { %v814_v26 = vsel %vm252_vm8, %v808_v61, %v813_v24  ;;  %v4325_v23 = vadd.f32 %v815_v25, %v800_v22  ;;  %v853_v27 = vpop.permute.xlu0 %852  ;;  %v4327_v28 = vpop.permute.xlu1 %869  ;;  %v1589_v25 = vmul.f32 %v1587_v60, %v4103_v18 }
 0x1e6   :  { %v4334_v33 = vadd.f32 %v814_v26, %v799_v36  ;;  %v855_v46 = vrot.slane %v853_v27, 2  ;;  %v873_v55 = vrot.slane %v4327_v28, 2 }
 0x1e7   :  { %v823_v34 = vand.u32 2147483647, %v4325_v23  ;;  %1475 = vrot.lane.b32.xlu0 %v1470_v29, %s3803_s26  ;;  %1492 = vrot.lane.b32.xlu1 %v1488_v30, %s3804_s2 }
 0x1e8   :  { %v822_v35 = vand.u32 2147483647, %v4334_v33  ;;  %v856_v54 = vsel %vm81_vm0, %v854_v51, %v855_v46  ;;  %v858_v3 = vsel %vm83_vm1, %v853_v27, %v855_v46 }
 0x1e9   :  { %v825_v37 = vsub.f32 0.0, %v823_v34  ;;  %v872_v38 = vpop.permute.xlu0 %871  ;;  %v889_v39 = vpop.permute.xlu1 %888  ;;  %v857_v7 = vsel %vm83_vm1, %v4313_v14, %v856_v54  ;;  %v862_v20 = vadd.f32 %v858_v3, %v841_v5  ;;  %v1627_v5 = vmul.f32 %v1625_v19, %v4103_v18 }
 0x1ea   :  { %v824_v43 = vsub.f32 0.0, %v822_v35  ;;  %v874_v42 = vrot.slane %v872_v38, 2  ;;  %v892_v62 = vrot.slane %v889_v39, 2  ;;  %v861_v14 = vadd.f32 %v857_v7, %v840_v6 }
 0x1eb   :  { %v828_v4 = vmul.f32 1.442695, %v825_v37  ;;  %1494 = vrot.lane.b32.xlu0 %v1489_v41, %s3804_s2  ;;  %1511 = vrot.lane.b32.xlu1 %v1507_v40, %s3805_s6  ;;  %v1645_v6 = vmul.f32 %v1644_v21, %v4100_v11 }
 0x1ec   :  { %v826_v45 = vmul.f32 1.442695, %v824_v43  ;;  %v875_v61 = vsel %vm81_vm0, %v873_v55, %v874_v42  ;;  %v877_v15 = vsel %vm103_vm2, %v872_v38, %v874_v42 }
 0x1ed   :  { %3669 = vpow2.f32 %v828_v4  ;;  %v891_v44 = vpop.permute.xlu0 %890  ;;  %v908_v47 = vpop.permute.xlu1 %907  ;;  %v876_v13 = vsel %vm103_vm2, %v4327_v28, %v875_v61  ;;  %v881_v27 = vadd.f32 %v877_v15, %v862_v20  ;;  %v1608_v4 = vmul.f32 %v1606_v0, %v4103_v18 }
 0x1ee   :  { %3671 = vpow2.f32 %v826_v45  ;;  %v893_v56 = vrot.slane %v891_v44, 2  ;;  %v911_v31 = vrot.slane %v908_v47, 2  ;;  %v880_v26 = vadd.f32 %v876_v13, %v861_v14 }
 0x1ef   :  { %1513 = vrot.lane.b32.xlu0 %v1508_v48, %s3805_s6  ;;  %1554 = vrot.lane.b32.xlu1 %v1550_v49, %s3799_s16  ;;  %v3806_v20 = vmov 1983009808  }
 0x1f0   :  { %v894_v8 = vsel %vm81_vm0, %v892_v62, %v893_v56  ;;  %v896_v36 = vsel %vm123_vm3, %v891_v44, %v893_v56  ;;  %v1626_v44 = vmul.f32 %v1625_v19, %v4100_v11 }
 0x1f1   :  { %v910_v58 = vpop.permute.xlu0 %909  ;;  %v927_v59 = vpop.permute.xlu1 %926  ;;  %v895_v22 = vsel %vm123_vm3, %v889_v39, %v894_v8  ;;  %v900_v43 = vadd.f32 %v896_v36, %v881_v27 }
 0x1f2   :  { %v912_v63 = vrot.slane %v910_v58, 2  ;;  %v930_v24 = vrot.slane %v927_v59, 2  ;;  %v899_v2 = vadd.f32 %v895_v22, %v880_v26  ;;  %v1724_v22 = vlaneseq }
 0x1f3   :  { %1556 = vrot.lane.b32.xlu0 %v1551_v53, %s3799_s16  ;;  %1573 = vrot.lane.b32.xlu1 %v1569_v57, %s3798_s15  ;;  %s4390_s16 = sld [smem:[#allocation6 + $0x34]] }
 0x1f4   :  { %v913_v17 = vsel %vm81_vm0, %v911_v31, %v912_v63  ;;  %v915_v28 = vsel %vm148_vm4, %v910_v58, %v912_v63 }
 0x1f5   :  { %v929_v9 = vpop.permute.xlu0 %928  ;;  %v946_v10 = vpop.permute.xlu1 %945  ;;  %v914_v35 = vsel %vm148_vm4, %v908_v47, %v913_v17  ;;  %v919_v49 = vadd.f32 %v915_v28, %v900_v43  ;;  %v1722_v17 = vunpack.c.l.s4 %v3806_v20 }
 0x1f6   :  { %v931_v16 = vrot.slane %v929_v9, 2  ;;  %v949_v38 = vrot.slane %v946_v10, 2  ;;  %v918_v48 = vadd.f32 %v914_v35, %v899_v2 }
 0x1f7   :  { %1575 = vrot.lane.b32.xlu0 %v1570_v1, %s3798_s15  ;;  %1592 = vrot.lane.b32.xlu1 %v1588_v12, %s3800_s18  ;;  %s4404_s15 = sld [smem:[#allocation6 + $0x35]] }
 0x1f8   :  { %v932_v37 = vsel %vm81_vm0, %v930_v24, %v931_v16  ;;  %v934_v45 = vsel %vm174_vm5, %v929_v9, %v931_v16  ;;  %v1646_v9 = vmul.f32 %v1644_v21, %v4103_v18 }
 0x1f9   :  { %v948_v29 = vpop.permute.xlu0 %947  ;;  %v965_v30 = vpop.permute.xlu1 %964  ;;  %v933_v50 = vsel %vm174_vm5, %v927_v59, %v932_v37  ;;  %v938_v55 = vadd.f32 %v934_v45, %v919_v49  ;;  %v1663_v60 = vstv %s4390_s16 }
 0x1fa   :  { %v3670_v34 = vpop.eup %3669  ;;  %v950_v39 = vrot.slane %v948_v29, 2  ;;  %v968_v53 = vrot.slane %v965_v30, 2  ;;  %v937_v58 = vadd.f32 %v933_v50, %v918_v48  ;;  %v1664_v13 = vmul.f32 %v1663_v60, %v4100_v11 }
 0x1fb   :  { %v3672_v41 = vpop.eup %3671  ;;  %v831_v40 = vadd.f32 1.0, %v3670_v34  ;;  %1594 = vrot.lane.b32.xlu0 %v1589_v25, %s3800_s18  ;;  %1611 = vrot.lane.b32.xlu1 %v1607_v32, %s3801_s22  ;;  %v1665_v26 = vmul.f32 %v1663_v60, %v4103_v18  ;;  %v1723_v32 = vunpack.c.0.s8 %v1722_v17  ;;  %v1725_v34 = vshrl.u32 %v1724_v22, 7  ;;  %s4452_s18 = sld [smem:[#allocation6 + $0x12]] }
 0x1fc   :  { %v951_v46 = vsel %vm81_vm0, %v949_v38, %v950_v39  ;;  %v830_v47 = vadd.f32 1.0, %v3672_v41  ;;  %v953_v52 = vsel %vm200_vm6, %v948_v29, %v950_v39 }
 0x1fd   :  { %3673 = vlog2.f32 %v831_v40  ;;  %v967_v51 = vpop.permute.xlu0 %966  ;;  %v984_v42 = vpop.permute.xlu1 %983  ;;  %v952_v56 = vsel %vm200_vm6, %v946_v10, %v951_v46  ;;  %v957_v61 = vadd.f32 %v953_v52, %v938_v55  ;;  %v1682_v21 = vstv %s4404_s15 }
 0x1fe   :  { %v969_v54 = vrot.slane %v967_v51, 2  ;;  %3675 = vlog2.f32 %v830_v47  ;;  %v956_v7 = vadd.f32 %v952_v56, %v937_v58  ;;  %v987_v3 = vrot.slane %v984_v42, 2  ;;  %v2016_v58 = vld [vmem:[#allocation8 + $0x170] sm:$0x3] }
 0x1ff   :  { %1613 = vrot.lane.b32.xlu0 %v1608_v4, %s3801_s22  ;;  %1630 = vrot.lane.b32.xlu1 %v1626_v44, %s3802_s24  ;;  %v821_v40 = vmax.f32 %v4325_v23, 0.0  ;;  %v1684_v46 = vmul.f32 %v1682_v21, %v4103_v18  ;;  %v820_v44 = vmax.f32 %v4334_v33, 0.0  ;;  %v4448_v47 = vsub.s32 %v1723_v32, %v1725_v34  ;;  %s4518_s22 = sld [smem:[#allocation6 + $0x1b]] }
 0x200   :  { %v970_v57 = vsel %vm81_vm0, %v968_v53, %v969_v54  ;;  %v972_v59 = vsel %vm226_vm7, %v967_v51, %v969_v54 }
 0x201   :  { %v971_v62 = vsel %vm226_vm7, %v965_v30, %v970_v57  ;;  %v986_v63 = vpop.permute.xlu0 %985  ;;  %v4413_v0 = vpop.permute.xlu1 %1026  ;;  %v976_v31 = vadd.f32 %v972_v59, %v957_v61  ;;  %v1683_v30 = vmul.f32 %v1682_v21, %v4100_v11 }
 0x202   :  { %v988_v8 = vrot.slane %v986_v63, 2  ;;  %v975_v10 = vadd.f32 %v971_v62, %v956_v7  ;;  %v1030_v53 = vrot.slane %v4413_v0, 2 }
 0x203   :  { %1632 = vrot.lane.b32.xlu0 %v1627_v5, %s3802_s24  ;;  %1649 = vrot.lane.b32.xlu1 %v1645_v6, %s3803_s26  ;;  %s4592_s24 = sld [smem:[#allocation6 + $0x24]] }
 0x204   :  { %v989_v1 = vsel %vm81_vm0, %v987_v3, %v988_v8  ;;  %v991_v12 = vsel %vm252_vm8, %v986_v63, %v988_v8  ;;  %v1015_v63 = vstv %s4452_s18  ;;  %v1975_v3 = vld [vmem:[#allocation8 + $0x28] sm:$0xff]  ;;  %v2018_v8 = vld [vmem:[#allocation8 + $0x180] sm:$0x3] }
 0x205   :  { %v990_v15 = vsel %vm252_vm8, %v984_v42, %v989_v1  ;;  %v4424_v16 = vadd.f32 %v991_v12, %v976_v31  ;;  %v1029_v19 = vpop.permute.xlu0 %1028  ;;  %v4426_v14 = vpop.permute.xlu1 %1045  ;;  %v1017_v31 = vmul.f32 %v1015_v63, %v4103_v18  ;;  %v1016_v20 = vmul.f32 %v1015_v63, %v4100_v11 }
 0x206   :  { %v4428_v36 = vadd.f32 %v990_v15, %v975_v10  ;;  %v1031_v49 = vrot.slane %v1029_v19, 2  ;;  %v1049_v59 = vrot.slane %v4426_v14, 2  ;;  %v1977_v10 = vld [vmem:[#allocation8 + $0x38] sm:$0xff] }
 0x207   :  { %v999_v24 = vand.u32 2147483647, %v4424_v16  ;;  %1651 = vrot.lane.b32.xlu0 %v1646_v9, %s3803_s26  ;;  %1668 = vrot.lane.b32.xlu1 %v1664_v13, %s3804_s2  ;;  %s4648_s26 = sld [smem:[#allocation6 + $0x2d]] }
 0x208   :  { %v998_v25 = vand.u32 2147483647, %v4428_v36  ;;  %v1032_v57 = vsel %vm81_vm0, %v1030_v53, %v1031_v49  ;;  %v1034_v5 = vsel %vm83_vm1, %v1029_v19, %v1031_v49  ;;  %v1974_v19 = vld [vmem:[#allocation8 + $0x20] sm:$0xff] }
 0x209   :  { %v1001_v27 = vsub.f32 0.0, %v999_v24  ;;  %v1048_v28 = vpop.permute.xlu0 %1047  ;;  %v4436_v29 = vpop.permute.xlu1 %1064  ;;  %v1033_v1 = vsel %vm83_vm1, %v4413_v0, %v1032_v57  ;;  %v1038_v17 = vadd.f32 %v1034_v5, %v1017_v31  ;;  %v2021_v24 = vld [vmem:[#allocation8 + $0x198] sm:$0x3] }
 0x20a   :  { %v3674_v35 = vpop.eup %3673  ;;  %v1000_v37 = vsub.f32 0.0, %v998_v25  ;;  %v1050_v54 = vrot.slane %v1048_v28, 2  ;;  %v1068_v13 = vrot.slane %v4436_v29, 2 }
 0x20b   :  { %v3676_v38 = vpop.eup %3675  ;;  %v835_v39 = vmul.f32 0.6931472, %v3674_v35  ;;  %v1004_v41 = vmul.f32 1.442695, %v1001_v27  ;;  %1670 = vrot.lane.b32.xlu0 %v1665_v26, %s3804_s2  ;;  %1687 = vrot.lane.b32.xlu1 %v1683_v30, %s3805_s6  ;;  %v1976_v30 = vld [vmem:[#allocation8 + $0x30] sm:$0xff]  ;;  %v1037_v35 = vadd.f32 %v1033_v1, %v1016_v20 }
 0x20c   :  { %v1002_v2 = vmul.f32 1.442695, %v1000_v37  ;;  %v833_v43 = vmul.f32 0.6931472, %v3676_v38  ;;  %v1051_v9 = vsel %vm81_vm0, %v1049_v59, %v1050_v54  ;;  %v1053_v12 = vsel %vm103_vm2, %v1048_v28, %v1050_v54  ;;  %v1978_v59 = vld [vmem:[#allocation8 + $0x40] sm:$0xff] }
 0x20d   :  { %3677 = vpow2.f32 %v1004_v41  ;;  %v4442_v4 = vpop.permute.xlu0 %1066  ;;  %v4444_v45 = vpop.permute.xlu1 %1083  ;;  %v4450_v48 = vadd.f32 %v835_v39, %v821_v40  ;;  %v1052_v0 = vsel %vm103_vm2, %v4426_v14, %v1051_v9  ;;  %v1057_v37 = vadd.f32 %v1053_v12, %v1038_v17  ;;  %v2023_v39 = vld [vmem:[#allocation8 + $0x1a8] sm:$0x3] }
 0x20e   :  { %3679 = vpow2.f32 %v1002_v2  ;;  %v836_v23 = vadd.f32 %v833_v43, %v820_v44  ;;  %v1069_v6 = vrot.slane %v4442_v4, 2  ;;  %v1087_v27 = vrot.slane %v4444_v45, 2  ;;  %v2020_v2 = vld [vmem:[#allocation8 + $0x190] sm:$0x3] }
 0x20f   :  { %1689 = vrot.lane.b32.xlu0 %v1684_v46, %s3805_s6  ;;  %v4462_v33 = vrot.slane %v4450_v48, %v4448_v47  ;;  %v1056_v46 = vadd.f32 %v1052_v0, %v1037_v35 }
 0x210   :  { %v1727_v42 = vrot.slane %v836_v23, %v4448_v47  ;;  %v1720_v52 = vcombine.high %v836_v23, %v836_v23  ;;  %v1070_v26 = vsel %vm81_vm0, %v1068_v13, %v1069_v6  ;;  %v1072_v38 = vsel %vm123_vm3, %v4442_v4, %v1069_v6  ;;  %v2025_v6 = vld [vmem:[#allocation8 + $0x1b8] sm:$0x3] }
 0x211   :  { %v4455_v50 = vpop.permute.xlu0 %1085  ;;  %v4457_v51 = vpop.permute.xlu1 %1102  ;;  %v1752_v7 = vcombine.high %v4462_v33, %v4462_v33  ;;  %v1071_v44 = vsel %vm123_vm3, %v4436_v29, %v1070_v26 }
 0x212   :  { %v1735_v55 = vcombine.high %v1727_v42, %v1727_v42  ;;  %v1734_v56 = vrot.slane %v1720_v52, %v4448_v47  ;;  %v1088_v15 = vrot.slane %v4455_v50, 2  ;;  %v1106_v14 = vrot.slane %v4457_v51, 2 }
 0x214   :  { %2125 = vmatprep.mubr.f32.mxu0 %v1735_v55  ;;  %v1736_v62 = vcombine.high %v1734_v56, %v1734_v56  ;;  %v1089_v41 = vsel %vm81_vm0, %v1087_v27, %v1088_v15  ;;  %v1091_v23 = vsel %vm148_vm4, %v4455_v50, %v1088_v15  ;;  %v1076_v55 = vadd.f32 %v1072_v38, %v1057_v37 }
 0x215   :  { %v4468_v60 = vpop.permute.xlu0 %1104  ;;  %v4470_v61 = vpop.permute.xlu1 %1121  ;;  %2126 = vmatmul.mubr.f32.vlgmr.msra.gmra.mxu0 %v1727_v42  ;;  %v1979_v42 = vld [vmem:[#allocation8 + $0x48] sm:$0xff]  ;;  %v1090_v29 = vsel %vm148_vm4, %v4444_v45, %v1089_v41  ;;  %v1075_v50 = vadd.f32 %v1071_v44, %v1056_v46  ;;  %v997_v37 = vmax.f32 %v4424_v16, 0.0  ;;  %v1191_v46 = vstv %s4518_s22 }
 0x216   :  { %2230 = vmatpush1.xpose.msra.mxu0 %v2016_v58  ;;  %2195 = vmatprep.mubr.f32.mxu1 %v1736_v62  ;;  %v1107_v28 = vrot.slane %v4468_v60, 2  ;;  %v1125_v53 = vrot.slane %v4470_v61, 2  ;;  %v1095_v62 = vadd.f32 %v1091_v23, %v1076_v55  ;;  %v1193_v16 = vmul.f32 %v1191_v46, %v4103_v18 }
 0x217   :  { %2265 = vmatprep.mubr.f32.mxu0 %v1752_v7  ;;  %2196 = vmatmul.mubr.f32.vlgmr.msra.gmra.mxu1 %v1734_v56  ;;  %v1094_v7 = vadd.f32 %v1090_v29, %v1075_v50 }
 0x218   :  { %2231 = vmatprep.subr.mxu0 %v1975_v3  ;;  %2300 = vmatpush1.xpose.msra.mxu1 %v2018_v8  ;;  %v1108_v52 = vsel %vm81_vm0, %v1106_v14, %v1107_v28  ;;  %v1110_v56 = vsel %vm174_vm5, %v4468_v60, %v1107_v28 }
 0x219   :  { %v1124_v22 = vpop.permute.xlu0 %1123  ;;  %v1141_v21 = vpop.permute.xlu1 %1140  ;;  %2301 = vmatprep.subr.mxu1 %v1977_v10  ;;  %v1114_v8 = vadd.f32 %v1110_v56, %v1095_v62 }
 0x21a   :  { %v3678_v25 = vpop.eup %3677  ;;  %2232 = vmatpush1.xpose.msra.mxu0 %v1974_v19  ;;  %v1126_v40 = vrot.slane %v1124_v22, 2  ;;  %v1144_v57 = vrot.slane %v1141_v21, 2 }
 0x21b   :  { %v3680_v32 = vpop.eup %3679  ;;  %v1007_v34 = vadd.f32 1.0, %v3678_v25  ;;  %2369 = vmatprep.subr.mxu0 %v2021_v24 }
 0x21c   :  { %v1006_v43 = vadd.f32 1.0, %v3680_v32  ;;  %2302 = vmatpush1.xpose.msra.mxu1 %v1976_v30  ;;  %v1127_v58 = vsel %vm81_vm0, %v1125_v53, %v1126_v40  ;;  %v1129_v45 = vsel %vm200_vm6, %v1124_v22, %v1126_v40  ;;  %v996_v40 = vmax.f32 %v4428_v36, 0.0 }
 0x21d   :  { %3681 = vlog2.f32 %v1007_v34  ;;  %v1143_v49 = vpop.permute.xlu0 %1142  ;;  %v4498_v4 = vpop.permute.xlu1 %1202  ;;  %2266 = vmatmul.mubr.f32.vlgmr.msra.gmra.mxu0 %v4462_v33  ;;  %2439 = vmatprep.subr.mxu1 %v2023_v39  ;;  %v1109_v33 = vsel %vm174_vm5, %v4457_v51, %v1108_v52  ;;  %v1128_v60 = vsel %vm200_vm6, %v4470_v61, %v1127_v58  ;;  %v1133_v10 = vadd.f32 %v1129_v45, %v1114_v8 }
 0x21e   :  { %v1145_v54 = vrot.slane %v1143_v49, 2  ;;  %3683 = vlog2.f32 %v1006_v43  ;;  %2370 = vmatpush1.xpose.msra.mxu0 %v2020_v2  ;;  %v1113_v31 = vadd.f32 %v1109_v33, %v1094_v7  ;;  %v1737_v2 = vcombine.high %v4450_v48, %v4450_v48 }
 0x21f   :  { %2371 = vmatprep.subr.mxu0 %v1979_v42  ;;  %v1206_v43 = vrot.slane %v4498_v4, 2  ;;  %v1192_v8 = vmul.f32 %v1191_v46, %v4100_v11 }
 0x220   :  { %v1146_v3 = vsel %vm81_vm0, %v1144_v57, %v1145_v54  ;;  %v1148_v9 = vsel %vm226_vm7, %v1143_v49, %v1145_v54  ;;  %v1132_v13 = vadd.f32 %v1128_v60, %v1113_v31  ;;  %v1751_v58 = vrot.slane %v1737_v2, %v4448_v47  ;;  %v2022_v57 = vld [vmem:[#allocation8 + $0x1a0] sm:$0x3] }
 0x221   :  { %v1205_v63 = vpop.permute.xlu0 %1204  ;;  %v1160_v5 = vpop.permute.xlu1 %1159  ;;  %v1147_v51 = vsel %vm226_vm7, %v1141_v21, %v1146_v3  ;;  %v1152_v20 = vadd.f32 %v1148_v9, %v1133_v10 }
 0x222   :  { %2372 = vmatpush1.xpose.msra.mxu0 %v1978_v59  ;;  %v1163_v15 = vrot.slane %v1160_v5, 2  ;;  %v1151_v17 = vadd.f32 %v1147_v51, %v1132_v13  ;;  %v1207_v38 = vrot.slane %v1205_v63, 2 }
 0x223   :  { %2509 = vmatprep.subr.mxu0 %v2025_v6 }
 0x224   :  { %v1208_v54 = vsel %vm81_vm0, %v1206_v43, %v1207_v38  ;;  %v1210_v50 = vsel %vm83_vm1, %v1205_v63, %v1207_v38 }
 0x225   :  { %v1162_v1 = vpop.permute.xlu0 %1161  ;;  %v4516_v12 = vpop.permute.xlu1 %1221  ;;  %v1209_v7 = vsel %vm83_vm1, %v4498_v4, %v1208_v54 }
 0x226   :  { %v1164_v19 = vrot.slane %v1162_v1, 2  ;;  %v1225_v55 = vrot.slane %v4516_v12, 2 }
 0x228   :  { %v1165_v61 = vsel %vm81_vm0, %v1163_v15, %v1164_v19  ;;  %v1167_v22 = vsel %vm252_vm8, %v1162_v1, %v1164_v19  ;;  %v2024_v15 = vld [vmem:[#allocation8 + $0x1b0] sm:$0x3]  ;;  %v1213_v19 = vadd.f32 %v1209_v7, %v1192_v8  ;;  %v2031_v8 = vld [vmem:[#allocation8 + $0x1e8] sm:$0x3] }
 0x229   :  { %v1166_v24 = vsel %vm252_vm8, %v1160_v5, %v1165_v61  ;;  %v4523_v25 = vadd.f32 %v1167_v22, %v1152_v20  ;;  %v1224_v0 = vpop.permute.xlu0 %1223  ;;  %v4525_v21 = vpop.permute.xlu1 %1240  ;;  %v1981_v5 = vld [vmem:[#allocation8 + $0x58] sm:$0xff]  ;;  %v1214_v20 = vadd.f32 %v1210_v50, %v1193_v16  ;;  %v1980_v61 = vld [vmem:[#allocation8 + $0x50] sm:$0xff]  ;;  %v1983_v22 = vld [vmem:[#allocation8 + $0x68] sm:$0xff] }
 0x22a   :  { %v3682_v26 = vpop.eup %3681  ;;  %v4527_v27 = vadd.f32 %v1166_v24, %v1151_v17  ;;  %v1226_v49 = vrot.slane %v1224_v0, 2  ;;  %v1244_v45 = vrot.slane %v4525_v21, 2 }
 0x22b   :  { %v3684_v28 = vpop.eup %3683  ;;  %v1175_v30 = vand.u32 2147483647, %v4523_v25  ;;  %v1011_v32 = vmul.f32 0.6931472, %v3682_v26  ;;  %v2027_v26 = vld [vmem:[#allocation8 + $0x1c8] sm:$0x3] }
 0x22c   :  { %v1174_v34 = vand.u32 2147483647, %v4527_v27  ;;  %v1009_v35 = vmul.f32 0.6931472, %v3684_v28  ;;  %v1227_v59 = vsel %vm81_vm0, %v1225_v55, %v1226_v49  ;;  %v1229_v60 = vsel %vm103_vm2, %v1224_v0, %v1226_v49 }
 0x22d   :  { %v1177_v39 = vsub.f32 0.0, %v1175_v30  ;;  %v1243_v41 = vpop.permute.xlu0 %1242  ;;  %v4532_v14 = vpop.permute.xlu1 %1259  ;;  %v1013_v52 = vadd.f32 %v1011_v32, %v997_v37  ;;  %v1228_v51 = vsel %vm103_vm2, %v4516_v12, %v1227_v59  ;;  %v1233_v30 = vadd.f32 %v1229_v60, %v1214_v20 }
 0x22e   :  { %v1176_v44 = vsub.f32 0.0, %v1174_v34  ;;  %v1012_v42 = vadd.f32 %v1009_v35, %v996_v40  ;;  %v1245_v56 = vrot.slane %v1243_v41, 2  ;;  %v1263_v1 = vrot.slane %v4532_v14, 2  ;;  %v1982_v40 = vld [vmem:[#allocation8 + $0x60] sm:$0xff] }
 0x22f   :  { %v1180_v23 = vmul.f32 1.442695, %v1177_v39  ;;  %v4549_v33 = vrot.slane %v1013_v52, %v4448_v47  ;;  %v1779_v6 = vcombine.high %v1013_v52, %v1013_v52  ;;  %v1232_v28 = vadd.f32 %v1228_v51, %v1213_v19  ;;  %v1985_v52 = vld [vmem:[#allocation8 + $0x78] sm:$0xff] }
 0x230   :  { %v1178_v53 = vmul.f32 1.442695, %v1176_v44  ;;  %v1769_v48 = vrot.slane %v1012_v42, %v4448_v47  ;;  %v1762_v62 = vcombine.high %v1012_v42, %v1012_v42  ;;  %v1246_v4 = vsel %vm81_vm0, %v1244_v45, %v1245_v56  ;;  %v2029_v44 = vld [vmem:[#allocation8 + $0x1d8] sm:$0x3] }
 0x231   :  { %3685 = vpow2.f32 %v1180_v23  ;;  %v1262_v36 = vpop.permute.xlu0 %1261  ;;  %v4542_v29 = vpop.permute.xlu1 %1278  ;;  %v1793_v17 = vrot.slane %v1779_v6, %v4448_v47  ;;  %v1248_v24 = vsel %vm123_vm3, %v1243_v41, %v1245_v56  ;;  %v1247_v32 = vsel %vm123_vm3, %v4525_v21, %v1246_v4  ;;  %v2026_v21 = vld [vmem:[#allocation8 + $0x1c0] sm:$0x3]  ;;  %v1987_v6 = vld [vmem:[#allocation8 + $0x88] sm:$0xff]  ;;  %v2033_v19 = vld [vmem:[#allocation8 + $0x1f8] sm:$0x3] }
 0x232   :  { %3687 = vpow2.f32 %v1178_v53  ;;  %2335 = vmatprep.mubr.f32.mxu1 %v1769_v48  ;;  %v1264_v63 = vrot.slane %v1262_v36, 2  ;;  %v1777_v3 = vcombine.high %v1769_v48, %v1769_v48  ;;  %v1776_v31 = vrot.slane %v1762_v62, %v4448_v47 }
 0x233   :  { %2336 = vmatmul.mubr.f32.vlgmr.msra.gmra.mxu1 %v1751_v58  ;;  %v1282_v12 = vrot.slane %v4542_v29, 2  ;;  %v1252_v2 = vadd.f32 %v1248_v24, %v1233_v30  ;;  %v1251_v23 = vadd.f32 %v1247_v32, %v1232_v28  ;;  %v1794_v53 = vcombine.high %v4549_v33, %v4549_v33 }
 0x234   :  { %2440 = vmatpush1.xpose.msra.mxu1 %v2022_v57  ;;  %2475 = vmatprep.mubr.f32.mxu1 %v4549_v33  ;;  %v1265_v0 = vsel %vm81_vm0, %v1263_v1, %v1264_v63  ;;  %v1267_v37 = vsel %vm148_vm4, %v1262_v36, %v1264_v63  ;;  %v1778_v46 = vcombine.high %v1776_v31, %v1776_v31  ;;  %v2028_v57 = vld [vmem:[#allocation8 + $0x1d0] sm:$0x3] }
 0x235   :  { %v1281_v9 = vpop.permute.xlu0 %1280  ;;  %v1298_v10 = vpop.permute.xlu1 %1297  ;;  %2441 = vmatprep.subr.mxu1 %v1981_v5  ;;  %2405 = vmatprep.mubr.f32.mxu0 %v1776_v31  ;;  %v1266_v43 = vsel %vm148_vm4, %v4532_v14, %v1265_v0  ;;  %v1271_v16 = vadd.f32 %v1267_v37, %v1252_v2 }
 0x236   :  { %v1283_v13 = vrot.slane %v1281_v9, 2  ;;  %2406 = vmatmul.mubr.f32.vlgmr.msra.gmra.mxu0 %v1777_v3  ;;  %v1301_v39 = vrot.slane %v1298_v10, 2  ;;  %v1270_v48 = vadd.f32 %v1266_v43, %v1251_v23 }
 0x237   :  { %2510 = vmatpush1.xpose.msra.mxu0 %v2024_v15  ;;  %2545 = vmatprep.mubr.f32.mxu0 %v1793_v17 }
 0x238   :  { %v1284_v38 = vsel %vm81_vm0, %v1282_v12, %v1283_v13  ;;  %2442 = vmatpush1.xpose.msra.mxu1 %v1980_v61  ;;  %2511 = vmatprep.subr.mxu0 %v1983_v22  ;;  %v1286_v49 = vsel %vm174_vm5, %v1281_v9, %v1283_v13  ;;  %v1986_v13 = vld [vmem:[#allocation8 + $0x80] sm:$0xff] }
 0x239   :  { %v1300_v34 = vpop.permute.xlu0 %1299  ;;  %v1317_v35 = vpop.permute.xlu1 %1316  ;;  %2579 = vmatprep.subr.mxu1 %v2027_v26  ;;  %v1285_v54 = vsel %vm174_vm5, %v4542_v29, %v1284_v38  ;;  %v1290_v5 = vadd.f32 %v1286_v49, %v1271_v16  ;;  %v1984_v29 = vld [vmem:[#allocation8 + $0x70] sm:$0xff] }
 0x23a   :  { %v1302_v41 = vrot.slane %v1300_v34, 2  ;;  %v1320_v56 = vrot.slane %v1317_v35, 2  ;;  %v1289_v7 = vadd.f32 %v1285_v54, %v1270_v48  ;;  %v1367_v48 = vstv %s4592_s24 }
 0x23b   :  { %2512 = vmatpush1.xpose.msra.mxu0 %v1982_v40  ;;  %2476 = vmatmul.mubr.f32.vlgmr.msra.gmra.mxu1 %v1778_v46 }
 0x23c   :  { %v1303_v42 = vsel %vm81_vm0, %v1301_v39, %v1302_v41  ;;  %v1305_v50 = vsel %vm200_vm6, %v1300_v34, %v1302_v41  ;;  %2580 = vmatpush1.xpose.msra.mxu1 %v2026_v21  ;;  %2649 = vmatprep.subr.mxu0 %v2029_v44  ;;  %v1173_v21 = vmax.f32 %v4523_v25, 0.0 }
 0x23d   :  { %v1319_v14 = vpop.permute.xlu0 %1318  ;;  %v1336_v55 = vpop.permute.xlu1 %1335  ;;  %v1304_v33 = vsel %vm200_vm6, %v1298_v10, %v1303_v42  ;;  %2581 = vmatprep.subr.mxu1 %v1985_v52  ;;  %v1309_v60 = vadd.f32 %v1305_v50, %v1290_v5  ;;  %v1172_v42 = vmax.f32 %v4527_v27, 0.0 }
 0x23e   :  { %v3686_v36 = vpop.eup %3685  ;;  %v1321_v58 = vrot.slane %v1319_v14, 2  ;;  %2546 = vmatmul.mubr.f32.vlgmr.msra.gmra.mxu0 %v1794_v53  ;;  %v1308_v4 = vadd.f32 %v1304_v33, %v1289_v7  ;;  %v1339_v10 = vrot.slane %v1336_v55, 2  ;;  %v1369_v33 = vmul.f32 %v1367_v48, %v4103_v18 }
 0x23f   :  { %v3688_v59 = vpop.eup %3687  ;;  %v1183_v62 = vadd.f32 1.0, %v3686_v36  ;;  %2650 = vmatpush1.xpose.msra.mxu0 %v2028_v57 }
 0x240   :  { %v1322_v45 = vsel %vm81_vm0, %v1320_v56, %v1321_v58  ;;  %v1324_v63 = vsel %vm226_vm7, %v1319_v14, %v1321_v58  ;;  %v1182_v3 = vadd.f32 1.0, %v3688_v59  ;;  %2582 = vmatpush1.xpose.msra.mxu1 %v1984_v29  ;;  %2651 = vmatprep.subr.mxu0 %v1987_v6  ;;  %v1368_v29 = vmul.f32 %v1367_v48, %v4100_v11 }
 0x241   :  { %3689 = vlog2.f32 %v1183_v62  ;;  %v1323_v31 = vsel %vm226_vm7, %v1317_v35, %v1322_v45  ;;  %v1338_v9 = vpop.permute.xlu0 %1337  ;;  %v1379_v51 = vpop.permute.xlu1 %1378  ;;  %v1328_v15 = vadd.f32 %v1324_v63, %v1309_v60  ;;  %2719 = vmatprep.subr.mxu1 %v2031_v8 }
 0x242   :  { %v1340_v1 = vrot.slane %v1338_v9, 2  ;;  %3691 = vlog2.f32 %v1182_v3  ;;  %v1327_v20 = vadd.f32 %v1323_v31, %v1308_v4  ;;  %v1382_v23 = vrot.slane %v1379_v51, 2 }
 0x243   :  { %2652 = vmatpush1.xpose.msra.mxu0 %v1986_v13 }
 0x244   :  { %v1341_v17 = vsel %vm81_vm0, %v1339_v10, %v1340_v1  ;;  %v1343_v61 = vsel %vm252_vm8, %v1338_v9, %v1340_v1  ;;  %2789 = vmatprep.subr.mxu0 %v2033_v19  ;;  %v2030_v10 = vld [vmem:[#allocation8 + $0x1e0] sm:$0x3] }
 0x245   :  { %v1342_v22 = vsel %vm252_vm8, %v1336_v55, %v1341_v17  ;;  %v4586_v24 = vadd.f32 %v1343_v61, %v1328_v15  ;;  %v1381_v0 = vpop.permute.xlu0 %1380  ;;  %v1398_v12 = vpop.permute.xlu1 %1397  ;;  %v1989_v17 = vld [vmem:[#allocation8 + $0x98] sm:$0xff] }
 0x246   :  { %v4588_v26 = vadd.f32 %v1342_v22, %v1327_v20  ;;  %v1383_v41 = vrot.slane %v1381_v0, 2  ;;  %v1401_v54 = vrot.slane %v1398_v12, 2 }
 0x247   :  { %v1351_v28 = vand.u32 2147483647, %v4586_v24 }
 0x248   :  { %v1350_v30 = vand.u32 2147483647, %v4588_v26  ;;  %v1384_v53 = vsel %vm81_vm0, %v1382_v23, %v1383_v41  ;;  %v1386_v56 = vsel %vm83_vm1, %v1381_v0, %v1383_v41 }
 0x249   :  { %v1353_v32 = vsub.f32 0.0, %v1351_v28  ;;  %v1400_v34 = vpop.permute.xlu0 %1399  ;;  %v1417_v35 = vpop.permute.xlu1 %1416  ;;  %v1385_v27 = vsel %vm83_vm1, %v1379_v51, %v1384_v53  ;;  %v1390_v51 = vadd.f32 %v1386_v56, %v1369_v33 }
 0x24a   :  { %v1352_v37 = vsub.f32 0.0, %v1350_v30  ;;  %v1402_v49 = vrot.slane %v1400_v34, 2  ;;  %v1420_v58 = vrot.slane %v1417_v35, 2  ;;  %v1389_v9 = vadd.f32 %v1385_v27, %v1368_v29  ;;  %v2034_v27 = vld [vmem:[#allocation8 + $0x200] sm:$0x3]  ;;  %v1993_v29 = vld [vmem:[#allocation8 + $0xb8] sm:$0xff] }
 0x24b   :  { %v1356_v38 = vmul.f32 1.442695, %v1353_v32 }
 0x24c   :  { %v1354_v39 = vmul.f32 1.442695, %v1352_v37  ;;  %v1403_v25 = vsel %vm81_vm0, %v1401_v54, %v1402_v49  ;;  %v1405_v8 = vsel %vm103_vm2, %v1400_v34, %v1402_v49 }
 0x24d   :  { %3693 = vpow2.f32 %v1356_v38  ;;  %v1419_v40 = vpop.permute.xlu0 %1418  ;;  %v1436_v2 = vpop.permute.xlu1 %1435  ;;  %v1404_v3 = vsel %vm103_vm2, %v1398_v12, %v1403_v25  ;;  %v1409_v22 = vadd.f32 %v1405_v8, %v1390_v51  ;;  %v1990_v25 = vld [vmem:[#allocation8 + $0xa0] sm:$0xff] }
 0x24e   :  { %v3690_v43 = vpop.eup %3689  ;;  %3695 = vpow2.f32 %v1354_v39  ;;  %v1421_v14 = vrot.slane %v1419_v40, 2  ;;  %v1439_v7 = vrot.slane %v1436_v2, 2  ;;  %v1408_v61 = vadd.f32 %v1404_v3, %v1389_v9  ;;  %v2032_v39 = vld [vmem:[#allocation8 + $0x1f0] sm:$0x3] }
 0x24f   :  { %v3692_v46 = vpop.eup %3691  ;;  %v1187_v44 = vmul.f32 0.6931472, %v3690_v43  ;;  %v1992_v9 = vld [vmem:[#allocation8 + $0xb0] sm:$0xff] }
 0x250   :  { %v1185_v52 = vmul.f32 0.6931472, %v3692_v46  ;;  %v1422_v6 = vsel %vm81_vm0, %v1420_v58, %v1421_v14  ;;  %v1424_v15 = vsel %vm123_vm3, %v1419_v40, %v1421_v14 }
 0x251   :  { %v4596_v16 = vadd.f32 %v1187_v44, %v1173_v21  ;;  %v1438_v55 = vpop.permute.xlu0 %1437  ;;  %v4599_v36 = vpop.permute.xlu1 %1454  ;;  %v1423_v13 = vsel %vm123_vm3, %v1417_v35, %v1422_v6  ;;  %v1428_v46 = vadd.f32 %v1424_v15, %v1409_v22  ;;  %v1988_v21 = vld [vmem:[#allocation8 + $0x90] sm:$0xff]  ;;  %v1991_v44 = vld [vmem:[#allocation8 + $0xa8] sm:$0xff] }
 0x252   :  { %v1188_v50 = vadd.f32 %v1185_v52, %v1172_v42  ;;  %v1440_v57 = vrot.slane %v1438_v55, 2  ;;  %v1458_v19 = vrot.slane %v4599_v36, 2  ;;  %v1427_v43 = vadd.f32 %v1423_v13, %v1408_v61 }
 0x253   :  { %v4608_v5 = vrot.slane %v4596_v16, %v4448_v47 }
 0x254   :  { %v1811_v59 = vrot.slane %v1188_v50, %v4448_v47  ;;  %v1804_v62 = vcombine.high %v1188_v50, %v1188_v50  ;;  %v1441_v4 = vsel %vm81_vm0, %v1439_v7, %v1440_v57  ;;  %v1443_v0 = vsel %vm148_vm4, %v1438_v55, %v1440_v57 }
 0x255   :  { %v1457_v45 = vpop.permute.xlu0 %1456  ;;  %v1474_v63 = vpop.permute.xlu1 %1473  ;;  %v1836_v20 = vcombine.high %v4608_v5, %v4608_v5  ;;  %v1442_v34 = vsel %vm148_vm4, %v1436_v2, %v1441_v4  ;;  %v2035_v2 = vld [vmem:[#allocation8 + $0x208] sm:$0x3]  ;;  %v1447_v53 = vadd.f32 %v1443_v0, %v1428_v46  ;;  %v1348_v46 = vmax.f32 %v4588_v26, 0.0 }
 0x256   :  { %v1459_v60 = vrot.slane %v1457_v45, 2  ;;  %v1819_v31 = vcombine.high %v1811_v59, %v1811_v59  ;;  %v1818_v1 = vrot.slane %v1804_v62, %v4448_v47  ;;  %v1477_v37 = vrot.slane %v1474_v63, 2 }
 0x257   :  { %v1446_v52 = vadd.f32 %v1442_v34, %v1427_v43 }
 0x258   :  { %2615 = vmatprep.mubr.f32.mxu1 %v1819_v31  ;;  %v1820_v30 = vcombine.high %v1818_v1, %v1818_v1  ;;  %v1460_v35 = vsel %vm81_vm0, %v1458_v19, %v1459_v60  ;;  %v1462_v23 = vsel %vm174_vm5, %v1457_v45, %v1459_v60 }
 0x259   :  { %v1476_v12 = vpop.permute.xlu0 %1475  ;;  %v1493_v28 = vpop.permute.xlu1 %1492  ;;  %2616 = vmatmul.mubr.f32.vlgmr.msra.gmra.mxu1 %v1811_v59  ;;  %v1461_v54 = vsel %vm174_vm5, %v4599_v36, %v1460_v35  ;;  %v1466_v58 = vadd.f32 %v1462_v23, %v1447_v53  ;;  %v2037_v59 = vld [vmem:[#allocation8 + $0x218] sm:$0x3] }
 0x25a   :  { %v3694_v32 = vpop.eup %3693  ;;  %v1478_v38 = vrot.slane %v1476_v12, 2  ;;  %2720 = vmatpush1.xpose.msra.mxu1 %v2030_v10  ;;  %2755 = vmatprep.mubr.f32.mxu1 %v1836_v20  ;;  %v1496_v50 = vrot.slane %v1493_v28, 2  ;;  %v1465_v62 = vadd.f32 %v1461_v54, %v1446_v52 }
 0x25b   :  { %v3696_v41 = vpop.eup %3695  ;;  %v1359_v40 = vadd.f32 1.0, %v3694_v32  ;;  %2685 = vmatprep.mubr.f32.mxu0 %v1820_v30  ;;  %2721 = vmatprep.subr.mxu1 %v1989_v17 }
 0x25c   :  { %v1479_v49 = vsel %vm81_vm0, %v1477_v37, %v1478_v38  ;;  %2686 = vmatmul.mubr.f32.vlgmr.msra.gmra.mxu0 %v1818_v1  ;;  %v1358_v42 = vadd.f32 1.0, %v3696_v41  ;;  %v1481_v48 = vsel %vm200_vm6, %v1476_v12, %v1478_v38  ;;  %v2039_v1 = vld [vmem:[#allocation8 + $0x228] sm:$0x3]  ;;  %v1349_v37 = vmax.f32 %v4586_v24, 0.0 }
 0x25d   :  { %3697 = vlog2.f32 %v1359_v40  ;;  %v1495_v14 = vpop.permute.xlu0 %1494  ;;  %v1512_v55 = vpop.permute.xlu1 %1511  ;;  %2790 = vmatpush1.xpose.msra.mxu0 %v2032_v39  ;;  %v1480_v57 = vsel %vm200_vm6, %v1474_v63, %v1479_v49  ;;  %v1485_v6 = vadd.f32 %v1481_v48, %v1466_v58 }
 0x25e   :  { %v1497_v56 = vrot.slane %v1495_v14, 2  ;;  %2722 = vmatpush1.xpose.msra.mxu1 %v1988_v21  ;;  %2791 = vmatprep.subr.mxu0 %v1991_v44  ;;  %3699 = vlog2.f32 %v1358_v42  ;;  %v1484_v8 = vadd.f32 %v1480_v57, %v1465_v62  ;;  %v1515_v63 = vrot.slane %v1512_v55, 2 }
 0x25f   :  { %2859 = vmatprep.subr.mxu1 %v2035_v2  ;;  %v1821_v21 = vcombine.high %v4596_v16, %v4596_v16  ;;  %v1543_v42 = vstv %s4648_s26 }
 0x260   :  { %v1498_v36 = vsel %vm81_vm0, %v1496_v50, %v1497_v56  ;;  %v1500_v33 = vsel %vm226_vm7, %v1495_v14, %v1497_v56  ;;  %v1545_v16 = vmul.f32 %v1543_v42, %v4103_v18  ;;  %v2036_v56 = vld [vmem:[#allocation8 + $0x210] sm:$0x3] }
 0x261   :  { %v1499_v7 = vsel %vm226_vm7, %v1493_v28, %v1498_v36  ;;  %2756 = vmatmul.mubr.f32.vlgmr.msra.gmra.mxu1 %v4608_v5  ;;  %v1514_v45 = vpop.permute.xlu0 %1513  ;;  %v4635_v3 = vpop.permute.xlu1 %1554  ;;  %2792 = vmatpush1.xpose.msra.mxu0 %v1990_v25  ;;  %v1504_v31 = vadd.f32 %v1500_v33, %v1485_v6  ;;  %v1835_v50 = vrot.slane %v1821_v21, %v4448_v47  ;;  %v1995_v6 = vld [vmem:[#allocation8 + $0xc8] sm:$0xff] }
 0x262   :  { %v1516_v60 = vrot.slane %v1514_v45, 2  ;;  %2860 = vmatpush1.xpose.msra.mxu1 %v2034_v27  ;;  %2929 = vmatprep.subr.mxu0 %v2037_v59  ;;  %v1503_v51 = vadd.f32 %v1499_v7, %v1484_v8  ;;  %v1558_v23 = vrot.slane %v4635_v3, 2  ;;  %v1544_v7 = vmul.f32 %v1543_v42, %v4100_v11 }
 0x263   :  { %2861 = vmatprep.subr.mxu1 %v1993_v29  ;;  %v2038_v29 = vld [vmem:[#allocation8 + $0x220] sm:$0x3] }
 0x264   :  { %v1517_v4 = vsel %vm81_vm0, %v1515_v63, %v1516_v60  ;;  %v1519_v10 = vsel %vm252_vm8, %v1514_v45, %v1516_v60 }
 0x265   :  { %v1518_v5 = vsel %vm252_vm8, %v1512_v55, %v1517_v4  ;;  %v4640_v13 = vadd.f32 %v1519_v10, %v1504_v31  ;;  %v1557_v15 = vpop.permute.xlu0 %1556  ;;  %v4642_v19 = vpop.permute.xlu1 %1573  ;;  %v1994_v4 = vld [vmem:[#allocation8 + $0xc0] sm:$0xff] }
 0x266   :  { %v4644_v20 = vadd.f32 %v1518_v5, %v1503_v51  ;;  %2862 = vmatpush1.xpose.msra.mxu1 %v1992_v9  ;;  %v1559_v41 = vrot.slane %v1557_v15, 2  ;;  %v1577_v24 = vrot.slane %v4642_v19, 2  ;;  %v2041_v5 = vld [vmem:[#allocation8 + $0x238] sm:$0x3] }
 0x267   :  { %v1527_v17 = vand.u32 2147483647, %v4640_v13  ;;  %2999 = vmatprep.subr.mxu1 %v2039_v1 }
 0x268   :  { %v1526_v61 = vand.u32 2147483647, %v4644_v20  ;;  %v1560_v52 = vsel %vm81_vm0, %v1558_v23, %v1559_v41  ;;  %v1562_v36 = vsel %vm83_vm1, %v1557_v15, %v1559_v41 }
 0x269   :  { %v1529_v22 = vsub.f32 0.0, %v1527_v17  ;;  %v1576_v0 = vpop.permute.xlu0 %1575  ;;  %v4650_v12 = vpop.permute.xlu1 %1592  ;;  %v1561_v62 = vsel %vm83_vm1, %v4635_v3, %v1560_v52  ;;  %v1997_v3 = vld [vmem:[#allocation8 + $0xd8] sm:$0xff]  ;;  %v1566_v1 = vadd.f32 %v1562_v36, %v1545_v16 }
 0x26a   :  { %v3698_v28 = vpop.eup %3697  ;;  %v1528_v30 = vsub.f32 0.0, %v1526_v61  ;;  %v1578_v49 = vrot.slane %v1576_v0, 2  ;;  %v1596_v57 = vrot.slane %v4650_v12, 2  ;;  %v1565_v10 = vadd.f32 %v1561_v62, %v1544_v7  ;;  %v1996_v61 = vld [vmem:[#allocation8 + $0xd0] sm:$0xff]  ;;  %v2001_v16 = vld [vmem:[#allocation8 + $0xf8] sm:$0xff] }
 0x26b   :  { %v3700_v32 = vpop.eup %3699  ;;  %v1532_v34 = vmul.f32 1.442695, %v1529_v22  ;;  %v1363_v35 = vmul.f32 0.6931472, %v3698_v28  ;;  %v2047_v7 = vld [vmem:[#allocation8 + $0x268] sm:$0x3] }
 0x26c   :  { %v1530_v38 = vmul.f32 1.442695, %v1528_v30  ;;  %v1361_v39 = vmul.f32 0.6931472, %v3700_v32  ;;  %v1579_v58 = vsel %vm81_vm0, %v1577_v24, %v1578_v49  ;;  %v1581_v45 = vsel %vm103_vm2, %v1576_v0, %v1578_v49  ;;  %v2042_v24 = vld [vmem:[#allocation8 + $0x240] sm:$0x3] }
 0x26d   :  { %3701 = vpow2.f32 %v1532_v34  ;;  %v1595_v40 = vpop.permute.xlu0 %1594  ;;  %v1612_v43 = vpop.permute.xlu1 %1611  ;;  %v1365_v44 = vadd.f32 %v1363_v35, %v1349_v37  ;;  %v1580_v31 = vsel %vm103_vm2, %v4642_v19, %v1579_v58  ;;  %v1585_v0 = vadd.f32 %v1581_v45, %v1566_v1  ;;  %v2043_v35 = vld [vmem:[#allocation8 + $0x248] sm:$0x3] }
 0x26e   :  { %3703 = vpow2.f32 %v1530_v38  ;;  %v1364_v2 = vadd.f32 %v1361_v39, %v1348_v46  ;;  %v1597_v53 = vrot.slane %v1595_v40, 2  ;;  %v1615_v33 = vrot.slane %v1612_v43, 2 }
 0x26f   :  { %v1863_v25 = vcombine.high %v1365_v44, %v1365_v44  ;;  %v4672_v18 = vrot.slane %v1365_v44, %v4448_v47  ;;  %v1584_v22 = vadd.f32 %v1580_v31, %v1565_v10 }
 0x270   :  { %v1853_v26 = vrot.slane %v1364_v2, %v4448_v47  ;;  %v1846_v55 = vcombine.high %v1364_v2, %v1364_v2  ;;  %v1598_v8 = vsel %vm81_vm0, %v1596_v57, %v1597_v53  ;;  %v1600_v17 = vsel %vm123_vm3, %v1595_v40, %v1597_v53  ;;  %v2040_v40 = vld [vmem:[#allocation8 + $0x230] sm:$0x3] }
 0x271   :  { %v1614_v54 = vpop.permute.xlu0 %1613  ;;  %v4660_v14 = vpop.permute.xlu1 %1630  ;;  %v1877_v11 = vrot.slane %v1863_v25, %v4448_v47  ;;  %v1599_v15 = vsel %vm123_vm3, %v4650_v12, %v1598_v8  ;;  %v1604_v23 = vadd.f32 %v1600_v17, %v1585_v0  ;;  %v1878_v49 = vcombine.high %v4672_v18, %v4672_v18  ;;  %v1998_v25 = vld [vmem:[#allocation8 + $0xe0] sm:$0xff] }
 0x272   :  { %v1616_v48 = vrot.slane %v1614_v54, 2  ;;  %v1861_v27 = vcombine.high %v1853_v26, %v1853_v26  ;;  %2825 = vmatprep.mubr.f32.mxu0 %v1853_v26  ;;  %v1860_v59 = vrot.slane %v1846_v55, %v4448_v47  ;;  %v1634_v19 = vrot.slane %v4660_v14, 2 }
 0x273   :  { %2826 = vmatmul.mubr.f32.vlgmr.msra.gmra.mxu0 %v1835_v50  ;;  %v1603_v44 = vadd.f32 %v1599_v15, %v1584_v22 }
 0x274   :  { %2930 = vmatpush1.xpose.msra.mxu0 %v2036_v56  ;;  %2895 = vmatprep.mubr.f32.mxu1 %v1860_v59  ;;  %v1617_v9 = vsel %vm81_vm0, %v1615_v33, %v1616_v48  ;;  %v1619_v30 = vsel %vm148_vm4, %v1614_v54, %v1616_v48  ;;  %v1862_v38 = vcombine.high %v1860_v59, %v1860_v59  ;;  %v2045_v59 = vld [vmem:[#allocation8 + $0x258] sm:$0x3]  ;;  %v2000_v33 = vld [vmem:[#allocation8 + $0xf0] sm:$0xff] }
 0x275   :  { %v1633_v63 = vpop.permute.xlu0 %1632  ;;  %v4677_v60 = vpop.permute.xlu1 %1649  ;;  %2965 = vmatprep.mubr.f32.mxu0 %v4672_v18  ;;  %2896 = vmatmul.mubr.f32.vlgmr.msra.gmra.mxu1 %v1861_v27  ;;  %v1618_v28 = vsel %vm148_vm4, %v1612_v43, %v1617_v9  ;;  %v1999_v43 = vld [vmem:[#allocation8 + $0xe8] sm:$0xff]  ;;  %v1623_v54 = vadd.f32 %v1619_v30, %v1604_v23  ;;  %v1524_v30 = vmax.f32 %v4644_v20, 0.0  ;;  %v2046_v20 = vld [vmem:[#allocation8 + $0x260] sm:$0x3] }
 0x276   :  { %v1635_v51 = vrot.slane %v1633_v63, 2  ;;  %3000 = vmatpush1.xpose.msra.mxu1 %v2038_v29  ;;  %2931 = vmatprep.subr.mxu0 %v1995_v6  ;;  %v1653_v39 = vrot.slane %v4677_v60, 2  ;;  %v1622_v53 = vadd.f32 %v1618_v28, %v1603_v44  ;;  %v2005_v44 = vld [vmem:[#allocation8 + $0x118] sm:$0xff]  ;;  %v2002_v23 = vld [vmem:[#allocation8 + $0x100] sm:$0xff] }
 0x277   :  { %3035 = vmatprep.mubr.f32.mxu1 %v1877_v11  ;;  %3001 = vmatprep.subr.mxu1 %v1997_v3 }
 0x278   :  { %2932 = vmatpush1.xpose.msra.mxu0 %v1994_v4  ;;  %v1636_v12 = vsel %vm81_vm0, %v1634_v19, %v1635_v51  ;;  %v1638_v2 = vsel %vm174_vm5, %v1633_v63, %v1635_v51 }
 0x279   :  { %v1652_v32 = vpop.permute.xlu0 %1651  ;;  %v1669_v34 = vpop.permute.xlu1 %1668  ;;  %3069 = vmatprep.subr.mxu0 %v2041_v5  ;;  %v1637_v26 = vsel %vm174_vm5, %v4660_v14, %v1636_v12  ;;  %v1642_v58 = vadd.f32 %v1638_v2, %v1623_v54  ;;  %v2007_v54 = vld [vmem:[#allocation8 + $0x128] sm:$0xff] }
 0x27a   :  { %v3702_v37 = vpop.eup %3701  ;;  %v1654_v41 = vrot.slane %v1652_v32, 2  ;;  %3002 = vmatpush1.xpose.msra.mxu1 %v1996_v61  ;;  %v1672_v50 = vrot.slane %v1669_v34, 2  ;;  %v1641_v62 = vadd.f32 %v1637_v26, %v1622_v53  ;;  %v1525_v61 = vmax.f32 %v4640_v13, 0.0  ;;  %v2048_v53 = vld [vmem:[#allocation8 + $0x270] sm:$0x3] }
 0x27b   :  { %v3704_v46 = vpop.eup %3703  ;;  %v1535_v21 = vadd.f32 1.0, %v3702_v37  ;;  %2966 = vmatmul.mubr.f32.vlgmr.msra.gmra.mxu0 %v1862_v38  ;;  %3139 = vmatprep.subr.mxu1 %v2043_v35 }
 0x27c   :  { %v1655_v42 = vsel %vm81_vm0, %v1653_v39, %v1654_v41  ;;  %v1534_v52 = vadd.f32 1.0, %v3704_v46  ;;  %3070 = vmatpush1.xpose.msra.mxu0 %v2040_v40  ;;  %v1657_v48 = vsel %vm200_vm6, %v1652_v32, %v1654_v41  ;;  %v2044_v40 = vld [vmem:[#allocation8 + $0x250] sm:$0x3] }
 0x27d   :  { %3705 = vlog2.f32 %v1535_v21  ;;  %v1671_v55 = vpop.permute.xlu0 %1670  ;;  %3036 = vmatmul.mubr.f32.vlgmr.msra.gmra.mxu1 %v1878_v49  ;;  %3071 = vmatprep.subr.mxu0 %v1999_v43  ;;  %v1656_v57 = vsel %vm200_vm6, %v4677_v60, %v1655_v42  ;;  %v1688_v27 = vpop.permute.xlu1 %1687  ;;  %v1661_v18 = vadd.f32 %v1657_v48, %v1642_v58  ;;  %v2003_v21 = vld [vmem:[#allocation8 + $0x108] sm:$0xff]  ;;  %v2049_v43 = vld [vmem:[#allocation8 + $0x278] sm:$0x3]  ;;  %v2004_v49 = vld [vmem:[#allocation8 + $0x110] sm:$0xff] }
 0x27e   :  { %v1673_v56 = vrot.slane %v1671_v55, 2  ;;  %3707 = vlog2.f32 %v1534_v52  ;;  %3140 = vmatpush1.xpose.msra.mxu1 %v2042_v24  ;;  %v1660_v45 = vadd.f32 %v1656_v57, %v1641_v62  ;;  %v1691_v8 = vrot.slane %v1688_v27, 2  ;;  %v2051_v42 = vld [vmem:[#allocation8 + $0x288] sm:$0x3] }
 0x27f   :  { %3141 = vmatprep.subr.mxu1 %v2001_v16  ;;  %v2053_v16 = vld [vmem:[#allocation8 + $0x298] sm:$0x3] }
 0x280   :  { %v1674_v14 = vsel %vm81_vm0, %v1672_v50, %v1673_v56  ;;  %v1676_v36 = vsel %vm226_vm7, %v1671_v55, %v1673_v56  ;;  %3072 = vmatpush1.xpose.msra.mxu0 %v1998_v25  ;;  %v2006_v55 = vld [vmem:[#allocation8 + $0x120] sm:$0xff] }
 0x281   :  { %v1675_v29 = vsel %vm226_vm7, %v1669_v34, %v1674_v14  ;;  %v1690_v6 = vpop.permute.xlu0 %1689  ;;  %3209 = vmatprep.subr.mxu0 %v2045_v59  ;;  %v1680_v60 = vadd.f32 %v1676_v36, %v1661_v18  ;;  %v2050_v18 = vld [vmem:[#allocation8 + $0x280] sm:$0x3] }
 0x282   :  { %v1692_v63 = vrot.slane %v1690_v6, 2  ;;  %3142 = vmatpush1.xpose.msra.mxu1 %v2000_v33  ;;  %v1679_v3 = vadd.f32 %v1675_v29, %v1660_v45 }
 0x283   :  { %3279 = vmatprep.subr.mxu1 %v2047_v7 }
 0x284   :  { %v1693_v31 = vsel %vm81_vm0, %v1691_v8, %v1692_v63  ;;  %v1695_v9 = vsel %vm252_vm8, %v1690_v6, %v1692_v63  ;;  %v2052_v8 = vld [vmem:[#allocation8 + $0x290] sm:$0x3]  ;;  %v2009_v63 = vld [vmem:[#allocation8 + $0x138] sm:$0xff] }
 0x285   :  { %v1694_v51 = vsel %vm252_vm8, %v1688_v27, %v1693_v31  ;;  %v4707_v11 = vadd.f32 %v1695_v9, %v1680_v60  ;;  %v2011_v60 = vld [vmem:[#allocation8 + $0x148] sm:$0xff]  ;;  %v2008_v31 = vld [vmem:[#allocation8 + $0x130] sm:$0xff]  ;;  %v2010_v9 = vld [vmem:[#allocation8 + $0x140] sm:$0xff] }
 0x286   :  { %v4709_v4 = vadd.f32 %v1694_v51, %v1679_v3 }
 0x287   :  { %v1703_v10 = vand.u32 2147483647, %v4707_v11  ;;  %v1701_v56 = vmax.f32 %v4707_v11, 0.0 }
 0x288   :  { %v1702_v1 = vand.u32 2147483647, %v4709_v4  ;;  %v1700_v58 = vmax.f32 %v4709_v4, 0.0  ;;  %v3645_v4 = vld [vmem:[%s4735_s4] ss:$0 sm:$0xff]  ;;  %s3807_s4 = smov [#allocation9]  }
 0x289   :  { %v1705_v5 = vsub.f32 0.0, %v1703_v10  ;;  %s3549_s20 = sshll.u32 %s3807_s4, 4  ;;  %s3550_s20 = int_to_ptr.vmem [resolvable:$true] %s3549_s20 }
 0x28a   :  { %v3706_v15 = vpop.eup %3705  ;;  %v1704_v17 = vsub.f32 0.0, %v1702_v1  ;;  %s3765_s21 = scalar_lea.vmem %s3550_s20, 32  ;;  %p3770_p2 = scmp.lt.s32.totalorder %s3550_s20, %s3550_s20 }
 0x28b   :  { %v3708_v19 = vpop.eup %3707  ;;  %v1539_v22 = vmul.f32 0.6931472, %v3706_v15  ;;  %v1708_v0 = vmul.f32 1.442695, %v1705_v5  ;;  %p3766_p1 = scmp.ne.s32.totalorder %s3550_s20, %s3765_s21  ;;  %p3771_p3 = scmp.lt.s32.totalorder %s3765_s21, %s3765_s21 }
 0x28c   :  { %v1706_v28 = vmul.f32 1.442695, %v1704_v17  ;;  %v1537_v32 = vmul.f32 0.6931472, %v3708_v19 }
 0x28d   :  { %v1541_v34 = vadd.f32 %v1539_v22, %v1525_v61  ;;  %3709 = vpow2.f32 %v1708_v0  ;;  %p3772_p4 = por %p3771_p3, %p3770_p2 }
 0x28e   :  { %3711 = vpow2.f32 %v1706_v28  ;;  %v1540_v35 = vadd.f32 %v1537_v32, %v1524_v30 }
 0x28f   :  { %v1912_v12 = vrot.slane %v1541_v34, %v4448_v47  ;;  %v1905_v27 = vcombine.high %v1541_v34, %v1541_v34  ;;  %p3773_p5 = pnand %p3772_p4, %p3766_p1 }
 0x290   :  { %v1895_v37 = vrot.slane %v1540_v35, %v4448_v47  ;;  %v1888_v38 = vcombine.high %v1540_v35, %v1540_v35 }
 0x291   :  { %v1920_v46 = vcombine.high %v1912_v12, %v1912_v12  ;;  %v1919_v33 = vrot.slane %v1905_v27, %v4448_v47 }
 0x292   :  { %v1903_v39 = vcombine.high %v1895_v37, %v1895_v37  ;;  %v1902_v41 = vrot.slane %v1888_v38, %v4448_v47 }
 0x294   :  { %3105 = vmatprep.mubr.f32.mxu0 %v1903_v39  ;;  %v1904_v13 = vcombine.high %v1902_v41, %v1902_v41 }
 0x295   :  { %3106 = vmatmul.mubr.f32.vlgmr.msra.gmra.mxu0 %v1895_v37 }
 0x296   :  { %3210 = vmatpush1.xpose.msra.mxu0 %v2044_v40  ;;  %3175 = vmatprep.mubr.f32.mxu1 %v1904_v13 }
 0x297   :  { %3245 = vmatprep.mubr.f32.mxu0 %v1920_v46  ;;  %3176 = vmatmul.mubr.f32.vlgmr.msra.gmra.mxu1 %v1902_v41 }
 0x298   :  { %3211 = vmatprep.subr.mxu0 %v2003_v21  ;;  %3280 = vmatpush1.xpose.msra.mxu1 %v2046_v20 }
 0x299   :  { %3281 = vmatprep.subr.mxu1 %v2005_v44 }
 0x29a   :  { %v3710_v2 = vpop.eup %3709  ;;  %3212 = vmatpush1.xpose.msra.mxu0 %v2002_v23 }
 0x29b   :  { %v3712_v24 = vpop.eup %3711  ;;  %v1711_v52 = vadd.f32 1.0, %v3710_v2  ;;  %3349 = vmatprep.subr.mxu0 %v2049_v43 }
 0x29c   :  { %3282 = vmatpush1.xpose.msra.mxu1 %v2004_v49  ;;  %v1710_v26 = vadd.f32 1.0, %v3712_v24 }
 0x29d   :  { %3713 = vlog2.f32 %v1711_v52  ;;  %3246 = vmatmul.mubr.f32.vlgmr.msra.gmra.mxu0 %v1912_v12  ;;  %3419 = vmatprep.subr.mxu1 %v2051_v42 }
 0x29e   :  { %3350 = vmatpush1.xpose.msra.mxu0 %v2048_v53  ;;  %3715 = vlog2.f32 %v1710_v26 }
 0x29f   :  { %3351 = vmatprep.subr.mxu0 %v2007_v54 }
 0x2a2   :  { %3352 = vmatpush1.xpose.msra.mxu0 %v2006_v55 }
 0x2a3   :  { %3489 = vmatprep.subr.mxu0 %v2053_v16 }
 0x2aa   :  { %v3714_v48 = vpop.eup %3713 }
 0x2ab   :  { %v3716_v50 = vpop.eup %3715  ;;  %v1715_v25 = vmul.f32 0.6931472, %v3714_v48 }
 0x2ac   :  { %v1713_v57 = vmul.f32 0.6931472, %v3716_v50 }
 0x2ad   :  { %v1717_v59 = vadd.f32 %v1715_v25, %v1701_v56 }
 0x2ae   :  { %v1716_v62 = vadd.f32 %v1713_v57, %v1700_v58 }
 0x2af   :  { %v1947_v29 = vcombine.high %v1717_v59, %v1717_v59  ;;  %v1954_v45 = vrot.slane %v1717_v59, %v4448_v47 }
 0x2b0   :  { %v1937_v14 = vrot.slane %v1716_v62, %v4448_v47  ;;  %v1930_v36 = vcombine.high %v1716_v62, %v1716_v62 }
 0x2b1   :  { %v1961_v3 = vrot.slane %v1947_v29, %v4448_v47  ;;  %v1962_v11 = vcombine.high %v1954_v45, %v1954_v45 }
 0x2b2   :  { %v1945_v6 = vcombine.high %v1937_v14, %v1937_v14  ;;  %3315 = vmatprep.mubr.f32.mxu1 %v1937_v14  ;;  %v1944_v7 = vrot.slane %v1930_v36, %v4448_v47 }
 0x2b3   :  { %3316 = vmatmul.mubr.f32.vlgmr.msra.gmra.mxu1 %v1919_v33 }
 0x2b4   :  { %3420 = vmatpush1.xpose.msra.mxu1 %v2050_v18  ;;  %3385 = vmatprep.mubr.f32.mxu0 %v1944_v7  ;;  %v1946_v51 = vcombine.high %v1944_v7, %v1944_v7 }
 0x2b5   :  { %3455 = vmatprep.mubr.f32.mxu1 %v1954_v45  ;;  %3386 = vmatmul.mubr.f32.vlgmr.msra.gmra.mxu0 %v1945_v6 }
 0x2b6   :  { %3490 = vmatpush1.xpose.msra.mxu0 %v2052_v8  ;;  %3421 = vmatprep.subr.mxu1 %v2009_v63 }
 0x2b7   :  { %3525 = vmatprep.mubr.f32.mxu0 %v1961_v3  ;;  %3491 = vmatprep.subr.mxu0 %v2011_v60 }
 0x2b8   :  { %3422 = vmatpush1.xpose.msra.mxu1 %v2008_v31 }
 0x2ba   :  { %3492 = vmatpush1.xpose.msra.mxu0 %v2010_v9 }
 0x2bb   :  { %3456 = vmatmul.mubr.f32.vlgmr.msra.gmra.mxu1 %v1946_v51 }
 0x2bd   :  { %3526 = vmatmul.mubr.f32.vlgmr.msra.gmra.mxu0 %v1962_v11 }
 0x2d5   :  { %v2127_v10 = vpop.f32.mrf.mxu0 }
 0x2d6   :  { %v2128_v1 = vadd.f32 %v3645_v4, %v2127_v10 }
 0x2d7   :  { %v2129_v5 = vpop.f32.mrf.mxu0  ;;  %v2197_v47 = vpop.f32.mrf.mxu1 }
 0x2d8   :  { %v2198_v15 = vadd.f32 %v2197_v47, %v2128_v1 }
 0x2d9   :  { %v2199_v17 = vpop.f32.mrf.mxu1 }
 0x2dd   :  { %v2267_v19 = vpop.f32.mrf.mxu0 }
 0x2de   :  { %v2268_v61 = vadd.f32 %v2267_v19, %v2198_v15 }
 0x2df   :  { %v2269_v22 = vpop.f32.mrf.mxu0 }
 0x2f3   :  { %v2337_v0 = vpop.f32.mrf.mxu1 }
 0x2f4   :  { %v2338_v28 = vadd.f32 %v2337_v0, %v2268_v61 }
 0x2f5   :  { %v2339_v30 = vpop.f32.mrf.mxu1 }
 0x2f6   :  { %v2407_v32 = vpop.f32.mrf.mxu0 }
 0x2f7   :  { %v2408_v34 = vadd.f32 %v2407_v32, %v2338_v28 }
 0x2f8   :  { %v2409_v35 = vpop.f32.mrf.mxu0 }
 0x2fb   :  { %v2477_v37 = vpop.f32.mrf.mxu1 }
 0x2fc   :  { %v2478_v38 = vadd.f32 %v2477_v37, %v2408_v34 }
 0x2fd   :  { %v2479_v12 = vpop.f32.mrf.mxu1 }
 0x2fe   :  { %v2547_v39 = vpop.f32.mrf.mxu0 }
 0x2ff   :  { %v2548_v41 = vadd.f32 %v2547_v39, %v2478_v38 }
 0x300   :  { %v2549_v40 = vpop.f32.mrf.mxu0 }
 0x319   :  { %v2617_v13 = vpop.f32.mrf.mxu1 }
 0x31a   :  { %v2618_v46 = vadd.f32 %v2617_v13, %v2548_v41 }
 0x31b   :  { %v2619_v21 = vpop.f32.mrf.mxu1 }
 0x31c   :  { %v2687_v20 = vpop.f32.mrf.mxu0 }
 0x31d   :  { %v2688_v44 = vadd.f32 %v2687_v20, %v2618_v46 }
 0x31e   :  { %v2689_v23 = vpop.f32.mrf.mxu0 }
 0x321   :  { %v2757_v43 = vpop.f32.mrf.mxu1 }
 0x322   :  { %v2758_v49 = vadd.f32 %v2757_v43, %v2688_v44 }
 0x323   :  { %v2759_v2 = vpop.f32.mrf.mxu1 }
 0x333   :  { %v2827_v42 = vpop.f32.mrf.mxu0 }
 0x334   :  { %v2828_v27 = vadd.f32 %v2827_v42, %v2758_v49 }
 0x335   :  { %v2829_v24 = vpop.f32.mrf.mxu0  ;;  %v2897_v52 = vpop.f32.mrf.mxu1 }
 0x336   :  { %v2898_v59 = vadd.f32 %v2897_v52, %v2828_v27 }
 0x337   :  { %v2899_v53 = vpop.f32.mrf.mxu1 }
 0x33b   :  { %v2967_v54 = vpop.f32.mrf.mxu0 }
 0x33c   :  { %v2968_v62 = vadd.f32 %v2967_v54, %v2898_v59 }
 0x33d   :  { %v2969_v26 = vpop.f32.mrf.mxu0  ;;  %v3037_v55 = vpop.f32.mrf.mxu1 }
 0x33e   :  { %v3038_v14 = vadd.f32 %v3037_v55, %v2968_v62 }
 0x33f   :  { %v3039_v16 = vpop.f32.mrf.mxu1 }
 0x355   :  { %v3107_v48 = vpop.f32.mrf.mxu0 }
 0x356   :  { %v3108_v36 = vadd.f32 %v3107_v48, %v3038_v14 }
 0x357   :  { %v3109_v50 = vpop.f32.mrf.mxu0  ;;  %v3177_v56 = vpop.f32.mrf.mxu1 }
 0x358   :  { %v3178_v33 = vadd.f32 %v3177_v56, %v3108_v36 }
 0x359   :  { %v3179_v25 = vpop.f32.mrf.mxu1 }
 0x35d   :  { %v3247_v58 = vpop.f32.mrf.mxu0 }
 0x35e   :  { %v3248_v29 = vadd.f32 %v3247_v58, %v3178_v33 }
 0x35f   :  { %v3249_v57 = vpop.f32.mrf.mxu0 }
 0x373   :  { %v3317_v18 = vpop.f32.mrf.mxu1 }
 0x374   :  { %v3318_v45 = vadd.f32 %v3317_v18, %v3248_v29 }
 0x375   :  { %v3319_v6 = vpop.f32.mrf.mxu1  ;;  %v3387_v7 = vpop.f32.mrf.mxu0 }
 0x376   :  { %v3388_v63 = vadd.f32 %v3387_v7, %v3318_v45 }
 0x377   :  { %v3389_v8 = vpop.f32.mrf.mxu0 }
 0x37b   :  { %v3457_v60 = vpop.f32.mrf.mxu1 }
 0x37c   :  { %v3458_v3 = vadd.f32 %v3457_v60, %v3388_v63 }
 0x37d   :  { %v3459_v31 = vpop.f32.mrf.mxu1  ;;  %v3527_v9 = vpop.f32.mrf.mxu0 }
 0x37e   :  { %v3528_v51 = vadd.f32 %v3527_v9, %v3458_v3 }
 0x37f   :  { %v3529_v11 = vpop.f32.mrf.mxu0 }
 0x380   :  { %v3531_v4 = vand.u32 2147483647, %v3528_v51  ;;  %vm3535_vm10 = vcmp.ge.f32.partialorder %v3528_v51, 0.0 }
 0x382   :  { %v3532_v10 = vsub.f32 0.0, %v3531_v4 }
 0x384   :  { %v3533_v1 = vmul.f32 1.442695, %v3532_v10 }
 0x386   :  { %3717 = vpow2.f32 %v3533_v1 }
 0x393   :  { %v3718_v5 = vpop.eup %3717 }
 0x394   :  { %v3536_v47 = vadd.f32 1.0, %v3718_v5 }
 0x396   :  { %3719 = vrcp.f32 %v3536_v47 }
 0x3a3   :  { %v3720_v15 = vpop.eup %3719 }
 0x3a4   :  { %v3539_v17 = vmul.f32 %v3720_v15, %v3718_v5 }
 0x3a6   :  { %v3540_v19 = vsel %vm3535_vm10, %v3720_v15, %v3539_v17 }
 0x3a7   :  { %3542 = vst.msk [vmem:[#allocation9] sm:$0x3] %vm3541_vm9, %v3540_v19 }
 0x3a8   :  { %3776 = shalt.err (!%p3773_p5)
}
 0x3a9   :  { %3552 = dma.vmem_to_hbm [thread:$0]  %s3550_s20, 32, %s4736_s5, [#allocation4]  }
 0x3aa   :  { %3791 = dma.done.wait [#allocation4], 32  }
 0x3ab   :  { %3792 = vsyncadd [#allocation4], 4294967264 }
 0x3ac   :  { %3556 = vsyncpa [#allocation3], 1 }
 0x3ad   :  { %3557 = vsyncpa [#allocation4], 1 }
 0x3ae   :  { %3558 = vsyncpa [#allocation5], 1 }
 0x3af   :  { %3559 = vsyncpa [#allocation7], 1 }

</bundles_post_ra>
